<compile_context>
chip_gen: v7x
topology: tpu7x:2x2x1
jax: 0.10.0
libtpu: 0.0.40
codegen_flags: <defaults>
</compile_context>

<pallas_src>
import functools

import jax
import jax.numpy as jnp
import numpy as np
from jax.experimental import pallas as pl
from jax.experimental.pallas import tpu as pltpu

L_IN = 128
C_HID = 64
L1 = L_IN - 2            # 126 after conv1 (k=3, s=1, no pad)
L2 = L1 - 2              # 124 after conv2
L_POOL = L2 // 2         # 62  after maxpool(k=2, s=2)
FLAT = C_HID * L_POOL    # 3968 == lin3.in_features
HIDDEN = 100
H_PAD = 128              # hidden padded to full lane width
N_CHUNK = FLAT // H_PAD  # 31 lane-dense 128-wide chunks of the flat vector


def _pick_tb(batch):
    """Batch-tile size: amortize per-step overhead, keep >=2 grid steps."""
    if batch < 2:
        return 1
    return int(min(8, max(1, batch // 2)))


def _cnn1_fused_kernel(xc_ref, w1_ref, b1_ref, w2_ref, b2_ref,
                       w3_ref, b3_ref, w4_ref, b4_ref,
                       o_ref, a2_ref, flat_ref, *, tb):
    """Fused forward for a tile of `tb` samples (channels-last layouts)."""
    w1 = w1_ref[...]                       # (3*Cin, 64)  bf16
    w2 = w2_ref[...]                       # (192, 64)    bf16
    b1 = b1_ref[...]                       # (1, 64)      f32
    b2 = b2_ref[...]                       # (1, 64)      f32

    for i in range(tb):                    # static unroll over the batch tile
        # conv1 (im2col done on host): (126, 3*Cin) @ (3*Cin, 64) + bias, relu
        xc = xc_ref[i]                                         # (126, 3*Cin)
        a1 = jnp.dot(xc, w1, preferred_element_type=jnp.float32)
        a1 = jnp.maximum(a1 + b1, 0.0).astype(jnp.bfloat16)    # (126, 64)

        # conv2 via in-kernel im2col: concat 3 shifted views -> single K=192 dot
        ac = jnp.concatenate([a1[0:L2, :], a1[1:L2 + 1, :], a1[2:L2 + 2, :]],
                             axis=1)                           # (124, 192)
        a2 = jnp.dot(ac, w2, preferred_element_type=jnp.float32)
        a2_ref[...] = jnp.maximum(a2 + b2, 0.0)                # (124, 64) f32

        # TODO(synk): Dropout(p=0.6) is identity in eval mode; torch-RNG
        # training-mode dropout is not reproduced.

        # MaxPool1d(k=2, s=2) + length-major flatten into 128-lane chunks:
        #   flat[i*31 + m, j] = pooled[2m + (j>=64), j % 64]
        r0 = a2_ref[pl.ds(0, N_CHUNK, stride=4), :]            # rows 4m
        r1 = a2_ref[pl.ds(1, N_CHUNK, stride=4), :]            # rows 4m+1
        r2 = a2_ref[pl.ds(2, N_CHUNK, stride=4), :]            # rows 4m+2
        r3 = a2_ref[pl.ds(3, N_CHUNK, stride=4), :]            # rows 4m+3
        flat_ref[pl.ds(i * N_CHUNK, N_CHUNK), pl.ds(0, C_HID)] = (
            jnp.maximum(r0, r1))
        flat_ref[pl.ds(i * N_CHUNK, N_CHUNK), pl.ds(C_HID, C_HID)] = (
            jnp.maximum(r2, r3))

    # lin3: (tb, 3968) @ (3968, 128) as 31 lane-dense K=128 chunks (w3 rows
    # pre-permuted on host to this flat ordering), f32 accumulation.
    def chunk_lhs(m):
        if tb > 1:
            rows = flat_ref[pl.ds(m, tb, stride=N_CHUNK), :]
        else:
            rows = flat_ref[pl.ds(m, 1), :]
        return rows.astype(jnp.bfloat16)                       # (tb, 128)

    h = jnp.dot(chunk_lhs(0), w3_ref[0], preferred_element_type=jnp.float32)
    for m in range(1, N_CHUNK):
        h = h + jnp.dot(chunk_lhs(m), w3_ref[m],
                        preferred_element_type=jnp.float32)
    h = jnp.maximum(h + b3_ref[...], 0.0).astype(jnp.bfloat16)  # (tb, 128)

    # lin4 (padded to 128 output lanes -> lane-dense store)
    o = jnp.dot(h, w4_ref[...], preferred_element_type=jnp.float32)
    o_ref[0] = jnp.maximum(o + b4_ref[...], 0.0)                # (tb, NCP)


@jax.jit
def cnn1_forward(x, params):
    """x: (B, Cin, 128) PyTorch NCL layout.  Returns (B, n_classes) f32."""
    B, c_in, l_in = x.shape
    assert l_in == L_IN, "lin3 in_features=3968 implies input length 128"
    nc = params["lin4_b"].shape[0]
    ncp = ((nc + 127) // 128) * 128

    TB = _pick_tb(B)
    nb = -(-B // TB)
    b_pad = nb * TB

    # --- host-side input prep: channels-last + im2col for conv1, bf16 ---
    x_t = jnp.transpose(x, (0, 2, 1)).astype(jnp.float32)            # (B,128,Cin)
    xc = jnp.concatenate([x_t[:, k:k + L1, :] for k in range(3)],
                         axis=-1)                                    # (B,126,3Cin)
    if b_pad != B:
        xc = jnp.concatenate(
            [xc, jnp.zeros((b_pad - B, L1, 3 * c_in), xc.dtype)], axis=0)
    xc = xc.astype(jnp.bfloat16)

    # --- conv weights as im2col matrices (row order k*Cin + ci) ---
    w1c = jnp.transpose(params["conv1_w"], (2, 1, 0)).reshape(
        3 * c_in, C_HID).astype(jnp.bfloat16)
    b1 = params["conv1_b"].reshape(1, C_HID).astype(jnp.float32)
    w2c = jnp.transpose(params["conv2_w"], (2, 1, 0)).reshape(
        3 * C_HID, C_HID).astype(jnp.bfloat16)
    b2 = params["conv2_b"].reshape(1, C_HID).astype(jnp.float32)

    # --- lin3: permute torch channel-major flat order -> kernel length-major,
    #     pad hidden to 128, split into 31 (128, 128) chunks ---
    w3 = params["lin3_w"]                                            # (100, 3968)
    w3_lm = jnp.transpose(w3.reshape(HIDDEN, C_HID, L_POOL),
                          (2, 1, 0)).reshape(FLAT, HIDDEN)           # row l*64+c
    w3_lm = jnp.pad(w3_lm, ((0, 0), (0, H_PAD - HIDDEN)))
    w3_chunks = w3_lm.reshape(N_CHUNK, H_PAD, H_PAD).astype(jnp.bfloat16)
    b3 = jnp.pad(params["lin3_b"], (0, H_PAD - HIDDEN)).reshape(
        1, H_PAD).astype(jnp.float32)

    # --- lin4 padded to (128, ncp); zero pad rows/cols contribute nothing ---
    w4 = jnp.pad(params["lin4_w"].T,
                 ((0, H_PAD - HIDDEN), (0, ncp - nc))).astype(jnp.bfloat16)
    b4 = jnp.pad(params["lin4_b"], (0, ncp - nc)).reshape(
        1, ncp).astype(jnp.float32)

    kernel = functools.partial(_cnn1_fused_kernel, tb=TB)
    out3 = pl.pallas_call(
        kernel,
        out_shape=jax.ShapeDtypeStruct((nb, TB, ncp), jnp.float32),
        grid_spec=pltpu.PrefetchScalarGridSpec(
            num_scalar_prefetch=0,
            grid=(nb,),
            in_specs=[
                pl.BlockSpec((TB, L1, 3 * c_in), lambda b: (b, 0, 0)),
                pl.BlockSpec((3 * c_in, C_HID), lambda b: (0, 0)),
                pl.BlockSpec((1, C_HID), lambda b: (0, 0)),
                pl.BlockSpec((3 * C_HID, C_HID), lambda b: (0, 0)),
                pl.BlockSpec((1, C_HID), lambda b: (0, 0)),
                pl.BlockSpec((N_CHUNK, H_PAD, H_PAD), lambda b: (0, 0, 0)),
                pl.BlockSpec((1, H_PAD), lambda b: (0, 0)),
                pl.BlockSpec((H_PAD, ncp), lambda b: (0, 0)),
                pl.BlockSpec((1, ncp), lambda b: (0, 0)),
            ],
            out_specs=pl.BlockSpec((1, TB, ncp), lambda b: (b, 0, 0)),
            scratch_shapes=[
                pltpu.VMEM((L2, C_HID), jnp.float32),          # a2 (per sample)
                pltpu.VMEM((TB * N_CHUNK, H_PAD), jnp.float32),  # flat tile
            ],
        ),
        compiler_params=pltpu.CompilerParams(
            dimension_semantics=("parallel",)),
    )(xc, w1c, b1, w2c, b2, w3_chunks, b3, w4, b4)

    return out3.reshape(b_pad, ncp)[:B, :nc]


def cnn1_reference(x, params):
    """Pure-JAX f32 reference of the PyTorch forward (eval-mode dropout)."""
    B = x.shape[0]
    xt = jnp.transpose(x, (0, 2, 1))
    w1 = jnp.transpose(params["conv1_w"], (2, 1, 0))
    w2 = jnp.transpose(params["conv2_w"], (2, 1, 0))

    a1 = sum(jnp.einsum("blc,cd->bld", xt[:, k:k + L1, :], w1[k],
                        precision="highest") for k in range(3))
    a1 = jnp.maximum(a1 + params["conv1_b"], 0.0)
    a2 = sum(jnp.einsum("blc,cd->bld", a1[:, k:k + L2, :], w2[k],
                        precision="highest") for k in range(3))
    a2 = jnp.maximum(a2 + params["conv2_b"], 0.0)
    pooled = jnp.max(a2.reshape(B, L_POOL, 2, C_HID), axis=2)
    flat = jnp.transpose(pooled, (0, 2, 1)).reshape(B, FLAT)   # torch view(B,-1)
    h = jnp.maximum(jnp.dot(flat, params["lin3_w"].T, precision="highest")
                    + params["lin3_b"], 0.0)
    o = jnp.maximum(jnp.dot(h, params["lin4_w"].T, precision="highest")
                    + params["lin4_b"], 0.0)
    return o


def init_params(key, c_in, n_classes):
    ks = jax.random.split(key, 8)
    s = 0.05
    return {
        "conv1_w": s * jax.random.normal(ks[0], (C_HID, c_in, 3), jnp.float32),
        "conv1_b": s * jax.random.normal(ks[1], (C_HID,), jnp.float32),
        "conv2_w": s * jax.random.normal(ks[2], (C_HID, C_HID, 3), jnp.float32),
        "conv2_b": s * jax.random.normal(ks[3], (C_HID,), jnp.float32),
        "lin3_w": s * jax.random.normal(ks[4], (HIDDEN, FLAT), jnp.float32),
        "lin3_b": s * jax.random.normal(ks[5], (HIDDEN,), jnp.float32),
        "lin4_w": s * jax.random.normal(ks[6], (n_classes, HIDDEN), jnp.float32),
        "lin4_b": s * jax.random.normal(ks[7], (n_classes,), jnp.float32),
    }


if __name__ == "__main__":
    key = jax.random.PRNGKey(0)
    kx, kp = jax.random.split(key)
    C_IN, N_CLASSES = 4, 6
    params = init_params(kp, C_IN, N_CLASSES)

    # B=2: TB=1, 2 parallel grid steps.  B=5: TB=2, grid=3, exercises padding.
    for B in (2, 5):
        x = jax.random.normal(jax.random.fold_in(kx, B),
                              (B, C_IN, L_IN), jnp.float32)   # PyTorch NCL
        out = jax.block_until_ready(cnn1_forward(x, params))
        ref = cnn1_reference(x, params)
        assert out.shape == (B, N_CLASSES)
        # bf16 matmul operands (f32 accumulate) vs f32 "highest" reference.
        np.testing.assert_allclose(np.asarray(out), np.asarray(ref),
                                   rtol=2e-2, atol=5e-3)
    print("KERNEL_OK")
</pallas_src>

<mosaic_0001>
module attributes {stable_mosaic.version = 11 : i64} {
  func.func @_cnn1_fused_kernel(%arg0: i32, %arg1: memref<1x126x12xbf16, #tpu.memory_space<vmem>>, %arg2: memref<12x64xbf16, #tpu.memory_space<vmem>>, %arg3: memref<1x64xf32, #tpu.memory_space<vmem>>, %arg4: memref<192x64xbf16, #tpu.memory_space<vmem>>, %arg5: memref<1x64xf32, #tpu.memory_space<vmem>>, %arg6: memref<31x128x128xbf16, #tpu.memory_space<vmem>>, %arg7: memref<1x128xf32, #tpu.memory_space<vmem>>, %arg8: memref<128x128xbf16, #tpu.memory_space<vmem>>, %arg9: memref<1x128xf32, #tpu.memory_space<vmem>>, %arg10: memref<1x1x128xf32, #tpu.memory_space<vmem>>, %arg11: memref<124x64xf32, #tpu.memory_space<vmem>>, %arg12: memref<31x128xf32, #tpu.memory_space<vmem>>) attributes {dimension_semantics = [#tpu.dimension_semantics<parallel>], iteration_bounds = array<i64: 2>, scalar_prefetch = 0 : i64, scratch_operands = 2 : i64, tpu.core_type = #tpu.core_type<tc>, window_params = [{transform_indices = @transform_0, window_bounds = array<i64: 1, 126, 12>}, {pipeline_mode = #tpu.pipeline_mode<synchronous>, transform_indices = @transform_1, window_bounds = array<i64: 12, 64>}, {pipeline_mode = #tpu.pipeline_mode<synchronous>, transform_indices = @transform_2, window_bounds = array<i64: 1, 64>}, {pipeline_mode = #tpu.pipeline_mode<synchronous>, transform_indices = @transform_3, window_bounds = array<i64: 192, 64>}, {pipeline_mode = #tpu.pipeline_mode<synchronous>, transform_indices = @transform_4, window_bounds = array<i64: 1, 64>}, {pipeline_mode = #tpu.pipeline_mode<synchronous>, transform_indices = @transform_5, window_bounds = array<i64: 31, 128, 128>}, {pipeline_mode = #tpu.pipeline_mode<synchronous>, transform_indices = @transform_6, window_bounds = array<i64: 1, 128>}, {pipeline_mode = #tpu.pipeline_mode<synchronous>, transform_indices = @transform_7, window_bounds = array<i64: 128, 128>}, {pipeline_mode = #tpu.pipeline_mode<synchronous>, transform_indices = @transform_8, window_bounds = array<i64: 1, 128>}, {transform_indices = @transform_9, window_bounds = array<i64: 1, 1, 128>}]} {
    %c0 = arith.constant 0 : index
    %c0_0 = arith.constant 0 : index
    %0 = vector.load %arg2[%c0, %c0_0] : memref<12x64xbf16, #tpu.memory_space<vmem>>, vector<12x64xbf16>
    %c0_1 = arith.constant 0 : index
    %c0_2 = arith.constant 0 : index
    %1 = vector.load %arg4[%c0_1, %c0_2] : memref<192x64xbf16, #tpu.memory_space<vmem>>, vector<192x64xbf16>
    %c0_3 = arith.constant 0 : index
    %c0_4 = arith.constant 0 : index
    %2 = vector.load %arg3[%c0_3, %c0_4] : memref<1x64xf32, #tpu.memory_space<vmem>>, vector<1x64xf32>
    %c0_5 = arith.constant 0 : index
    %c0_6 = arith.constant 0 : index
    %3 = vector.load %arg5[%c0_5, %c0_6] : memref<1x64xf32, #tpu.memory_space<vmem>>, vector<1x64xf32>
    %c0_7 = arith.constant 0 : index
    %c0_8 = arith.constant 0 : index
    %c0_9 = arith.constant 0 : index
    %4 = vector.load %arg1[%c0_7, %c0_8, %c0_9] : memref<1x126x12xbf16, #tpu.memory_space<vmem>>, vector<1x126x12xbf16>
    %5 = vector.shape_cast %4 : vector<1x126x12xbf16> to vector<126x12xbf16>
    %cst = arith.constant dense<0.000000e+00> : vector<126x64xf32>
    %6 = tpu.matmul %5, %0, %cst {dimension_numbers = #tpu.dot_dimension_numbers<[1], [0], [0], [1], [0, 0, 1, 1], [], []>} : vector<126x12xbf16>, vector<12x64xbf16>, vector<126x64xf32> -> vector<126x64xf32>
    %7 = vector.broadcast %2 : vector<1x64xf32> to vector<126x64xf32>
    %8 = arith.addf %6, %7 : vector<126x64xf32>
    %cst_10 = arith.constant 0.000000e+00 : f32
    %9 = vector.broadcast %cst_10 : f32 to vector<126x64xf32>
    %10 = arith.maximumf %8, %9 : vector<126x64xf32>
    %11 = arith.truncf %10 : vector<126x64xf32> to vector<126x64xbf16>
    %12 = vector.extract_strided_slice %11 {offsets = [0, 0], sizes = [124, 64], strides = [1, 1]} : vector<126x64xbf16> to vector<124x64xbf16>
    %13 = vector.extract_strided_slice %11 {offsets = [1, 0], sizes = [124, 64], strides = [1, 1]} : vector<126x64xbf16> to vector<124x64xbf16>
    %14 = vector.extract_strided_slice %11 {offsets = [2, 0], sizes = [124, 64], strides = [1, 1]} : vector<126x64xbf16> to vector<124x64xbf16>
    %15 = tpu.concatenate %12, %13, %14 in 1 : vector<124x64xbf16>, vector<124x64xbf16>, vector<124x64xbf16> -> vector<124x192xbf16>
    %cst_11 = arith.constant dense<0.000000e+00> : vector<124x64xf32>
    %16 = tpu.matmul %15, %1, %cst_11 {dimension_numbers = #tpu.dot_dimension_numbers<[1], [0], [0], [1], [0, 0, 1, 1], [], []>} : vector<124x192xbf16>, vector<192x64xbf16>, vector<124x64xf32> -> vector<124x64xf32>
    %17 = vector.broadcast %3 : vector<1x64xf32> to vector<124x64xf32>
    %18 = arith.addf %16, %17 : vector<124x64xf32>
    %cst_12 = arith.constant 0.000000e+00 : f32
    %19 = vector.broadcast %cst_12 : f32 to vector<124x64xf32>
    %20 = arith.maximumf %18, %19 : vector<124x64xf32>
    %c0_13 = arith.constant 0 : index
    %c0_14 = arith.constant 0 : index
    %21 = vector.load %arg11[%c0_13, %c0_14] : memref<124x64xf32, #tpu.memory_space<vmem>>, vector<124x64xf32>
    tpu.vector_store %arg11[%c0_13, %c0_14], %20 {strides = array<i32>} : memref<124x64xf32, #tpu.memory_space<vmem>>, vector<124x64xf32>,
    %c0_15 = arith.constant 0 : index
    %c0_16 = arith.constant 0 : index
    %22 = tpu.strided_load %arg11[%c0_15, %c0_16] {strides = array<i32: 4, 1>} : memref<124x64xf32, #tpu.memory_space<vmem>>, vector<31x64xf32>
    %c1 = arith.constant 1 : index
    %c0_17 = arith.constant 0 : index
    %23 = tpu.strided_load %arg11[%c1, %c0_17] {strides = array<i32: 4, 1>} : memref<124x64xf32, #tpu.memory_space<vmem>>, vector<31x64xf32>
    %c2 = arith.constant 2 : index
    %c0_18 = arith.constant 0 : index
    %24 = tpu.strided_load %arg11[%c2, %c0_18] {strides = array<i32: 4, 1>} : memref<124x64xf32, #tpu.memory_space<vmem>>, vector<31x64xf32>
    %c3 = arith.constant 3 : index
    %c0_19 = arith.constant 0 : index
    %25 = tpu.strided_load %arg11[%c3, %c0_19] {strides = array<i32: 4, 1>} : memref<124x64xf32, #tpu.memory_space<vmem>>, vector<31x64xf32>
    %26 = arith.maximumf %22, %23 : vector<31x64xf32>
    %c0_20 = arith.constant 0 : index
    %c0_21 = arith.constant 0 : index
    %27 = vector.load %arg12[%c0_20, %c0_21] : memref<31x128xf32, #tpu.memory_space<vmem>>, vector<31x64xf32>
    tpu.vector_store %arg12[%c0_20, %c0_21], %26 {strides = array<i32>} : memref<31x128xf32, #tpu.memory_space<vmem>>, vector<31x64xf32>,
    %28 = arith.maximumf %24, %25 : vector<31x64xf32>
    %c0_22 = arith.constant 0 : index
    %c64 = arith.constant 64 : index
    %29 = vector.load %arg12[%c0_22, %c64] : memref<31x128xf32, #tpu.memory_space<vmem>>, vector<31x64xf32>
    tpu.vector_store %arg12[%c0_22, %c64], %28 {strides = array<i32>} : memref<31x128xf32, #tpu.memory_space<vmem>>, vector<31x64xf32>,
    %c0_23 = arith.constant 0 : index
    %c0_24 = arith.constant 0 : index
    %30 = vector.load %arg12[%c0_23, %c0_24] : memref<31x128xf32, #tpu.memory_space<vmem>>, vector<1x128xf32>
    %31 = arith.truncf %30 : vector<1x128xf32> to vector<1x128xbf16>
    %c0_25 = arith.constant 0 : index
    %c0_26 = arith.constant 0 : index
    %c0_27 = arith.constant 0 : index
    %32 = vector.load %arg6[%c0_25, %c0_26, %c0_27] : memref<31x128x128xbf16, #tpu.memory_space<vmem>>, vector<1x128x128xbf16>
    %33 = vector.shape_cast %32 : vector<1x128x128xbf16> to vector<128x128xbf16>
    %cst_28 = arith.constant dense<0.000000e+00> : vector<1x128xf32>
    %34 = tpu.matmul %31, %33, %cst_28 {dimension_numbers = #tpu.dot_dimension_numbers<[1], [0], [0], [1], [0, 0, 1, 1], [], []>} : vector<1x128xbf16>, vector<128x128xbf16>, vector<1x128xf32> -> vector<1x128xf32>
    %c1_29 = arith.constant 1 : index
    %c0_30 = arith.constant 0 : index
    %35 = vector.load %arg12[%c1_29, %c0_30] : memref<31x128xf32, #tpu.memory_space<vmem>>, vector<1x128xf32>
    %36 = arith.truncf %35 : vector<1x128xf32> to vector<1x128xbf16>
    %c1_31 = arith.constant 1 : index
    %c0_32 = arith.constant 0 : index
    %c0_33 = arith.constant 0 : index
    %37 = vector.load %arg6[%c1_31, %c0_32, %c0_33] : memref<31x128x128xbf16, #tpu.memory_space<vmem>>, vector<1x128x128xbf16>
    %38 = vector.shape_cast %37 : vector<1x128x128xbf16> to vector<128x128xbf16>
    %cst_34 = arith.constant dense<0.000000e+00> : vector<1x128xf32>
    %39 = tpu.matmul %36, %38, %cst_34 {dimension_numbers = #tpu.dot_dimension_numbers<[1], [0], [0], [1], [0, 0, 1, 1], [], []>} : vector<1x128xbf16>, vector<128x128xbf16>, vector<1x128xf32> -> vector<1x128xf32>
    %40 = arith.addf %34, %39 : vector<1x128xf32>
    %c2_35 = arith.constant 2 : index
    %c0_36 = arith.constant 0 : index
    %41 = vector.load %arg12[%c2_35, %c0_36] : memref<31x128xf32, #tpu.memory_space<vmem>>, vector<1x128xf32>
    %42 = arith.truncf %41 : vector<1x128xf32> to vector<1x128xbf16>
    %c2_37 = arith.constant 2 : index
    %c0_38 = arith.constant 0 : index
    %c0_39 = arith.constant 0 : index
    %43 = vector.load %arg6[%c2_37, %c0_38, %c0_39] : memref<31x128x128xbf16, #tpu.memory_space<vmem>>, vector<1x128x128xbf16>
    %44 = vector.shape_cast %43 : vector<1x128x128xbf16> to vector<128x128xbf16>
    %cst_40 = arith.constant dense<0.000000e+00> : vector<1x128xf32>
    %45 = tpu.matmul %42, %44, %cst_40 {dimension_numbers = #tpu.dot_dimension_numbers<[1], [0], [0], [1], [0, 0, 1, 1], [], []>} : vector<1x128xbf16>, vector<128x128xbf16>, vector<1x128xf32> -> vector<1x128xf32>
    %46 = arith.addf %40, %45 : vector<1x128xf32>
    %c3_41 = arith.constant 3 : index
    %c0_42 = arith.constant 0 : index
    %47 = vector.load %arg12[%c3_41, %c0_42] : memref<31x128xf32, #tpu.memory_space<vmem>>, vector<1x128xf32>
    %48 = arith.truncf %47 : vector<1x128xf32> to vector<1x128xbf16>
    %c3_43 = arith.constant 3 : index
    %c0_44 = arith.constant 0 : index
    %c0_45 = arith.constant 0 : index
    %49 = vector.load %arg6[%c3_43, %c0_44, %c0_45] : memref<31x128x128xbf16, #tpu.memory_space<vmem>>, vector<1x128x128xbf16>
    %50 = vector.shape_cast %49 : vector<1x128x128xbf16> to vector<128x128xbf16>
    %cst_46 = arith.constant dense<0.000000e+00> : vector<1x128xf32>
    %51 = tpu.matmul %48, %50, %cst_46 {dimension_numbers = #tpu.dot_dimension_numbers<[1], [0], [0], [1], [0, 0, 1, 1], [], []>} : vector<1x128xbf16>, vector<128x128xbf16>, vector<1x128xf32> -> vector<1x128xf32>
    %52 = arith.addf %46, %51 : vector<1x128xf32>
    %c4 = arith.constant 4 : index
    %c0_47 = arith.constant 0 : index
    %53 = vector.load %arg12[%c4, %c0_47] : memref<31x128xf32, #tpu.memory_space<vmem>>, vector<1x128xf32>
    %54 = arith.truncf %53 : vector<1x128xf32> to vector<1x128xbf16>
    %c4_48 = arith.constant 4 : index
    %c0_49 = arith.constant 0 : index
    %c0_50 = arith.constant 0 : index
    %55 = vector.load %arg6[%c4_48, %c0_49, %c0_50] : memref<31x128x128xbf16, #tpu.memory_space<vmem>>, vector<1x128x128xbf16>
    %56 = vector.shape_cast %55 : vector<1x128x128xbf16> to vector<128x128xbf16>
    %cst_51 = arith.constant dense<0.000000e+00> : vector<1x128xf32>
    %57 = tpu.matmul %54, %56, %cst_51 {dimension_numbers = #tpu.dot_dimension_numbers<[1], [0], [0], [1], [0, 0, 1, 1], [], []>} : vector<1x128xbf16>, vector<128x128xbf16>, vector<1x128xf32> -> vector<1x128xf32>
    %58 = arith.addf %52, %57 : vector<1x128xf32>
    %c5 = arith.constant 5 : index
    %c0_52 = arith.constant 0 : index
    %59 = vector.load %arg12[%c5, %c0_52] : memref<31x128xf32, #tpu.memory_space<vmem>>, vector<1x128xf32>
    %60 = arith.truncf %59 : vector<1x128xf32> to vector<1x128xbf16>
    %c5_53 = arith.constant 5 : index
    %c0_54 = arith.constant 0 : index
    %c0_55 = arith.constant 0 : index
    %61 = vector.load %arg6[%c5_53, %c0_54, %c0_55] : memref<31x128x128xbf16, #tpu.memory_space<vmem>>, vector<1x128x128xbf16>
    %62 = vector.shape_cast %61 : vector<1x128x128xbf16> to vector<128x128xbf16>
    %cst_56 = arith.constant dense<0.000000e+00> : vector<1x128xf32>
    %63 = tpu.matmul %60, %62, %cst_56 {dimension_numbers = #tpu.dot_dimension_numbers<[1], [0], [0], [1], [0, 0, 1, 1], [], []>} : vector<1x128xbf16>, vector<128x128xbf16>, vector<1x128xf32> -> vector<1x128xf32>
    %64 = arith.addf %58, %63 : vector<1x128xf32>
    %c6 = arith.constant 6 : index
    %c0_57 = arith.constant 0 : index
    %65 = vector.load %arg12[%c6, %c0_57] : memref<31x128xf32, #tpu.memory_space<vmem>>, vector<1x128xf32>
    %66 = arith.truncf %65 : vector<1x128xf32> to vector<1x128xbf16>
    %c6_58 = arith.constant 6 : index
    %c0_59 = arith.constant 0 : index
    %c0_60 = arith.constant 0 : index
    %67 = vector.load %arg6[%c6_58, %c0_59, %c0_60] : memref<31x128x128xbf16, #tpu.memory_space<vmem>>, vector<1x128x128xbf16>
    %68 = vector.shape_cast %67 : vector<1x128x128xbf16> to vector<128x128xbf16>
    %cst_61 = arith.constant dense<0.000000e+00> : vector<1x128xf32>
    %69 = tpu.matmul %66, %68, %cst_61 {dimension_numbers = #tpu.dot_dimension_numbers<[1], [0], [0], [1], [0, 0, 1, 1], [], []>} : vector<1x128xbf16>, vector<128x128xbf16>, vector<1x128xf32> -> vector<1x128xf32>
    %70 = arith.addf %64, %69 : vector<1x128xf32>
    %c7 = arith.constant 7 : index
    %c0_62 = arith.constant 0 : index
    %71 = vector.load %arg12[%c7, %c0_62] : memref<31x128xf32, #tpu.memory_space<vmem>>, vector<1x128xf32>
    %72 = arith.truncf %71 : vector<1x128xf32> to vector<1x128xbf16>
    %c7_63 = arith.constant 7 : index
    %c0_64 = arith.constant 0 : index
    %c0_65 = arith.constant 0 : index
    %73 = vector.load %arg6[%c7_63, %c0_64, %c0_65] : memref<31x128x128xbf16, #tpu.memory_space<vmem>>, vector<1x128x128xbf16>
    %74 = vector.shape_cast %73 : vector<1x128x128xbf16> to vector<128x128xbf16>
    %cst_66 = arith.constant dense<0.000000e+00> : vector<1x128xf32>
    %75 = tpu.matmul %72, %74, %cst_66 {dimension_numbers = #tpu.dot_dimension_numbers<[1], [0], [0], [1], [0, 0, 1, 1], [], []>} : vector<1x128xbf16>, vector<128x128xbf16>, vector<1x128xf32> -> vector<1x128xf32>
    %76 = arith.addf %70, %75 : vector<1x128xf32>
    %c8 = arith.constant 8 : index
    %c0_67 = arith.constant 0 : index
    %77 = vector.load %arg12[%c8, %c0_67] : memref<31x128xf32, #tpu.memory_space<vmem>>, vector<1x128xf32>
    %78 = arith.truncf %77 : vector<1x128xf32> to vector<1x128xbf16>
    %c8_68 = arith.constant 8 : index
    %c0_69 = arith.constant 0 : index
    %c0_70 = arith.constant 0 : index
    %79 = vector.load %arg6[%c8_68, %c0_69, %c0_70] : memref<31x128x128xbf16, #tpu.memory_space<vmem>>, vector<1x128x128xbf16>
    %80 = vector.shape_cast %79 : vector<1x128x128xbf16> to vector<128x128xbf16>
    %cst_71 = arith.constant dense<0.000000e+00> : vector<1x128xf32>
    %81 = tpu.matmul %78, %80, %cst_71 {dimension_numbers = #tpu.dot_dimension_numbers<[1], [0], [0], [1], [0, 0, 1, 1], [], []>} : vector<1x128xbf16>, vector<128x128xbf16>, vector<1x128xf32> -> vector<1x128xf32>
    %82 = arith.addf %76, %81 : vector<1x128xf32>
    %c9 = arith.constant 9 : index
    %c0_72 = arith.constant 0 : index
    %83 = vector.load %arg12[%c9, %c0_72] : memref<31x128xf32, #tpu.memory_space<vmem>>, vector<1x128xf32>
    %84 = arith.truncf %83 : vector<1x128xf32> to vector<1x128xbf16>
    %c9_73 = arith.constant 9 : index
    %c0_74 = arith.constant 0 : index
    %c0_75 = arith.constant 0 : index
    %85 = vector.load %arg6[%c9_73, %c0_74, %c0_75] : memref<31x128x128xbf16, #tpu.memory_space<vmem>>, vector<1x128x128xbf16>
    %86 = vector.shape_cast %85 : vector<1x128x128xbf16> to vector<128x128xbf16>
    %cst_76 = arith.constant dense<0.000000e+00> : vector<1x128xf32>
    %87 = tpu.matmul %84, %86, %cst_76 {dimension_numbers = #tpu.dot_dimension_numbers<[1], [0], [0], [1], [0, 0, 1, 1], [], []>} : vector<1x128xbf16>, vector<128x128xbf16>, vector<1x128xf32> -> vector<1x128xf32>
    %88 = arith.addf %82, %87 : vector<1x128xf32>
    %c10 = arith.constant 10 : index
    %c0_77 = arith.constant 0 : index
    %89 = vector.load %arg12[%c10, %c0_77] : memref<31x128xf32, #tpu.memory_space<vmem>>, vector<1x128xf32>
    %90 = arith.truncf %89 : vector<1x128xf32> to vector<1x128xbf16>
    %c10_78 = arith.constant 10 : index
    %c0_79 = arith.constant 0 : index
    %c0_80 = arith.constant 0 : index
    %91 = vector.load %arg6[%c10_78, %c0_79, %c0_80] : memref<31x128x128xbf16, #tpu.memory_space<vmem>>, vector<1x128x128xbf16>
    %92 = vector.shape_cast %91 : vector<1x128x128xbf16> to vector<128x128xbf16>
    %cst_81 = arith.constant dense<0.000000e+00> : vector<1x128xf32>
    %93 = tpu.matmul %90, %92, %cst_81 {dimension_numbers = #tpu.dot_dimension_numbers<[1], [0], [0], [1], [0, 0, 1, 1], [], []>} : vector<1x128xbf16>, vector<128x128xbf16>, vector<1x128xf32> -> vector<1x128xf32>
    %94 = arith.addf %88, %93 : vector<1x128xf32>
    %c11 = arith.constant 11 : index
    %c0_82 = arith.constant 0 : index
    %95 = vector.load %arg12[%c11, %c0_82] : memref<31x128xf32, #tpu.memory_space<vmem>>, vector<1x128xf32>
    %96 = arith.truncf %95 : vector<1x128xf32> to vector<1x128xbf16>
    %c11_83 = arith.constant 11 : index
    %c0_84 = arith.constant 0 : index
    %c0_85 = arith.constant 0 : index
    %97 = vector.load %arg6[%c11_83, %c0_84, %c0_85] : memref<31x128x128xbf16, #tpu.memory_space<vmem>>, vector<1x128x128xbf16>
    %98 = vector.shape_cast %97 : vector<1x128x128xbf16> to vector<128x128xbf16>
    %cst_86 = arith.constant dense<0.000000e+00> : vector<1x128xf32>
    %99 = tpu.matmul %96, %98, %cst_86 {dimension_numbers = #tpu.dot_dimension_numbers<[1], [0], [0], [1], [0, 0, 1, 1], [], []>} : vector<1x128xbf16>, vector<128x128xbf16>, vector<1x128xf32> -> vector<1x128xf32>
    %100 = arith.addf %94, %99 : vector<1x128xf32>
    %c12 = arith.constant 12 : index
    %c0_87 = arith.constant 0 : index
    %101 = vector.load %arg12[%c12, %c0_87] : memref<31x128xf32, #tpu.memory_space<vmem>>, vector<1x128xf32>
    %102 = arith.truncf %101 : vector<1x128xf32> to vector<1x128xbf16>
    %c12_88 = arith.constant 12 : index
    %c0_89 = arith.constant 0 : index
    %c0_90 = arith.constant 0 : index
    %103 = vector.load %arg6[%c12_88, %c0_89, %c0_90] : memref<31x128x128xbf16, #tpu.memory_space<vmem>>, vector<1x128x128xbf16>
    %104 = vector.shape_cast %103 : vector<1x128x128xbf16> to vector<128x128xbf16>
    %cst_91 = arith.constant dense<0.000000e+00> : vector<1x128xf32>
    %105 = tpu.matmul %102, %104, %cst_91 {dimension_numbers = #tpu.dot_dimension_numbers<[1], [0], [0], [1], [0, 0, 1, 1], [], []>} : vector<1x128xbf16>, vector<128x128xbf16>, vector<1x128xf32> -> vector<1x128xf32>
    %106 = arith.addf %100, %105 : vector<1x128xf32>
    %c13 = arith.constant 13 : index
    %c0_92 = arith.constant 0 : index
    %107 = vector.load %arg12[%c13, %c0_92] : memref<31x128xf32, #tpu.memory_space<vmem>>, vector<1x128xf32>
    %108 = arith.truncf %107 : vector<1x128xf32> to vector<1x128xbf16>
    %c13_93 = arith.constant 13 : index
    %c0_94 = arith.constant 0 : index
    %c0_95 = arith.constant 0 : index
    %109 = vector.load %arg6[%c13_93, %c0_94, %c0_95] : memref<31x128x128xbf16, #tpu.memory_space<vmem>>, vector<1x128x128xbf16>
    %110 = vector.shape_cast %109 : vector<1x128x128xbf16> to vector<128x128xbf16>
    %cst_96 = arith.constant dense<0.000000e+00> : vector<1x128xf32>
    %111 = tpu.matmul %108, %110, %cst_96 {dimension_numbers = #tpu.dot_dimension_numbers<[1], [0], [0], [1], [0, 0, 1, 1], [], []>} : vector<1x128xbf16>, vector<128x128xbf16>, vector<1x128xf32> -> vector<1x128xf32>
    %112 = arith.addf %106, %111 : vector<1x128xf32>
    %c14 = arith.constant 14 : index
    %c0_97 = arith.constant 0 : index
    %113 = vector.load %arg12[%c14, %c0_97] : memref<31x128xf32, #tpu.memory_space<vmem>>, vector<1x128xf32>
    %114 = arith.truncf %113 : vector<1x128xf32> to vector<1x128xbf16>
    %c14_98 = arith.constant 14 : index
    %c0_99 = arith.constant 0 : index
    %c0_100 = arith.constant 0 : index
    %115 = vector.load %arg6[%c14_98, %c0_99, %c0_100] : memref<31x128x128xbf16, #tpu.memory_space<vmem>>, vector<1x128x128xbf16>
    %116 = vector.shape_cast %115 : vector<1x128x128xbf16> to vector<128x128xbf16>
    %cst_101 = arith.constant dense<0.000000e+00> : vector<1x128xf32>
    %117 = tpu.matmul %114, %116, %cst_101 {dimension_numbers = #tpu.dot_dimension_numbers<[1], [0], [0], [1], [0, 0, 1, 1], [], []>} : vector<1x128xbf16>, vector<128x128xbf16>, vector<1x128xf32> -> vector<1x128xf32>
    %118 = arith.addf %112, %117 : vector<1x128xf32>
    %c15 = arith.constant 15 : index
    %c0_102 = arith.constant 0 : index
    %119 = vector.load %arg12[%c15, %c0_102] : memref<31x128xf32, #tpu.memory_space<vmem>>, vector<1x128xf32>
    %120 = arith.truncf %119 : vector<1x128xf32> to vector<1x128xbf16>
    %c15_103 = arith.constant 15 : index
    %c0_104 = arith.constant 0 : index
    %c0_105 = arith.constant 0 : index
    %121 = vector.load %arg6[%c15_103, %c0_104, %c0_105] : memref<31x128x128xbf16, #tpu.memory_space<vmem>>, vector<1x128x128xbf16>
    %122 = vector.shape_cast %121 : vector<1x128x128xbf16> to vector<128x128xbf16>
    %cst_106 = arith.constant dense<0.000000e+00> : vector<1x128xf32>
    %123 = tpu.matmul %120, %122, %cst_106 {dimension_numbers = #tpu.dot_dimension_numbers<[1], [0], [0], [1], [0, 0, 1, 1], [], []>} : vector<1x128xbf16>, vector<128x128xbf16>, vector<1x128xf32> -> vector<1x128xf32>
    %124 = arith.addf %118, %123 : vector<1x128xf32>
    %c16 = arith.constant 16 : index
    %c0_107 = arith.constant 0 : index
    %125 = vector.load %arg12[%c16, %c0_107] : memref<31x128xf32, #tpu.memory_space<vmem>>, vector<1x128xf32>
    %126 = arith.truncf %125 : vector<1x128xf32> to vector<1x128xbf16>
    %c16_108 = arith.constant 16 : index
    %c0_109 = arith.constant 0 : index
    %c0_110 = arith.constant 0 : index
    %127 = vector.load %arg6[%c16_108, %c0_109, %c0_110] : memref<31x128x128xbf16, #tpu.memory_space<vmem>>, vector<1x128x128xbf16>
    %128 = vector.shape_cast %127 : vector<1x128x128xbf16> to vector<128x128xbf16>
    %cst_111 = arith.constant dense<0.000000e+00> : vector<1x128xf32>
    %129 = tpu.matmul %126, %128, %cst_111 {dimension_numbers = #tpu.dot_dimension_numbers<[1], [0], [0], [1], [0, 0, 1, 1], [], []>} : vector<1x128xbf16>, vector<128x128xbf16>, vector<1x128xf32> -> vector<1x128xf32>
    %130 = arith.addf %124, %129 : vector<1x128xf32>
    %c17 = arith.constant 17 : index
    %c0_112 = arith.constant 0 : index
    %131 = vector.load %arg12[%c17, %c0_112] : memref<31x128xf32, #tpu.memory_space<vmem>>, vector<1x128xf32>
    %132 = arith.truncf %131 : vector<1x128xf32> to vector<1x128xbf16>
    %c17_113 = arith.constant 17 : index
    %c0_114 = arith.constant 0 : index
    %c0_115 = arith.constant 0 : index
    %133 = vector.load %arg6[%c17_113, %c0_114, %c0_115] : memref<31x128x128xbf16, #tpu.memory_space<vmem>>, vector<1x128x128xbf16>
    %134 = vector.shape_cast %133 : vector<1x128x128xbf16> to vector<128x128xbf16>
    %cst_116 = arith.constant dense<0.000000e+00> : vector<1x128xf32>
    %135 = tpu.matmul %132, %134, %cst_116 {dimension_numbers = #tpu.dot_dimension_numbers<[1], [0], [0], [1], [0, 0, 1, 1], [], []>} : vector<1x128xbf16>, vector<128x128xbf16>, vector<1x128xf32> -> vector<1x128xf32>
    %136 = arith.addf %130, %135 : vector<1x128xf32>
    %c18 = arith.constant 18 : index
    %c0_117 = arith.constant 0 : index
    %137 = vector.load %arg12[%c18, %c0_117] : memref<31x128xf32, #tpu.memory_space<vmem>>, vector<1x128xf32>
    %138 = arith.truncf %137 : vector<1x128xf32> to vector<1x128xbf16>
    %c18_118 = arith.constant 18 : index
    %c0_119 = arith.constant 0 : index
    %c0_120 = arith.constant 0 : index
    %139 = vector.load %arg6[%c18_118, %c0_119, %c0_120] : memref<31x128x128xbf16, #tpu.memory_space<vmem>>, vector<1x128x128xbf16>
    %140 = vector.shape_cast %139 : vector<1x128x128xbf16> to vector<128x128xbf16>
    %cst_121 = arith.constant dense<0.000000e+00> : vector<1x128xf32>
    %141 = tpu.matmul %138, %140, %cst_121 {dimension_numbers = #tpu.dot_dimension_numbers<[1], [0], [0], [1], [0, 0, 1, 1], [], []>} : vector<1x128xbf16>, vector<128x128xbf16>, vector<1x128xf32> -> vector<1x128xf32>
    %142 = arith.addf %136, %141 : vector<1x128xf32>
    %c19 = arith.constant 19 : index
    %c0_122 = arith.constant 0 : index
    %143 = vector.load %arg12[%c19, %c0_122] : memref<31x128xf32, #tpu.memory_space<vmem>>, vector<1x128xf32>
    %144 = arith.truncf %143 : vector<1x128xf32> to vector<1x128xbf16>
    %c19_123 = arith.constant 19 : index
    %c0_124 = arith.constant 0 : index
    %c0_125 = arith.constant 0 : index
    %145 = vector.load %arg6[%c19_123, %c0_124, %c0_125] : memref<31x128x128xbf16, #tpu.memory_space<vmem>>, vector<1x128x128xbf16>
    %146 = vector.shape_cast %145 : vector<1x128x128xbf16> to vector<128x128xbf16>
    %cst_126 = arith.constant dense<0.000000e+00> : vector<1x128xf32>
    %147 = tpu.matmul %144, %146, %cst_126 {dimension_numbers = #tpu.dot_dimension_numbers<[1], [0], [0], [1], [0, 0, 1, 1], [], []>} : vector<1x128xbf16>, vector<128x128xbf16>, vector<1x128xf32> -> vector<1x128xf32>
    %148 = arith.addf %142, %147 : vector<1x128xf32>
    %c20 = arith.constant 20 : index
    %c0_127 = arith.constant 0 : index
    %149 = vector.load %arg12[%c20, %c0_127] : memref<31x128xf32, #tpu.memory_space<vmem>>, vector<1x128xf32>
    %150 = arith.truncf %149 : vector<1x128xf32> to vector<1x128xbf16>
    %c20_128 = arith.constant 20 : index
    %c0_129 = arith.constant 0 : index
    %c0_130 = arith.constant 0 : index
    %151 = vector.load %arg6[%c20_128, %c0_129, %c0_130] : memref<31x128x128xbf16, #tpu.memory_space<vmem>>, vector<1x128x128xbf16>
    %152 = vector.shape_cast %151 : vector<1x128x128xbf16> to vector<128x128xbf16>
    %cst_131 = arith.constant dense<0.000000e+00> : vector<1x128xf32>
    %153 = tpu.matmul %150, %152, %cst_131 {dimension_numbers = #tpu.dot_dimension_numbers<[1], [0], [0], [1], [0, 0, 1, 1], [], []>} : vector<1x128xbf16>, vector<128x128xbf16>, vector<1x128xf32> -> vector<1x128xf32>
    %154 = arith.addf %148, %153 : vector<1x128xf32>
    %c21 = arith.constant 21 : index
    %c0_132 = arith.constant 0 : index
    %155 = vector.load %arg12[%c21, %c0_132] : memref<31x128xf32, #tpu.memory_space<vmem>>, vector<1x128xf32>
    %156 = arith.truncf %155 : vector<1x128xf32> to vector<1x128xbf16>
    %c21_133 = arith.constant 21 : index
    %c0_134 = arith.constant 0 : index
    %c0_135 = arith.constant 0 : index
    %157 = vector.load %arg6[%c21_133, %c0_134, %c0_135] : memref<31x128x128xbf16, #tpu.memory_space<vmem>>, vector<1x128x128xbf16>
    %158 = vector.shape_cast %157 : vector<1x128x128xbf16> to vector<128x128xbf16>
    %cst_136 = arith.constant dense<0.000000e+00> : vector<1x128xf32>
    %159 = tpu.matmul %156, %158, %cst_136 {dimension_numbers = #tpu.dot_dimension_numbers<[1], [0], [0], [1], [0, 0, 1, 1], [], []>} : vector<1x128xbf16>, vector<128x128xbf16>, vector<1x128xf32> -> vector<1x128xf32>
    %160 = arith.addf %154, %159 : vector<1x128xf32>
    %c22 = arith.constant 22 : index
    %c0_137 = arith.constant 0 : index
    %161 = vector.load %arg12[%c22, %c0_137] : memref<31x128xf32, #tpu.memory_space<vmem>>, vector<1x128xf32>
    %162 = arith.truncf %161 : vector<1x128xf32> to vector<1x128xbf16>
    %c22_138 = arith.constant 22 : index
    %c0_139 = arith.constant 0 : index
    %c0_140 = arith.constant 0 : index
    %163 = vector.load %arg6[%c22_138, %c0_139, %c0_140] : memref<31x128x128xbf16, #tpu.memory_space<vmem>>, vector<1x128x128xbf16>
    %164 = vector.shape_cast %163 : vector<1x128x128xbf16> to vector<128x128xbf16>
    %cst_141 = arith.constant dense<0.000000e+00> : vector<1x128xf32>
    %165 = tpu.matmul %162, %164, %cst_141 {dimension_numbers = #tpu.dot_dimension_numbers<[1], [0], [0], [1], [0, 0, 1, 1], [], []>} : vector<1x128xbf16>, vector<128x128xbf16>, vector<1x128xf32> -> vector<1x128xf32>
    %166 = arith.addf %160, %165 : vector<1x128xf32>
    %c23 = arith.constant 23 : index
    %c0_142 = arith.constant 0 : index
    %167 = vector.load %arg12[%c23, %c0_142] : memref<31x128xf32, #tpu.memory_space<vmem>>, vector<1x128xf32>
    %168 = arith.truncf %167 : vector<1x128xf32> to vector<1x128xbf16>
    %c23_143 = arith.constant 23 : index
    %c0_144 = arith.constant 0 : index
    %c0_145 = arith.constant 0 : index
    %169 = vector.load %arg6[%c23_143, %c0_144, %c0_145] : memref<31x128x128xbf16, #tpu.memory_space<vmem>>, vector<1x128x128xbf16>
    %170 = vector.shape_cast %169 : vector<1x128x128xbf16> to vector<128x128xbf16>
    %cst_146 = arith.constant dense<0.000000e+00> : vector<1x128xf32>
    %171 = tpu.matmul %168, %170, %cst_146 {dimension_numbers = #tpu.dot_dimension_numbers<[1], [0], [0], [1], [0, 0, 1, 1], [], []>} : vector<1x128xbf16>, vector<128x128xbf16>, vector<1x128xf32> -> vector<1x128xf32>
    %172 = arith.addf %166, %171 : vector<1x128xf32>
    %c24 = arith.constant 24 : index
    %c0_147 = arith.constant 0 : index
    %173 = vector.load %arg12[%c24, %c0_147] : memref<31x128xf32, #tpu.memory_space<vmem>>, vector<1x128xf32>
    %174 = arith.truncf %173 : vector<1x128xf32> to vector<1x128xbf16>
    %c24_148 = arith.constant 24 : index
    %c0_149 = arith.constant 0 : index
    %c0_150 = arith.constant 0 : index
    %175 = vector.load %arg6[%c24_148, %c0_149, %c0_150] : memref<31x128x128xbf16, #tpu.memory_space<vmem>>, vector<1x128x128xbf16>
    %176 = vector.shape_cast %175 : vector<1x128x128xbf16> to vector<128x128xbf16>
    %cst_151 = arith.constant dense<0.000000e+00> : vector<1x128xf32>
    %177 = tpu.matmul %174, %176, %cst_151 {dimension_numbers = #tpu.dot_dimension_numbers<[1], [0], [0], [1], [0, 0, 1, 1], [], []>} : vector<1x128xbf16>, vector<128x128xbf16>, vector<1x128xf32> -> vector<1x128xf32>
    %178 = arith.addf %172, %177 : vector<1x128xf32>
    %c25 = arith.constant 25 : index
    %c0_152 = arith.constant 0 : index
    %179 = vector.load %arg12[%c25, %c0_152] : memref<31x128xf32, #tpu.memory_space<vmem>>, vector<1x128xf32>
    %180 = arith.truncf %179 : vector<1x128xf32> to vector<1x128xbf16>
    %c25_153 = arith.constant 25 : index
    %c0_154 = arith.constant 0 : index
    %c0_155 = arith.constant 0 : index
    %181 = vector.load %arg6[%c25_153, %c0_154, %c0_155] : memref<31x128x128xbf16, #tpu.memory_space<vmem>>, vector<1x128x128xbf16>
    %182 = vector.shape_cast %181 : vector<1x128x128xbf16> to vector<128x128xbf16>
    %cst_156 = arith.constant dense<0.000000e+00> : vector<1x128xf32>
    %183 = tpu.matmul %180, %182, %cst_156 {dimension_numbers = #tpu.dot_dimension_numbers<[1], [0], [0], [1], [0, 0, 1, 1], [], []>} : vector<1x128xbf16>, vector<128x128xbf16>, vector<1x128xf32> -> vector<1x128xf32>
    %184 = arith.addf %178, %183 : vector<1x128xf32>
    %c26 = arith.constant 26 : index
    %c0_157 = arith.constant 0 : index
    %185 = vector.load %arg12[%c26, %c0_157] : memref<31x128xf32, #tpu.memory_space<vmem>>, vector<1x128xf32>
    %186 = arith.truncf %185 : vector<1x128xf32> to vector<1x128xbf16>
    %c26_158 = arith.constant 26 : index
    %c0_159 = arith.constant 0 : index
    %c0_160 = arith.constant 0 : index
    %187 = vector.load %arg6[%c26_158, %c0_159, %c0_160] : memref<31x128x128xbf16, #tpu.memory_space<vmem>>, vector<1x128x128xbf16>
    %188 = vector.shape_cast %187 : vector<1x128x128xbf16> to vector<128x128xbf16>
    %cst_161 = arith.constant dense<0.000000e+00> : vector<1x128xf32>
    %189 = tpu.matmul %186, %188, %cst_161 {dimension_numbers = #tpu.dot_dimension_numbers<[1], [0], [0], [1], [0, 0, 1, 1], [], []>} : vector<1x128xbf16>, vector<128x128xbf16>, vector<1x128xf32> -> vector<1x128xf32>
    %190 = arith.addf %184, %189 : vector<1x128xf32>
    %c27 = arith.constant 27 : index
    %c0_162 = arith.constant 0 : index
    %191 = vector.load %arg12[%c27, %c0_162] : memref<31x128xf32, #tpu.memory_space<vmem>>, vector<1x128xf32>
    %192 = arith.truncf %191 : vector<1x128xf32> to vector<1x128xbf16>
    %c27_163 = arith.constant 27 : index
    %c0_164 = arith.constant 0 : index
    %c0_165 = arith.constant 0 : index
    %193 = vector.load %arg6[%c27_163, %c0_164, %c0_165] : memref<31x128x128xbf16, #tpu.memory_space<vmem>>, vector<1x128x128xbf16>
    %194 = vector.shape_cast %193 : vector<1x128x128xbf16> to vector<128x128xbf16>
    %cst_166 = arith.constant dense<0.000000e+00> : vector<1x128xf32>
    %195 = tpu.matmul %192, %194, %cst_166 {dimension_numbers = #tpu.dot_dimension_numbers<[1], [0], [0], [1], [0, 0, 1, 1], [], []>} : vector<1x128xbf16>, vector<128x128xbf16>, vector<1x128xf32> -> vector<1x128xf32>
    %196 = arith.addf %190, %195 : vector<1x128xf32>
    %c28 = arith.constant 28 : index
    %c0_167 = arith.constant 0 : index
    %197 = vector.load %arg12[%c28, %c0_167] : memref<31x128xf32, #tpu.memory_space<vmem>>, vector<1x128xf32>
    %198 = arith.truncf %197 : vector<1x128xf32> to vector<1x128xbf16>
    %c28_168 = arith.constant 28 : index
    %c0_169 = arith.constant 0 : index
    %c0_170 = arith.constant 0 : index
    %199 = vector.load %arg6[%c28_168, %c0_169, %c0_170] : memref<31x128x128xbf16, #tpu.memory_space<vmem>>, vector<1x128x128xbf16>
    %200 = vector.shape_cast %199 : vector<1x128x128xbf16> to vector<128x128xbf16>
    %cst_171 = arith.constant dense<0.000000e+00> : vector<1x128xf32>
    %201 = tpu.matmul %198, %200, %cst_171 {dimension_numbers = #tpu.dot_dimension_numbers<[1], [0], [0], [1], [0, 0, 1, 1], [], []>} : vector<1x128xbf16>, vector<128x128xbf16>, vector<1x128xf32> -> vector<1x128xf32>
    %202 = arith.addf %196, %201 : vector<1x128xf32>
    %c29 = arith.constant 29 : index
    %c0_172 = arith.constant 0 : index
    %203 = vector.load %arg12[%c29, %c0_172] : memref<31x128xf32, #tpu.memory_space<vmem>>, vector<1x128xf32>
    %204 = arith.truncf %203 : vector<1x128xf32> to vector<1x128xbf16>
    %c29_173 = arith.constant 29 : index
    %c0_174 = arith.constant 0 : index
    %c0_175 = arith.constant 0 : index
    %205 = vector.load %arg6[%c29_173, %c0_174, %c0_175] : memref<31x128x128xbf16, #tpu.memory_space<vmem>>, vector<1x128x128xbf16>
    %206 = vector.shape_cast %205 : vector<1x128x128xbf16> to vector<128x128xbf16>
    %cst_176 = arith.constant dense<0.000000e+00> : vector<1x128xf32>
    %207 = tpu.matmul %204, %206, %cst_176 {dimension_numbers = #tpu.dot_dimension_numbers<[1], [0], [0], [1], [0, 0, 1, 1], [], []>} : vector<1x128xbf16>, vector<128x128xbf16>, vector<1x128xf32> -> vector<1x128xf32>
    %208 = arith.addf %202, %207 : vector<1x128xf32>
    %c30 = arith.constant 30 : index
    %c0_177 = arith.constant 0 : index
    %209 = vector.load %arg12[%c30, %c0_177] : memref<31x128xf32, #tpu.memory_space<vmem>>, vector<1x128xf32>
    %210 = arith.truncf %209 : vector<1x128xf32> to vector<1x128xbf16>
    %c30_178 = arith.constant 30 : index
    %c0_179 = arith.constant 0 : index
    %c0_180 = arith.constant 0 : index
    %211 = vector.load %arg6[%c30_178, %c0_179, %c0_180] : memref<31x128x128xbf16, #tpu.memory_space<vmem>>, vector<1x128x128xbf16>
    %212 = vector.shape_cast %211 : vector<1x128x128xbf16> to vector<128x128xbf16>
    %cst_181 = arith.constant dense<0.000000e+00> : vector<1x128xf32>
    %213 = tpu.matmul %210, %212, %cst_181 {dimension_numbers = #tpu.dot_dimension_numbers<[1], [0], [0], [1], [0, 0, 1, 1], [], []>} : vector<1x128xbf16>, vector<128x128xbf16>, vector<1x128xf32> -> vector<1x128xf32>
    %214 = arith.addf %208, %213 : vector<1x128xf32>
    %c0_182 = arith.constant 0 : index
    %c0_183 = arith.constant 0 : index
    %215 = vector.load %arg7[%c0_182, %c0_183] : memref<1x128xf32, #tpu.memory_space<vmem>>, vector<1x128xf32>
    %216 = arith.addf %214, %215 : vector<1x128xf32>
    %cst_184 = arith.constant 0.000000e+00 : f32
    %217 = vector.broadcast %cst_184 : f32 to vector<1x128xf32>
    %218 = arith.maximumf %216, %217 : vector<1x128xf32>
    %219 = arith.truncf %218 : vector<1x128xf32> to vector<1x128xbf16>
    %c0_185 = arith.constant 0 : index
    %c0_186 = arith.constant 0 : index
    %220 = vector.load %arg8[%c0_185, %c0_186] : memref<128x128xbf16, #tpu.memory_space<vmem>>, vector<128x128xbf16>
    %cst_187 = arith.constant dense<0.000000e+00> : vector<1x128xf32>
    %221 = tpu.matmul %219, %220, %cst_187 {dimension_numbers = #tpu.dot_dimension_numbers<[1], [0], [0], [1], [0, 0, 1, 1], [], []>} : vector<1x128xbf16>, vector<128x128xbf16>, vector<1x128xf32> -> vector<1x128xf32>
    %c0_188 = arith.constant 0 : index
    %c0_189 = arith.constant 0 : index
    %222 = vector.load %arg9[%c0_188, %c0_189] : memref<1x128xf32, #tpu.memory_space<vmem>>, vector<1x128xf32>
    %223 = arith.addf %221, %222 : vector<1x128xf32>
    %cst_190 = arith.constant 0.000000e+00 : f32
    %224 = vector.broadcast %cst_190 : f32 to vector<1x128xf32>
    %225 = arith.maximumf %223, %224 : vector<1x128xf32>
    %c0_191 = arith.constant 0 : index
    %c0_192 = arith.constant 0 : index
    %c0_193 = arith.constant 0 : index
    %226 = vector.load %arg10[%c0_191, %c0_192, %c0_193] : memref<1x1x128xf32, #tpu.memory_space<vmem>>, vector<1x1x128xf32>
    %227 = vector.shape_cast %226 : vector<1x1x128xf32> to vector<1x128xf32>
    %228 = vector.shape_cast %225 : vector<1x128xf32> to vector<1x1x128xf32>
    tpu.vector_store %arg10[%c0_191, %c0_192, %c0_193], %228 {strides = array<i32>} : memref<1x1x128xf32, #tpu.memory_space<vmem>>, vector<1x1x128xf32>,
    return
  }
  func.func @transform_0(%arg0: i32) -> (i32, i32, i32) {
    %c0_i32 = arith.constant 0 : i32
    %c0_i32_0 = arith.constant 0 : i32
    %c0_i32_1 = arith.constant 0 : i32
    return %arg0, %c0_i32, %c0_i32_0 : i32, i32, i32
  }
  func.func @transform_1(%arg0: i32) -> (i32, i32) {
    %c0_i32 = arith.constant 0 : i32
    %c0_i32_0 = arith.constant 0 : i32
    %c0_i32_1 = arith.constant 0 : i32
    return %c0_i32, %c0_i32_0 : i32, i32
  }
  func.func @transform_2(%arg0: i32) -> (i32, i32) {
    %c0_i32 = arith.constant 0 : i32
    %c0_i32_0 = arith.constant 0 : i32
    %c0_i32_1 = arith.constant 0 : i32
    return %c0_i32, %c0_i32_0 : i32, i32
  }
  func.func @transform_3(%arg0: i32) -> (i32, i32) {
    %c0_i32 = arith.constant 0 : i32
    %c0_i32_0 = arith.constant 0 : i32
    %c0_i32_1 = arith.constant 0 : i32
    return %c0_i32, %c0_i32_0 : i32, i32
  }
  func.func @transform_4(%arg0: i32) -> (i32, i32) {
    %c0_i32 = arith.constant 0 : i32
    %c0_i32_0 = arith.constant 0 : i32
    %c0_i32_1 = arith.constant 0 : i32
    return %c0_i32, %c0_i32_0 : i32, i32
  }
  func.func @transform_5(%arg0: i32) -> (i32, i32, i32) {
    %c0_i32 = arith.constant 0 : i32
    %c0_i32_0 = arith.constant 0 : i32
    %c0_i32_1 = arith.constant 0 : i32
    %c0_i32_2 = arith.constant 0 : i32
    return %c0_i32, %c0_i32_0, %c0_i32_1 : i32, i32, i32
  }
  func.func @transform_6(%arg0: i32) -> (i32, i32) {
    %c0_i32 = arith.constant 0 : i32
    %c0_i32_0 = arith.constant 0 : i32
    %c0_i32_1 = arith.constant 0 : i32
    return %c0_i32, %c0_i32_0 : i32, i32
  }
  func.func @transform_7(%arg0: i32) -> (i32, i32) {
    %c0_i32 = arith.constant 0 : i32
    %c0_i32_0 = arith.constant 0 : i32
    %c0_i32_1 = arith.constant 0 : i32
    return %c0_i32, %c0_i32_0 : i32, i32
  }
  func.func @transform_8(%arg0: i32) -> (i32, i32) {
    %c0_i32 = arith.constant 0 : i32
    %c0_i32_0 = arith.constant 0 : i32
    %c0_i32_1 = arith.constant 0 : i32
    return %c0_i32, %c0_i32_0 : i32, i32
  }
  func.func @transform_9(%arg0: i32) -> (i32, i32, i32) {
    %c0_i32 = arith.constant 0 : i32
    %c0_i32_0 = arith.constant 0 : i32
    %c0_i32_1 = arith.constant 0 : i32
    return %arg0, %c0_i32, %c0_i32_0 : i32, i32, i32
  }
}

</mosaic_0001>

<bundles_post_ra>
// kernel: cnn1_forward.1
= control target key start
LH: loop header
LB: loop body
LE: loop exit
PB: predicated region body
PF: predicated region fallthrough
CT: control target
= control target key end

     0   :  { %14 = vsyncpa [#allocation5], 0  ;;  %s8149_s0 = inlined_call_operand.vmem [shape: bf16[2,126,12], index: 0, kind: input, shape index: {}]   ;;  %s8150_s1 = inlined_call_operand.vmem [shape: bf16[12,64], index: 1, kind: input, shape index: {}]   ;;  %s8151_s2 = inlined_call_operand.vmem [shape: f32[1,64], index: 2, kind: input, shape index: {}]   ;;  %s8152_s3 = inlined_call_operand.vmem [shape: bf16[192,64], index: 3, kind: input, shape index: {}]   ;;  %s8153_s4 = inlined_call_operand.vmem [shape: f32[1,64], index: 4, kind: input, shape index: {}]   ;;  %s8154_s5 = inlined_call_operand.vmem [shape: bf16[31,128,128], index: 5, kind: input, shape index: {}]   ;;  %s8155_s6 = inlined_call_operand.vmem [shape: f32[1,128], index: 6, kind: input, shape index: {}]   ;;  %s8156_s7 = inlined_call_operand.vmem [shape: bf16[128,128], index: 7, kind: input, shape index: {}]   ;;  %s8157_s8 = inlined_call_operand.vmem [shape: f32[1,128], index: 8, kind: input, shape index: {}]   ;;  %s8158_s9 = inlined_call_operand.hbm [shape: f32[2,1,128], index: 9, kind: output, shape index: {}]  }
   0x1   :  { %16 = vsyncpa [#allocation5 + $0x1], 0  ;;  %s6708_s30 = smov 0   ;;  %s6710_s10 = smov 0  }
   0x2   :  { %s6712_s11 = smov 0   ;;  %s6714_s12 = smov 0  }
   0x3 LB: > { %s6729_s13 = sadd.s32 4294967295, %s6651_s12   ;;  %s4527_s14 = sadd.s32 4294967294, %s6651_s12   ;;  %s6651_s12 = sphi %s6714_s12, %s8164_s12   ;;  %s6647_s11 = sphi %s6712_s11, %s8163_s11   ;;  %s6643_s10 = sphi %s6710_s10, %s8162_s10   ;;  %s6639_s30 = sphi %s6708_s30, %s8161_s30  }
   0x4   : > { %s6733_s15 = sadd.s32 1, %s6651_s12   ;;  %s223_s16 = sadd.s32 1, %s6647_s11 }
   0x5   : > { %s220_s17 = ssub.s32 %s6651_s12, %s6733_s15  ;;  %p233_p0 = scmp.ne.s32.totalorder %s6647_s11, %s6643_s10 }
   0x6   : > { %p221_p1 = scmp.eq.s32.totalorder %s220_s17, 0  ;;  %p234_p2 = scmp.eq.s32.totalorder %s6729_s13, 1 }
   0x7   : > { %p239_p3 = scmp.ne.s32.totalorder %s6643_s10, %s6639_s30  ;;  %p240_p4 = scmp.eq.s32.totalorder %s4527_s14, 1 }
   0x8   : > { %s6744_s18 = scalar_select %p221_p1, %s6647_s11, %s223_s16  }
   0x9   : > { %p6746_p5 = por %p234_p2, %p233_p0  ;;  %p6750_p6 = por %p240_p4, %p239_p3 }
   0xa   : > { %p4530_p7 = scmp.ge.s32.totalorder %s6651_s12, 1  ;;  %p290_p8 = scmp.lt.s32.totalorder %s6651_s12, 3 }
   0xc   : > { %p291_p9 = pnand %p4530_p7, %p290_p8 }
   0xd   : > { %v6311_v0 = vld [vmem:[%s8150_s1] sm:$0x3f] (!%p291_p9)   ;;  %vm451_vm0 = vcmask (!%p291_p9), 1045504   ;;  %p325_p10 = scmp.lt.s32.totalorder (!%p291_p9), %s6729_s13, 1  ;;  %vm426_vm1 = vcmask (!%p291_p9), 97280   ;;  %v6653_v11 = vmov (!%p291_p9), 0  }
   0xe   : > { %294 = sbr.rel (%p291_p9) target bundleno = 1694 (0x69e), region = 56  ;;  %6267 = vmatprep.subr.msk.bf16.mxu0 (!%p291_p9), %vm451_vm0, %v6311_v0  ;;  %v453_v1 = vsel (!%p291_p9), %vm451_vm0, %v6311_v0, 0  ;;  %v6320_v10 = vld [vmem:[%s8152_s3] sm:$0xff] (!%p291_p9)   ;;  %807 = vmatprep.subr.bf16.mxu1 (!%p291_p9), %v6653_v11  ;;  %v6321_v12 = vld [vmem:[%s8152_s3 + $0x8] sm:$0xff] (!%p291_p9)   ;;  %v6322_v13 = vld [vmem:[%s8152_s3 + $0x10] sm:$0xff] (!%p291_p9)   ;;  %vm664_vm2 = vcmask (!%p291_p9), 1046528  }
   0xf   : > { %5610 = vmatpush3.bf16.msra.mxu0 (!%p291_p9), %v453_v1  ;;  %808 = vmatpush1.bf16.msra.mxu1 (!%p291_p9), %v6320_v10  ;;  %v6323_v14 = vld [vmem:[%s8152_s3 + $0x18] sm:$0xff] (!%p291_p9)   ;;  %v6324_v15 = vld [vmem:[%s8152_s3 + $0x20] sm:$0xff] (!%p291_p9)   ;;  %v6325_v16 = vld [vmem:[%s8152_s3 + $0x28] sm:$0xff] (!%p291_p9)   ;;  %vm680_vm3 = vcmask (!%p291_p9), 523264   ;;  %vm576_vm4 = vsmask.f32 (!%p291_p9), 7424 }
  0x10   : > { %809 = vmatprep.subr.bf16.mxu1 (!%p291_p9), %v6653_v11  ;;  %v6326_v17 = vld [vmem:[%s8152_s3 + $0x30] sm:$0xff] (!%p291_p9)   ;;  %v6327_v18 = vld [vmem:[%s8152_s3 + $0x38] sm:$0xff] (!%p291_p9)   ;;  %v6328_v19 = vld [vmem:[%s8152_s3 + $0x40] sm:$0xff] (!%p291_p9)   ;;  %s6654_s14 = smov (!%p291_p9), 64   ;;  %vm6656_vm5 = vmmov (!%p291_p9), 0   ;;  %vm997_vm6 = vcmask (!%p291_p9), 1048064  }
  0x11   : > { %v6329_v20 = vld [vmem:[%s8152_s3 + $0x48] sm:$0xff] (!%p291_p9)   ;;  %v6330_v21 = vld [vmem:[%s8152_s3 + $0x50] sm:$0xff] (!%p291_p9)   ;;  %v6331_v22 = vld [vmem:[%s8152_s3 + $0x58] sm:$0xff] (!%p291_p9)   ;;  %vm935_vm7 = vcmask (!%p291_p9), 519168   ;;  %vm975_vm8 = vcmask (!%p291_p9), 522240   ;;  %vm1001_vm9 = vcmask (!%p291_p9), 1047040  }
  0x12   : > { %v6811_v23 = vld [vmem:[%s8151_s2] ss:$0 sm:$0xff] (!%p291_p9)  ;;  %s323_s21 = sand.u32 (!%p291_p9), 1, %s6643_s10   ;;  %s6657_s16 = smov (!%p291_p9), [#allocation4]  }
  0x13   : > { %810 = vmatpush1.bf16.msra.mxu1 (!%p291_p9), %v6321_v12  ;;  %s324_s25 = scalar_lea.vmem (!%p291_p9), [#allocation4], %s323_s21  ;;  %s4460_s29 = scalar_lea.sflag (!%p291_p9), [#allocation5], %s323_s21 }
  0x14   : > { %811 = vmatprep.subr.bf16.mxu1 (!%p291_p9), %v6653_v11  ;;  %s6593_s17 = sshll.u32 (!%p291_p9), %s6657_s16, 4  ;;  %s6594_s17 = int_to_ptr.vmem [resolvable:$false] %s6593_s17 }
  0x15   : > { %s326_s23 = scalar_select %p325_p10, %s6729_s13, 1 }
  0x16   : > { %s6595_s22 = scalar_lea.vmem %s6594_s17, 32 }
  0x17   : > { %s5311_s24 = sshll.u32 %s326_s23, 6  ;;  %812 = vmatpush1.bf16.msra.mxu1 %v6322_v13 }
  0x18   : > { %s329_s27 = scalar_lea.vmem %s8149_s0, %s5311_s24  ;;  %813 = vmatprep.subr.bf16.mxu1 %v6653_v11  ;;  %s5308_s24 = sshll.u32 %s6729_s13, 4 }
  0x19   : > { %v6312_v2 = vld [vmem:[%s329_s27] sm:$0xff]   ;;  %v6313_v3 = vld [vmem:[%s329_s27 + $0x8] sm:$0xff]   ;;  %v6314_v4 = vld [vmem:[%s329_s27 + $0x10] sm:$0xff]   ;;  %s8107_s28 = scalar_lea.hbm %s8158_s9, %s5308_s24 }
  0x1a   : > { %5611 = vmatprep.mubr.msk.bf16.mxu0 %vm426_vm1, %v6312_v2  ;;  %v6315_v5 = vld [vmem:[%s329_s27 + $0x18] sm:$0xff]   ;;  %v6316_v6 = vld [vmem:[%s329_s27 + $0x20] sm:$0xff]   ;;  %v6317_v7 = vld [vmem:[%s329_s27 + $0x28] sm:$0xff]  }
  0x1b   : > { %5612 = vmatmul.mubr.msk.bf16.vlgmr.msra.gmra.mrb[0].mxu0 %vm426_vm1, %v6313_v3  ;;  %v6318_v8 = vld [vmem:[%s329_s27 + $0x30] sm:$0xff]   ;;  %v6319_v9 = vld [vmem:[%s329_s27 + $0x38] sm:$0x7f]   ;;  %814 = vmatpush1.bf16.msra.mxu1 %v6323_v14 }
  0x1c   : > { %5615 = vmatprep.mubr.msk.bf16.mxu0 %vm426_vm1, %v6314_v4  ;;  %815 = vmatprep.subr.bf16.mxu1 %v6653_v11 }
  0x1f   : > { %816 = vmatpush1.bf16.msra.mxu1 %v6324_v15 }
  0x20   : > { %817 = vmatprep.subr.bf16.mxu1 %v6653_v11 }
  0x23   : > { %5616 = vmatmul.mubr.msk.bf16.gmra.mrb[4].mxu0 %vm426_vm1, %v6315_v5  ;;  %818 = vmatpush1.bf16.msra.mxu1 %v6325_v16 }
  0x24   : > { %5619 = vmatprep.mubr.msk.bf16.mxu0 %vm426_vm1, %v6316_v6  ;;  %819 = vmatprep.subr.bf16.mxu1 %v6653_v11 }
  0x27   : > { %820 = vmatpush1.bf16.msra.mxu1 %v6326_v17 }
  0x28   : > { %821 = vmatprep.subr.bf16.mxu1 %v6653_v11 }
  0x2b   : > { %5620 = vmatmul.mubr.msk.bf16.gmra.mrb[8].mxu0 %vm426_vm1, %v6317_v7  ;;  %822 = vmatpush1.bf16.msra.mxu1 %v6327_v18 }
  0x2c   : > { %5623 = vmatprep.mubr.msk.bf16.mxu0 %vm426_vm1, %v6318_v8  ;;  %823 = vmatprep.subr.bf16.mxu1 %v6653_v11 }
  0x2f   : > { %824 = vmatpush1.bf16.msra.mxu1 %v6328_v19 }
  0x30   : > { %825 = vmatprep.subr.bf16.mxu1 %v6653_v11 }
  0x33   : > { %5624 = vmatmul.mubr.msk.bf16.gmra.mrb[12].mxu0 %vm426_vm1, %v6319_v9  ;;  %826 = vmatpush1.bf16.msra.mxu1 %v6329_v20 }
  0x34   : > { %827 = vmatprep.subr.bf16.mxu1 %v6653_v11 }
  0x37   : > { %828 = vmatpush1.bf16.msra.mxu1 %v6330_v21 }
  0x38   : > { %829 = vmatprep.subr.bf16.mxu1 %v6653_v11 }
  0x3b   : > { %830 = vmatpush1.bf16.msra.mxu1 %v6331_v22 }
  0xee   : > { %v5613_v24 = vpop.f32.mrb[0].mxu0 }
  0xef   : > { %v498_v25 = vadd.f32 %v5613_v24, %v6811_v23  ;;  %v489_v26 = vpop.f32.mrb[1].mxu0 }
  0xf0   : > { %v490_v27 = vadd.f32 %v6811_v23, %v489_v26  ;;  %v5614_v28 = vpop.f32.mrb[2].mxu0 }
  0xf1   : > { %v501_v29 = vadd.f32 %v5614_v28, %v6811_v23  ;;  %v492_v30 = vpop.f32.mrb[3].mxu0  ;;  %v554_v32 = vmax.f32 %v498_v25, 0.0 }
  0xf2   : > { %v493_v31 = vadd.f32 %v6811_v23, %v492_v30  ;;  %v552_v34 = vmax.f32 %v490_v27, 0.0 }
  0xf3   : > { %v555_v33 = vmax.f32 %v501_v29, 0.0 }
  0xf4   : > { %v553_v35 = vmax.f32 %v493_v31, 0.0 }
  0xf5   : > { %v6817_v36 = vpack.c.bf16 %v555_v33, %v554_v32 }
  0xf6   : > { %v6819_v37 = vpack.c.bf16 %v553_v35, %v552_v34  ;;  %v5617_v38 = vpop.f32.mrb[4].mxu0 }
  0xf7   : > { %v514_v39 = vadd.f32 %v5617_v38, %v6811_v23  ;;  %v505_v40 = vpop.f32.mrb[5].mxu0  ;;  %v666_v41 = vrot.slane %v6817_v36, 1  ;;  %v585_v46 = vshll.u32 %v6817_v36, 16  ;;  %v589_v1 = vshrl.u32 %v6817_v36, 16 }
  0xf8   : > { %v506_v42 = vadd.f32 %v6811_v23, %v505_v40  ;;  %v5618_v43 = vpop.f32.mrb[6].mxu0  ;;  %v665_v44 = vrot.slane %v6819_v37, 1  ;;  %v580_v45 = vshll.u32 %v6819_v37, 16  ;;  %v578_v50 = vshrl.u32 %v6819_v37, 16 }
  0xf9   : > { %v558_v47 = vmax.f32 %v514_v39, 0.0  ;;  %v517_v48 = vadd.f32 %v5618_v43, %v6811_v23  ;;  %v508_v49 = vpop.f32.mrb[7].mxu0  ;;  %v587_v58 = vrot.slane %v585_v46, 1 }
  0xfa   : > { %v556_v51 = vmax.f32 %v506_v42, 0.0  ;;  %v509_v52 = vadd.f32 %v6811_v23, %v508_v49  ;;  %v667_v53 = vsel %vm664_vm2, %v665_v44, %v666_v41  ;;  %v582_v54 = vrot.slane %v580_v45, 1 }
  0xfb   : > { %v559_v55 = vmax.f32 %v517_v48, 0.0  ;;  %4564 = vmatprep.mubr.msk.bf16.mxu1 %vm680_vm3, %v667_v53  ;;  %v591_v10 = vor.u32 %v589_v1, %v587_v58 }
  0xfc   : > { %v557_v56 = vmax.f32 %v509_v52, 0.0  ;;  %v583_v57 = vor.u32 %v582_v54, %v578_v50 }
  0xfd   : > { %v6832_v59 = vpack.c.bf16 %v559_v55, %v558_v47 }
  0xfe   : > { %v6834_v60 = vpack.c.bf16 %v557_v56, %v556_v51  ;;  %v5621_v61 = vpop.f32.mrb[8].mxu0  ;;  %v588_v62 = vsel %vm576_vm4, %v583_v57, %v587_v58 }
  0xff   : > { %v530_v63 = vadd.f32 %v5621_v61, %v6811_v23  ;;  %v521_v0 = vpop.f32.mrb[9].mxu0  ;;  %640 = vrot.lane.b32.xlu0 %v588_v62, %s6654_s14  ;;  %v601_v5 = vshll.u32 %v6832_v59, 16  ;;  %v605_v26 = vshrl.u32 %v6832_v59, 16 }
 0x100   : > { %v522_v2 = vadd.f32 %v6811_v23, %v521_v0  ;;  %v5622_v3 = vpop.f32.mrb[10].mxu0  ;;  %v593_v4 = vshll.u32 %v6834_v60, 16  ;;  %v668_v6 = vrot.slane %v6834_v60, 1  ;;  %v597_v11 = vshrl.u32 %v6834_v60, 16 }
 0x101   : > { %v562_v7 = vmax.f32 %v530_v63, 0.0  ;;  %v533_v8 = vadd.f32 %v5622_v3, %v6811_v23  ;;  %v524_v9 = vpop.f32.mrb[11].mxu0  ;;  %v603_v20 = vrot.slane %v601_v5, 1  ;;  %v670_v0 = vrot.slane %v6832_v59, 1 }
 0x102   : > { %v560_v12 = vmax.f32 %v522_v2, 0.0  ;;  %v525_v13 = vadd.f32 %v6811_v23, %v524_v9  ;;  %v595_v14 = vrot.slane %v593_v4, 1  ;;  %v669_v15 = vsel %vm664_vm2, %v666_v41, %v668_v6 }
 0x103   : > { %v563_v16 = vmax.f32 %v533_v8, 0.0  ;;  %v607_v34 = vor.u32 %v605_v26, %v603_v20  ;;  %v671_v2 = vsel %vm664_vm2, %v668_v6, %v670_v0  ;;  %v6960_v26 = vld [vmem:[%s8153_s4] ss:$0 sm:$0xff] }
 0x104   : > { %v561_v17 = vmax.f32 %v525_v13, 0.0  ;;  %v596_v18 = vsel %vm576_vm4, %v591_v10, %v595_v14  ;;  %v599_v19 = vor.u32 %v597_v11, %v595_v14 }
 0x105   : > { %v6851_v21 = vpack.c.bf16 %v563_v16, %v562_v7  ;;  %642 = vrot.lane.b32.xlu0 %v596_v18, %s6654_s14  ;;  %v6655_v16 = vmov 0.0   ;;  %v6333_v18 = vld [vmem:[%s8154_s5 + $0x48] sm:$0xff]  }
 0x106   : > { %v6854_v22 = vpack.c.bf16 %v561_v17, %v560_v12  ;;  %v604_v24 = vsel %vm576_vm4, %v599_v19, %v603_v20  ;;  %v5625_v25 = vpop.f32.mrb[12].mxu0  ;;  %5627 = vmatprep.subr.bf16.mxu0 %v6655_v16  ;;  %5687 = vmatprep.subr.bf16.mxu1 %v6655_v16  ;;  %v6335_v17 = vld [vmem:[%s8154_s5 + $0xc0] sm:$0xff]   ;;  %v6337_v19 = vld [vmem:[%s8154_s5 + $0xc8] sm:$0xff]   ;;  %v6334_v20 = vld [vmem:[%s8154_s5 + $0x50] sm:$0xff]  }
 0x107   : > { %644 = vrot.lane.b32.xlu1 %v604_v24, %s6654_s14  ;;  %v546_v27 = vadd.f32 %v5625_v25, %v6811_v23  ;;  %v537_v28 = vpop.f32.mrb[13].mxu0  ;;  %v617_v29 = vshll.u32 %v6851_v21, 16  ;;  %v621_v48 = vshrl.u32 %v6851_v21, 16  ;;  %v6338_v24 = vld [vmem:[%s8154_s5 + $0x60] sm:$0xff]   ;;  %v6340_v25 = vld [vmem:[%s8154_s5 + $0x68] sm:$0xff]   ;;  %5643 = vmatprep.mubr.msk.bf16.mxu0 %vm6656_vm5, %v6655_v16 }
 0x108   : > { %v609_v30 = vshll.u32 %v6854_v22, 16  ;;  %v538_v31 = vadd.f32 %v6811_v23, %v537_v28  ;;  %v5626_v32 = vpop.f32.mrb[14].mxu0  ;;  %v613_v33 = vshrl.u32 %v6854_v22, 16  ;;  %v672_v4 = vrot.slane %v6854_v22, 1 }
 0x109   : > { %v566_v35 = vmax.f32 %v546_v27, 0.0  ;;  %v549_v38 = vadd.f32 %v5626_v32, %v6811_v23  ;;  %v540_v39 = vpop.f32.mrb[15].mxu0  ;;  %v619_v43 = vrot.slane %v617_v29, 1 }
 0x10a   : > { %v611_v40 = vrot.slane %v609_v30, 1  ;;  %v564_v41 = vmax.f32 %v538_v31, 0.0  ;;  %v541_v42 = vadd.f32 %v6811_v23, %v540_v39  ;;  %v673_v5 = vsel %vm664_vm2, %v670_v0, %v672_v4 }
 0x10b   : > { %v567_v44 = vmax.f32 %v549_v38, 0.0  ;;  %v623_v52 = vor.u32 %v621_v48, %v619_v43  ;;  %v6343_v48 = vld [vmem:[%s8154_s5 + $0xe0] sm:$0xff]  }
 0x10c   : > { %v612_v45 = vsel %vm576_vm4, %v607_v34, %v611_v40  ;;  %v565_v46 = vmax.f32 %v541_v42, 0.0  ;;  %v615_v47 = vor.u32 %v613_v33, %v611_v40 }
 0x10d   : > { %646 = vrot.lane.b32.xlu1 %v612_v45, %s6654_s14  ;;  %v6869_v49 = vpack.c.bf16 %v567_v44, %v566_v35  ;;  %v6341_v44 = vld [vmem:[%s8154_s5 + $0xd8] sm:$0xff]   ;;  %v6342_v45 = vld [vmem:[%s8154_s5 + $0x70] sm:$0xff]  }
 0x10e   : > { %v6871_v50 = vpack.c.bf16 %v565_v46, %v564_v41  ;;  %v620_v51 = vsel %vm576_vm4, %v615_v47, %v619_v43 }
 0x10f   : > { %648 = vrot.lane.b32.xlu0 %v620_v51, %s6654_s14  ;;  %v633_v55 = vshll.u32 %v6869_v49, 16  ;;  %v637_v56 = vshrl.u32 %v6869_v49, 16  ;;  %v678_v13 = vrot.slane %v6869_v49, 1 }
 0x110   : > { %v625_v23 = vshll.u32 %v6871_v50, 16  ;;  %v676_v10 = vrot.slane %v6871_v50, 1 }
 0x111   : > { %v6883_v57 = vrot.slane %v633_v55, 1  ;;  %v6345_v55 = vld [vmem:[%s8154_s5 + $0xe8] sm:$0xff]  }
 0x112   : > { %v6876_v53 = vrot.slane %v625_v23, 1  ;;  %v679_v14 = vsel %vm664_vm2, %v676_v10, %v678_v13  ;;  %v6344_v23 = vld [vmem:[%s8154_s5 + $0x78] sm:$0xff]  }
 0x113   : > { %v639_v58 = vor.u32 %v637_v56, %v6883_v57 }
 0x114   : > { %v628_v54 = vsel %vm576_vm4, %v623_v52, %v6876_v53 }
 0x115   : > { %650 = vrot.lane.b32.xlu0 %v628_v54, %s6654_s14 }
 0x119   : > { %654 = vrot.lane.b32.xlu0 %v639_v58, %s6654_s14 }
 0x171   : > { %v641_v61 = vpop.permute.xlu0 %640 }
 0x172   : > { %v682_v62 = vsel %vm680_vm3, %v6819_v37, %v641_v61 }
 0x173   : > { %840 = vmatmul.mubr.bf16.vlgmr.msra.gmra.mrb[0].mxu1 %v682_v62  ;;  %v629_v62 = vshrl.u32 %v6871_v50, 16 }
 0x174   : > { %4565 = vmatprep.mubr.msk.bf16.mxu1 %vm680_vm3, %v669_v15  ;;  %v6332_v15 = vld [vmem:[%s8154_s5 + $0x40] sm:$0xff]   ;;  %5688 = vmatpush3.bf16.msra.mxu1 %v6335_v17 }
 0x175   : > { %5628 = vmatpush3.bf16.msra.mxu0 %v6332_v15  ;;  %5689 = vmatprep.subr.bf16.mxu1 %v6655_v16 }
 0x176   : > { %5629 = vmatprep.subr.bf16.mxu0 %v6655_v16 }
 0x177   : > { %v643_v63 = vpop.permute.xlu0 %642 }
 0x178   : > { %v685_v1 = vsel %vm680_vm3, %v6817_v36, %v643_v63  ;;  %v674_v36 = vrot.slane %v6851_v21, 1  ;;  %5690 = vmatpush3.bf16.msra.mxu1 %v6337_v19 }
 0x179   : > { %v645_v3 = vpop.permute.xlu1 %644  ;;  %5630 = vmatpush3.bf16.msra.mxu0 %v6333_v18  ;;  %5691 = vmatprep.subr.bf16.mxu1 %v6655_v16 }
 0x17a   : > { %v688_v37 = vsel %vm680_vm3, %v6834_v60, %v645_v3  ;;  %v675_v8 = vsel %vm664_vm2, %v672_v4, %v674_v36  ;;  %v677_v11 = vsel %vm664_vm2, %v674_v36, %v676_v10  ;;  %5631 = vmatprep.subr.bf16.mxu0 %v6655_v16 }
 0x17b   : > { %848 = vmatmul.mubr.bf16.gmra.mrb[4].mxu1 %v685_v1 }
 0x17c   : > { %4566 = vmatprep.mubr.msk.bf16.mxu1 %vm680_vm3, %v671_v2 }
 0x17d   : > { %5632 = vmatpush3.bf16.msra.mxu0 %v6334_v20 }
 0x17e   : > { %5633 = vmatprep.subr.bf16.mxu0 %v6655_v16 }
 0x17f   : > { %v647_v7 = vpop.permute.xlu1 %646 }
 0x180   : > { %v691_v6 = vsel %vm680_vm3, %v6832_v59, %v647_v7  ;;  %v6347_v7 = vld [vmem:[%s8154_s5 + $0xf0] sm:$0xff]  }
 0x181   : > { %v649_v9 = vpop.permute.xlu0 %648 }
 0x182   : > { %v694_v60 = vsel %vm680_vm3, %v6854_v22, %v649_v9  ;;  %v6336_v22 = vld [vmem:[%s8154_s5 + $0x58] sm:$0xff]  }
 0x183   : > { %856 = vmatmul.mubr.bf16.gmra.mrb[8].mxu1 %v688_v37  ;;  %5634 = vmatpush3.bf16.msra.mxu0 %v6336_v22 }
 0x184   : > { %4567 = vmatprep.mubr.msk.bf16.mxu1 %vm680_vm3, %v673_v5  ;;  %5635 = vmatprep.subr.bf16.mxu0 %v6655_v16  ;;  %v631_v5 = vor.u32 %v629_v62, %v6876_v53  ;;  %v6352_v62 = vld [vmem:[%s8154_s5 + $0x18] sm:$0xff]  }
 0x186   : > { %v636_v53 = vsel %vm576_vm4, %v631_v5, %v6883_v57  ;;  %v6359_v5 = vld [vmem:[%s8154_s5 + $0x160] sm:$0xff]  }
 0x187   : > { %v651_v12 = vpop.permute.xlu0 %650  ;;  %5636 = vmatpush3.bf16.msra.mxu0 %v6338_v24 }
 0x188   : > { %v697_v59 = vsel %vm680_vm3, %v6851_v21, %v651_v12  ;;  %v6339_v21 = vld [vmem:[%s8154_s5 + $0xd0] sm:$0xff]   ;;  %5637 = vmatprep.subr.bf16.mxu0 %v6655_v16  ;;  %v6349_v12 = vld [vmem:[%s8154_s5 + $0xf8] sm:$0xff]  }
 0x189   : > { %5692 = vmatpush3.bf16.msra.mxu1 %v6339_v21 }
 0x18a   : > { %5693 = vmatprep.subr.bf16.mxu1 %v6655_v16 }
 0x18b   : > { %864 = vmatmul.mubr.bf16.gmra.mrb[12].mxu1 %v691_v6  ;;  %5638 = vmatpush3.bf16.msra.mxu0 %v6340_v25 }
 0x18c   : > { %4568 = vmatprep.mubr.msk.bf16.mxu1 %vm680_vm3, %v675_v8  ;;  %5639 = vmatprep.subr.bf16.mxu0 %v6655_v16 }
 0x18d   : > { %5694 = vmatpush3.bf16.msra.mxu1 %v6341_v44 }
 0x18e   : > { %5695 = vmatprep.subr.bf16.mxu1 %v6655_v16 }
 0x18f   : > { %5640 = vmatpush3.bf16.msra.mxu0 %v6342_v45 }
 0x190   : > { %5641 = vmatprep.subr.bf16.mxu0 %v6655_v16 }
 0x191   : > { %5696 = vmatpush3.bf16.msra.mxu1 %v6343_v48 }
 0x192   : > { %5697 = vmatprep.subr.bf16.mxu1 %v6655_v16 }
 0x193   : > { %872 = vmatmul.mubr.bf16.gmra.mrb[16].mxu1 %v694_v60  ;;  %5642 = vmatpush3.bf16.msra.mxu0 %v6344_v23 }
 0x194   : > { %4569 = vmatprep.mubr.msk.bf16.mxu1 %vm680_vm3, %v677_v11  ;;  %5647 = vmatprep.subr.bf16.mxu0 %v6655_v16 }
 0x195   : > { %5698 = vmatpush3.bf16.msra.mxu1 %v6345_v55  ;;  %v6348_v55 = vld [vmem:[%s8154_s5 + $0x8] sm:$0xff]  }
 0x196   : > { %5699 = vmatprep.subr.bf16.mxu1 %v6655_v16 }
 0x199   : > { %5700 = vmatpush3.bf16.msra.mxu1 %v6347_v7 }
 0x19a   : > { %5701 = vmatprep.subr.bf16.mxu1 %v6655_v16 }
 0x19b   : > { %880 = vmatmul.mubr.bf16.gmra.mrb[20].mxu1 %v697_v59 }
 0x19c   : > { %4570 = vmatprep.mubr.msk.bf16.mxu1 %vm680_vm3, %v679_v14 }
 0x19d   : > { %5702 = vmatpush3.bf16.msra.mxu1 %v6349_v12 }
 0x19e   : > { %5727 = vmatprep.subr.bf16.mxu1 %v6655_v16 }
 0x246   : > { %v841_v27 = vpop.f32.mrb[0].mxu1 }
 0x247   : > { %v842_v28 = vadd.f32 %v6960_v26, %v841_v27  ;;  %v843_v29 = vpop.f32.mrb[1].mxu1 }
 0x248   : > { %v844_v30 = vpop.f32.mrb[2].mxu1 }
 0x249   : > { %v904_v31 = vmax.f32 %v842_v28, 0.0  ;;  %v845_v32 = vadd.f32 %v6960_v26, %v844_v30  ;;  %v846_v33 = vpop.f32.mrb[3].mxu1 }
 0x24b   : > { %920 = vst.msk [vmem:[#allocation2] sm:$0xff] %vm680_vm3, %v904_v31  ;;  %v905_v34 = vmax.f32 %v845_v32, 0.0 }
 0x24d   : > { %921 = vst.msk [vmem:[#allocation2 + $0x8] sm:$0xff] %vm680_vm3, %v905_v34 }
 0x24e   : > { %v849_v35 = vpop.f32.mrb[4].mxu1 }
 0x24f   : > { %v850_v38 = vadd.f32 %v6960_v26, %v849_v35  ;;  %v851_v39 = vpop.f32.mrb[5].mxu1 }
 0x250   : > { %v852_v40 = vpop.f32.mrb[6].mxu1 }
 0x251   : > { %v906_v41 = vmax.f32 %v850_v38, 0.0  ;;  %v853_v42 = vadd.f32 %v6960_v26, %v852_v40  ;;  %v854_v43 = vpop.f32.mrb[7].mxu1 }
 0x253   : > { %922 = vst.msk [vmem:[#allocation2 + $0x10] sm:$0xff] %vm680_vm3, %v906_v41  ;;  %v907_v46 = vmax.f32 %v853_v42, 0.0 }
 0x255   : > { %923 = vst.msk [vmem:[#allocation2 + $0x18] sm:$0xff] %vm680_vm3, %v907_v46 }
 0x256   : > { %v857_v47 = vpop.f32.mrb[8].mxu1 }
 0x257   : > { %v858_v51 = vadd.f32 %v6960_v26, %v857_v47  ;;  %v859_v52 = vpop.f32.mrb[9].mxu1 }
 0x258   : > { %v860_v54 = vpop.f32.mrb[10].mxu1  ;;  %v6346_v52 = vld [vmem:[%s8154_s5] sm:$0xff]  }
 0x259   : > { %v908_v56 = vmax.f32 %v858_v51, 0.0  ;;  %v861_v58 = vadd.f32 %v6960_v26, %v860_v54  ;;  %v862_v61 = vpop.f32.mrb[11].mxu1  ;;  %v655_v54 = vpop.permute.xlu0 %654 }
 0x25b   : > { %924 = vst.msk [vmem:[#allocation2 + $0x20] sm:$0xff] %vm680_vm3, %v908_v56  ;;  %v909_v63 = vmax.f32 %v861_v58, 0.0  ;;  %v6350_v56 = vld [vmem:[%s8154_s5 + $0x10] sm:$0xff]  }
 0x25c   : > { %v953_v0 = vld [vmem:[#allocation2 + $0x2] ss:$4 sm:$0xff]  ;;  %v961_v1 = vld [vmem:[#allocation2 + $0x3] ss:$4 sm:$0xff]  ;;  %v937_v2 = vld [vmem:[#allocation2] ss:$4 sm:$0xff] }
 0x25d   : > { %925 = vst.msk [vmem:[#allocation2 + $0x28] sm:$0xff] %vm680_vm3, %v909_v63  ;;  %v977_v3 = vmax.f32 %v953_v0, %v961_v1  ;;  %v945_v4 = vld [vmem:[#allocation2 + $0x1] ss:$4 sm:$0xff] }
 0x25e   : > { %v865_v37 = vpop.f32.mrb[12].mxu1  ;;  %v968_v36 = vmax.f32 %v937_v2, %v945_v4  ;;  %v6353_v63 = vld [vmem:[%s8154_s5 + $0x148] sm:$0xff]   ;;  %v6354_v0 = vld [vmem:[%s8154_s5 + $0x20] sm:$0xff]   ;;  %v6355_v1 = vld [vmem:[%s8154_s5 + $0x150] sm:$0xff]  }
 0x25f   : > { %v866_v8 = vadd.f32 %v6960_v26, %v865_v37  ;;  %v867_v6 = vpop.f32.mrb[13].mxu1  ;;  %985 = vrot.lane.b32.xlu1 %v977_v3, %s6654_s14  ;;  %v6356_v2 = vld [vmem:[%s8154_s5 + $0x28] sm:$0xff]   ;;  %v6357_v3 = vld [vmem:[%s8154_s5 + $0x158] sm:$0xff]   ;;  %v6358_v4 = vld [vmem:[%s8154_s5 + $0x30] sm:$0xff]  }
 0x260   : > { %v868_v9 = vpop.f32.mrb[14].mxu1  ;;  %972 = vst.msk [vmem:[#allocation3] sm:$0xff] %vm680_vm3, %v968_v36  ;;  %v6360_v36 = vld [vmem:[%s8154_s5 + $0x38] sm:$0xff]   ;;  %v6362_v6 = vld [vmem:[%s8154_s5 + $0x80] sm:$0xff]  }
 0x261   : > { %v910_v10 = vmax.f32 %v866_v8, 0.0  ;;  %v869_v60 = vadd.f32 %v6960_v26, %v868_v9  ;;  %v870_v11 = vpop.f32.mrb[15].mxu1  ;;  %v6361_v8 = vld [vmem:[%s8154_s5 + $0x168] sm:$0xff]  }
 0x262   : > { %v6365_v11 = vld [vmem:[%s8154_s5 + $0x178] sm:$0xff]  }
 0x263   : > { %926 = vst.msk [vmem:[#allocation2 + $0x30] sm:$0xff] %vm680_vm3, %v910_v10  ;;  %v911_v59 = vmax.f32 %v869_v60, 0.0  ;;  %652 = vrot.lane.b32.xlu1 %v636_v53, %s6654_s14  ;;  %v6363_v10 = vld [vmem:[%s8154_s5 + $0x170] sm:$0xff]   ;;  %v6364_v60 = vld [vmem:[%s8154_s5 + $0x88] sm:$0xff]  }
 0x264   : > { %v6366_v53 = vld [vmem:[%s8154_s5 + $0x90] sm:$0xff]  }
 0x265   : > { %927 = vst.msk [vmem:[#allocation2 + $0x38] sm:$0xff] %vm680_vm3, %v911_v59  ;;  %v6367_v59 = vld [vmem:[%s8154_s5 + $0x1c0] sm:$0xff]  }
 0x266   : > { %v873_v14 = vpop.f32.mrb[16].mxu1 }
 0x267   : > { %v874_v15 = vadd.f32 %v6960_v26, %v873_v14  ;;  %v875_v17 = vpop.f32.mrb[17].mxu1 }
 0x268   : > { %v876_v18 = vpop.f32.mrb[18].mxu1  ;;  %v6369_v17 = vld [vmem:[%s8154_s5 + $0x1c8] sm:$0xff]  }
 0x269   : > { %v912_v57 = vmax.f32 %v874_v15, 0.0  ;;  %v877_v19 = vadd.f32 %v6960_v26, %v876_v18  ;;  %v878_v20 = vpop.f32.mrb[19].mxu1  ;;  %v6368_v15 = vld [vmem:[%s8154_s5 + $0x98] sm:$0xff]   ;;  %v6370_v18 = vld [vmem:[%s8154_s5 + $0xa0] sm:$0xff]  }
 0x26a   : > { %v6373_v20 = vld [vmem:[%s8154_s5 + $0x1d8] sm:$0xff]  }
 0x26b   : > { %928 = vst.msk [vmem:[#allocation2 + $0x40] sm:$0xff] %vm680_vm3, %v912_v57  ;;  %v913_v21 = vmax.f32 %v877_v19, 0.0  ;;  %v6371_v57 = vld [vmem:[%s8154_s5 + $0x1d0] sm:$0xff]   ;;  %v6372_v19 = vld [vmem:[%s8154_s5 + $0xa8] sm:$0xff]  }
 0x26c   : > { %v955_v22 = vld [vmem:[#allocation2 + $0x22] ss:$4 sm:$0xff]  ;;  %v963_v24 = vld [vmem:[#allocation2 + $0x23] ss:$4 sm:$0xff]  ;;  %v939_v25 = vld [vmem:[#allocation2 + $0x20] ss:$4 sm:$0xff] }
 0x26d   : > { %929 = vst.msk [vmem:[#allocation2 + $0x48] sm:$0xff] %vm680_vm3, %v913_v21  ;;  %v978_v27 = vmax.f32 %v955_v22, %v963_v24  ;;  %v947_v28 = vld [vmem:[#allocation2 + $0x21] ss:$4 sm:$0xff] }
 0x26e   : > { %v881_v29 = vpop.f32.mrb[20].mxu1  ;;  %v969_v30 = vmax.f32 %v939_v25, %v947_v28  ;;  %v6374_v21 = vld [vmem:[%s8154_s5 + $0xb0] sm:$0xff]   ;;  %v6375_v22 = vld [vmem:[%s8154_s5 + $0x1e0] sm:$0xff]   ;;  %v6376_v24 = vld [vmem:[%s8154_s5 + $0xb8] sm:$0xff]  }
 0x26f   : > { %987 = vrot.lane.b32.xlu1 %v978_v27, %s6654_s14  ;;  %v882_v31 = vadd.f32 %v6960_v26, %v881_v29  ;;  %v883_v32 = vpop.f32.mrb[21].mxu1  ;;  %v6377_v27 = vld [vmem:[%s8154_s5 + $0x1e8] sm:$0xff]   ;;  %v6378_v28 = vld [vmem:[%s8154_s5 + $0x100] sm:$0xff]  }
 0x270   : > { %v884_v33 = vpop.f32.mrb[22].mxu1  ;;  %973 = vst.msk [vmem:[#allocation3 + $0x8] sm:$0xff] %vm680_vm3, %v969_v30  ;;  %v6379_v30 = vld [vmem:[%s8154_s5 + $0x1f0] sm:$0xff]   ;;  %v6381_v32 = vld [vmem:[%s8154_s5 + $0x1f8] sm:$0xff]  }
 0x271   : > { %v914_v34 = vmax.f32 %v882_v31, 0.0  ;;  %v885_v35 = vadd.f32 %v6960_v26, %v884_v33  ;;  %v886_v38 = vpop.f32.mrb[23].mxu1  ;;  %v6380_v31 = vld [vmem:[%s8154_s5 + $0x108] sm:$0xff]   ;;  %v6382_v33 = vld [vmem:[%s8154_s5 + $0x110] sm:$0xff]  }
 0x273   : > { %930 = vst.msk [vmem:[#allocation2 + $0x50] sm:$0xff] %vm680_vm3, %v914_v34  ;;  %v915_v39 = vmax.f32 %v885_v35, 0.0  ;;  %v6383_v35 = vld [vmem:[%s8154_s5 + $0x240] sm:$0xff]  }
 0x275   : > { %931 = vst.msk [vmem:[#allocation2 + $0x58] sm:$0xff] %vm680_vm3, %v915_v39  ;;  %v6384_v39 = vld [vmem:[%s8154_s5 + $0x118] sm:$0xff]  }
 0x27c   : > { %v957_v40 = vld [vmem:[#allocation2 + $0x42] ss:$4 sm:$0xff]  ;;  %v965_v41 = vld [vmem:[#allocation2 + $0x43] ss:$4 sm:$0xff]  ;;  %v941_v42 = vld [vmem:[#allocation2 + $0x40] ss:$4 sm:$0xff] }
 0x27d   : > { %v979_v43 = vmax.f32 %v957_v40, %v965_v41  ;;  %v949_v44 = vld [vmem:[#allocation2 + $0x41] ss:$4 sm:$0xff] }
 0x27e   : > { %v970_v45 = vmax.f32 %v941_v42, %v949_v44  ;;  %v6385_v40 = vld [vmem:[%s8154_s5 + $0x248] sm:$0xff]   ;;  %v6386_v41 = vld [vmem:[%s8154_s5 + $0x120] sm:$0xff]   ;;  %v6387_v42 = vld [vmem:[%s8154_s5 + $0x250] sm:$0xff]  }
 0x27f   : > { %989 = vrot.lane.b32.xlu0 %v979_v43, %s6654_s14  ;;  %v6388_v43 = vld [vmem:[%s8154_s5 + $0x128] sm:$0xff]   ;;  %v6389_v44 = vld [vmem:[%s8154_s5 + $0x258] sm:$0xff]  }
 0x280   : > { %974 = vst.msk [vmem:[#allocation3 + $0x10] sm:$0xff] %vm680_vm3, %v970_v45  ;;  %v6390_v45 = vld [vmem:[%s8154_s5 + $0x130] sm:$0xff]  }
 0x2d1   : > { %v986_v46 = vpop.permute.xlu1 %985 }
 0x2d2   : > { %998 = vst.msk [vmem:[#allocation3] sm:$0xff] %vm997_vm6, %v986_v46  ;;  %v6391_v46 = vld [vmem:[%s8154_s5 + $0x260] sm:$0xff]  }
 0x2d5   : > { %v653_v47 = vpop.permute.xlu1 %652 }
 0x2d6   : > { %v700_v48 = vsel %vm680_vm3, %v6871_v50, %v653_v47  ;;  %v703_v50 = vsel %vm680_vm3, %v6869_v49, %v655_v54  ;;  %v6351_v49 = vld [vmem:[%s8154_s5 + $0x140] sm:$0xff]   ;;  %v6392_v47 = vld [vmem:[%s8154_s5 + $0x138] sm:$0xff]   ;;  %v6395_v54 = vld [vmem:[%s8154_s5 + $0x270] sm:$0xff]  }
 0x2d7   : > { %888 = vmatmul.mubr.bf16.gmra.mrb[24].mxu1 %v700_v48 }
 0x2d8   : > { %4571 = vmatprep.mubr.msk.bf16.mxu1 %vm680_vm3, %v678_v13 }
 0x2d9   : > { %v1021_v51 = vld [vmem:[#allocation3 + $0x1] sm:$0x1]  ;;  %v1324_v58 = vld [vmem:[#allocation3 + $0x3] sm:$0x1]  ;;  %v1003_v7 = vld [vmem:[#allocation3] sm:$0x1] }
 0x2da   : > { %v1022_v23 = vpack.c.bf16 %v1021_v51, %v1021_v51  ;;  %v1325_v61 = vpack.c.bf16 %v1324_v58, %v1324_v58  ;;  %v1004_v9 = vpack.c.bf16 %v1003_v7, %v1003_v7  ;;  %v1540_v12 = vld [vmem:[#allocation3 + $0x5] sm:$0x1]  ;;  %v1216_v25 = vld [vmem:[#allocation3 + $0x2] sm:$0x1]  ;;  %v1756_v34 = vld [vmem:[#allocation3 + $0x7] sm:$0x1] }
 0x2db   : > { %v1541_v14 = vpack.c.bf16 %v1540_v12, %v1540_v12  ;;  %v1217_v29 = vpack.c.bf16 %v1216_v25, %v1216_v25  ;;  %v1757_v38 = vpack.c.bf16 %v1756_v34, %v1756_v34  ;;  %v1432_v48 = vld [vmem:[#allocation3 + $0x4] sm:$0x1]  ;;  %v6393_v51 = vld [vmem:[%s8154_s5 + $0x268] sm:$0xff]  }
 0x2dc   : > { %5644 = vmatmul.mubr.bf16.vlgmr.msra.gmra.mrb[16].mxu0 %v1022_v23  ;;  %v1433_v23 = vpack.c.bf16 %v1432_v48, %v1432_v48  ;;  %v6399_v58 = vld [vmem:[%s8154_s5 + $0x2c0] sm:$0xff]  }
 0x2dd   : > { %5648 = vmatpush3.bf16.msra.mxu0 %v6346_v52  ;;  %5663 = vmatprep.mubr.msk.bf16.mxu0 %vm6656_vm5, %v6655_v16  ;;  %v6394_v52 = vld [vmem:[%s8154_s5 + $0x180] sm:$0xff]  }
 0x2de   : > { %5649 = vmatprep.subr.bf16.mxu0 %v6655_v16  ;;  %v6410_v7 = vld [vmem:[%s8154_s5 + $0x200] sm:$0xff]  }
 0x2df   : > { %896 = vmatmul.mubr.bf16.gmra.mrb[28].mxu1 %v703_v50  ;;  %v6397_v50 = vld [vmem:[%s8154_s5 + $0x278] sm:$0xff]   ;;  %v6426_v25 = vld [vmem:[%s8154_s5 + $0x280] sm:$0xff]  }
 0x2e0   : > { %5703 = vmatprep.mubr.msk.bf16.mxu1 %vm6656_vm5, %v6655_v16  ;;  %v6442_v48 = vld [vmem:[%s8154_s5 + $0x300] sm:$0xff]  }
 0x2e1   : > { %5650 = vmatpush3.bf16.msra.mxu0 %v6348_v55  ;;  %v988_v13 = vpop.permute.xlu1 %987  ;;  %v6396_v55 = vld [vmem:[%s8154_s5 + $0x188] sm:$0xff]  }
 0x2e2   : > { %999 = vst.msk [vmem:[#allocation3 + $0x8] sm:$0xff] %vm997_vm6, %v988_v13  ;;  %5651 = vmatprep.subr.bf16.mxu0 %v6655_v16  ;;  %v6398_v13 = vld [vmem:[%s8154_s5 + $0x190] sm:$0xff]  }
 0x2e5   : > { %5652 = vmatpush3.bf16.msra.mxu0 %v6350_v56 }
 0x2e6   : > { %5653 = vmatprep.subr.bf16.mxu0 %v6655_v16 }
 0x2e7   : > { %5704 = vmatmul.mubr.bf16.vlgmr.msra.gmra.mrb[32].mxu1 %v1325_v61  ;;  %v6400_v61 = vld [vmem:[%s8154_s5 + $0x198] sm:$0xff]  }
 0x2e8   : > { %5728 = vmatpush3.bf16.msra.mxu1 %v6351_v49  ;;  %5743 = vmatprep.mubr.msk.bf16.mxu1 %vm6656_vm5, %v6655_v16 }
 0x2e9   : > { %5654 = vmatpush3.bf16.msra.mxu0 %v6352_v62  ;;  %5729 = vmatprep.subr.bf16.mxu1 %v6655_v16  ;;  %v1972_v56 = vld [vmem:[#allocation3 + $0x9] sm:$0x1] }
 0x2ea   : > { %5655 = vmatprep.subr.bf16.mxu0 %v6655_v16  ;;  %v1973_v49 = vpack.c.bf16 %v1972_v56, %v1972_v56  ;;  %v6401_v62 = vld [vmem:[%s8154_s5 + $0x2c8] sm:$0xff]  }
 0x2ec   : > { %5730 = vmatpush3.bf16.msra.mxu1 %v6353_v63  ;;  %v6402_v63 = vld [vmem:[%s8154_s5 + $0x1a0] sm:$0xff]  }
 0x2ed   : > { %5656 = vmatpush3.bf16.msra.mxu0 %v6354_v0  ;;  %5731 = vmatprep.subr.bf16.mxu1 %v6655_v16  ;;  %v6403_v0 = vld [vmem:[%s8154_s5 + $0x2d0] sm:$0xff]  }
 0x2ee   : > { %5657 = vmatprep.subr.bf16.mxu0 %v6655_v16 }
 0x2f0   : > { %5732 = vmatpush3.bf16.msra.mxu1 %v6355_v1  ;;  %v6404_v1 = vld [vmem:[%s8154_s5 + $0x1a8] sm:$0xff]  }
 0x2f1   : > { %5658 = vmatpush3.bf16.msra.mxu0 %v6356_v2  ;;  %5733 = vmatprep.subr.bf16.mxu1 %v6655_v16  ;;  %v990_v37 = vpop.permute.xlu0 %989  ;;  %v6405_v2 = vld [vmem:[%s8154_s5 + $0x2d8] sm:$0xff]  }
 0x2f2   : > { %5659 = vmatprep.subr.bf16.mxu0 %v6655_v16  ;;  %1000 = vst.msk [vmem:[#allocation3 + $0x10] sm:$0xff] %vm997_vm6, %v990_v37  ;;  %v6408_v37 = vld [vmem:[%s8154_s5 + $0x1b8] sm:$0xff]  }
 0x2f4   : > { %5734 = vmatpush3.bf16.msra.mxu1 %v6357_v3  ;;  %v6406_v3 = vld [vmem:[%s8154_s5 + $0x1b0] sm:$0xff]  }
 0x2f5   : > { %5660 = vmatpush3.bf16.msra.mxu0 %v6358_v4  ;;  %5735 = vmatprep.subr.bf16.mxu1 %v6655_v16  ;;  %v6407_v4 = vld [vmem:[%s8154_s5 + $0x2e0] sm:$0xff]  }
 0x2f6   : > { %5661 = vmatprep.subr.bf16.mxu0 %v6655_v16 }
 0x2f8   : > { %5736 = vmatpush3.bf16.msra.mxu1 %v6359_v5  ;;  %v1648_v5 = vld [vmem:[#allocation3 + $0x6] sm:$0x1] }
 0x2f9   : > { %5662 = vmatpush3.bf16.msra.mxu0 %v6360_v36  ;;  %5737 = vmatprep.subr.bf16.mxu1 %v6655_v16  ;;  %v6409_v36 = vld [vmem:[%s8154_s5 + $0x2e8] sm:$0xff]  }
 0x2fa   : > { %5667 = vmatprep.subr.bf16.mxu0 %v6655_v16 }
 0x2fc   : > { %5664 = vmatmul.mubr.bf16.vlgmr.msra.gmra.mrb[20].mxu0 %v1004_v9  ;;  %5738 = vmatpush3.bf16.msra.mxu1 %v6361_v8  ;;  %v1649_v8 = vpack.c.bf16 %v1648_v5, %v1648_v5  ;;  %v6412_v9 = vld [vmem:[%s8154_s5 + $0x208] sm:$0xff]  }
 0x2fd   : > { %5668 = vmatpush3.bf16.msra.mxu0 %v6362_v6  ;;  %5739 = vmatprep.subr.bf16.mxu1 %v6655_v16  ;;  %v6411_v6 = vld [vmem:[%s8154_s5 + $0x2f0] sm:$0xff]   ;;  %v6452_v5 = vld [vmem:[%s8154_s5 + $0x328] sm:$0xff]  }
 0x2fe   : > { %5669 = vmatprep.subr.bf16.mxu0 %v6655_v16  ;;  %5683 = vmatprep.mubr.msk.bf16.mxu0 %vm6656_vm5, %v6655_v16 }
 0x300   : > { %5740 = vmatpush3.bf16.msra.mxu1 %v6363_v10  ;;  %v6413_v10 = vld [vmem:[%s8154_s5 + $0x2f8] sm:$0xff]  }
 0x301   : > { %5670 = vmatpush3.bf16.msra.mxu0 %v6364_v60  ;;  %5741 = vmatprep.subr.bf16.mxu1 %v6655_v16  ;;  %v6414_v60 = vld [vmem:[%s8154_s5 + $0x210] sm:$0xff]  }
 0x302   : > { %5671 = vmatprep.subr.bf16.mxu0 %v6655_v16 }
 0x304   : > { %5742 = vmatpush3.bf16.msra.mxu1 %v6365_v11  ;;  %v2188_v11 = vld [vmem:[#allocation3 + $0xb] sm:$0x1] }
 0x305   : > { %5672 = vmatpush3.bf16.msra.mxu0 %v6366_v53  ;;  %5767 = vmatprep.subr.bf16.mxu1 %v6655_v16  ;;  %v6415_v53 = vld [vmem:[%s8154_s5 + $0x340] sm:$0xff]   ;;  %v2189_v12 = vpack.c.bf16 %v2188_v11, %v2188_v11 }
 0x306   : > { %5673 = vmatprep.subr.bf16.mxu0 %v6655_v16  ;;  %v6588_v11 = vld [vmem:[%s8153_s4] ss:$0 sm:$0xff] }
 0x307   : > { %5744 = vmatmul.mubr.bf16.vlgmr.msra.gmra.mrb[36].mxu1 %v1541_v14  ;;  %v6417_v14 = vld [vmem:[%s8154_s5 + $0x348] sm:$0xff]  }
 0x308   : > { %5768 = vmatpush3.bf16.msra.mxu1 %v6367_v59  ;;  %5783 = vmatprep.mubr.msk.bf16.mxu1 %vm6656_vm5, %v6655_v16  ;;  %v6416_v59 = vld [vmem:[%s8154_s5 + $0x218] sm:$0xff]  }
 0x309   : > { %5674 = vmatpush3.bf16.msra.mxu0 %v6368_v15  ;;  %5769 = vmatprep.subr.bf16.mxu1 %v6655_v16  ;;  %v6418_v15 = vld [vmem:[%s8154_s5 + $0x220] sm:$0xff]  }
 0x30a   : > { %5675 = vmatprep.subr.bf16.mxu0 %v6655_v16 }
 0x30c   : > { %5770 = vmatpush3.bf16.msra.mxu1 %v6369_v17  ;;  %v6419_v17 = vld [vmem:[%s8154_s5 + $0x350] sm:$0xff]  }
 0x30d   : > { %5676 = vmatpush3.bf16.msra.mxu0 %v6370_v18  ;;  %5771 = vmatprep.subr.bf16.mxu1 %v6655_v16  ;;  %v6420_v18 = vld [vmem:[%s8154_s5 + $0x228] sm:$0xff]  }
 0x30e   : > { %5677 = vmatprep.subr.bf16.mxu0 %v6655_v16 }
 0x310   : > { %5772 = vmatpush3.bf16.msra.mxu1 %v6371_v57  ;;  %v6421_v57 = vld [vmem:[%s8154_s5 + $0x358] sm:$0xff]  }
 0x311   : > { %5678 = vmatpush3.bf16.msra.mxu0 %v6372_v19  ;;  %5773 = vmatprep.subr.bf16.mxu1 %v6655_v16  ;;  %v6422_v19 = vld [vmem:[%s8154_s5 + $0x230] sm:$0xff]  }
 0x312   : > { %5679 = vmatprep.subr.bf16.mxu0 %v6655_v16 }
 0x314   : > { %5774 = vmatpush3.bf16.msra.mxu1 %v6373_v20  ;;  %v6423_v20 = vld [vmem:[%s8154_s5 + $0x360] sm:$0xff]  }
 0x315   : > { %5680 = vmatpush3.bf16.msra.mxu0 %v6374_v21  ;;  %5775 = vmatprep.subr.bf16.mxu1 %v6655_v16  ;;  %v6424_v21 = vld [vmem:[%s8154_s5 + $0x238] sm:$0xff]  }
 0x316   : > { %5681 = vmatprep.subr.bf16.mxu0 %v6655_v16 }
 0x318   : > { %5776 = vmatpush3.bf16.msra.mxu1 %v6375_v22  ;;  %v1864_v22 = vld [vmem:[#allocation3 + $0x8] sm:$0x1] }
 0x319   : > { %5682 = vmatpush3.bf16.msra.mxu0 %v6376_v24  ;;  %5777 = vmatprep.subr.bf16.mxu1 %v6655_v16  ;;  %v6425_v24 = vld [vmem:[%s8154_s5 + $0x368] sm:$0xff]  }
 0x31a   : > { %5707 = vmatprep.subr.bf16.mxu0 %v6655_v16 }
 0x31c   : > { %5684 = vmatmul.mubr.bf16.vlgmr.msra.gmra.mrb[24].mxu0 %v1217_v29  ;;  %5778 = vmatpush3.bf16.msra.mxu1 %v6377_v27  ;;  %v1865_v27 = vpack.c.bf16 %v1864_v22, %v1864_v22  ;;  %v6428_v29 = vld [vmem:[%s8154_s5 + $0x288] sm:$0xff]   ;;  %v6458_v22 = vld [vmem:[%s8154_s5 + $0x380] sm:$0xff]  }
 0x31d   : > { %5708 = vmatpush3.bf16.msra.mxu0 %v6378_v28  ;;  %5779 = vmatprep.subr.bf16.mxu1 %v6655_v16  ;;  %v6427_v28 = vld [vmem:[%s8154_s5 + $0x370] sm:$0xff]  }
 0x31e   : > { %5709 = vmatprep.subr.bf16.mxu0 %v6655_v16  ;;  %5723 = vmatprep.mubr.msk.bf16.mxu0 %vm6656_vm5, %v6655_v16 }
 0x320   : > { %5780 = vmatpush3.bf16.msra.mxu1 %v6379_v30  ;;  %v6429_v30 = vld [vmem:[%s8154_s5 + $0x378] sm:$0xff]  }
 0x321   : > { %5710 = vmatpush3.bf16.msra.mxu0 %v6380_v31  ;;  %5781 = vmatprep.subr.bf16.mxu1 %v6655_v16  ;;  %v6430_v31 = vld [vmem:[%s8154_s5 + $0x290] sm:$0xff]  }
 0x322   : > { %5711 = vmatprep.subr.bf16.mxu0 %v6655_v16 }
 0x324   : > { %5782 = vmatpush3.bf16.msra.mxu1 %v6381_v32  ;;  %v2404_v32 = vld [vmem:[#allocation3 + $0xd] sm:$0x1] }
 0x325   : > { %5712 = vmatpush3.bf16.msra.mxu0 %v6382_v33  ;;  %5807 = vmatprep.subr.bf16.mxu1 %v6655_v16  ;;  %v6431_v33 = vld [vmem:[%s8154_s5 + $0x3c0] sm:$0xff]   ;;  %v2405_v34 = vpack.c.bf16 %v2404_v32, %v2404_v32  ;;  %v6461_v32 = vld [vmem:[%s8154_s5 + $0x478] sm:$0xff]  }
 0x326   : > { %5713 = vmatprep.subr.bf16.mxu0 %v6655_v16 }
 0x327   : > { %5784 = vmatmul.mubr.bf16.vlgmr.msra.gmra.mrb[40].mxu1 %v1757_v38  ;;  %v6433_v38 = vld [vmem:[%s8154_s5 + $0x3c8] sm:$0xff]  }
 0x328   : > { %5808 = vmatpush3.bf16.msra.mxu1 %v6383_v35  ;;  %5823 = vmatprep.mubr.msk.bf16.mxu1 %vm6656_vm5, %v6655_v16  ;;  %v6432_v35 = vld [vmem:[%s8154_s5 + $0x298] sm:$0xff]  }
 0x329   : > { %5714 = vmatpush3.bf16.msra.mxu0 %v6384_v39  ;;  %5809 = vmatprep.subr.bf16.mxu1 %v6655_v16  ;;  %v6434_v39 = vld [vmem:[%s8154_s5 + $0x2a0] sm:$0xff]  }
 0x32a   : > { %5715 = vmatprep.subr.bf16.mxu0 %v6655_v16 }
 0x32c   : > { %5810 = vmatpush3.bf16.msra.mxu1 %v6385_v40  ;;  %v6435_v40 = vld [vmem:[%s8154_s5 + $0x3d0] sm:$0xff]  }
 0x32d   : > { %5716 = vmatpush3.bf16.msra.mxu0 %v6386_v41  ;;  %5811 = vmatprep.subr.bf16.mxu1 %v6655_v16  ;;  %v6436_v41 = vld [vmem:[%s8154_s5 + $0x2a8] sm:$0xff]  }
 0x32e   : > { %5717 = vmatprep.subr.bf16.mxu0 %v6655_v16 }
 0x330   : > { %5812 = vmatpush3.bf16.msra.mxu1 %v6387_v42  ;;  %v6437_v42 = vld [vmem:[%s8154_s5 + $0x3d8] sm:$0xff]  }
 0x331   : > { %5718 = vmatpush3.bf16.msra.mxu0 %v6388_v43  ;;  %5813 = vmatprep.subr.bf16.mxu1 %v6655_v16  ;;  %v6438_v43 = vld [vmem:[%s8154_s5 + $0x2b0] sm:$0xff]  }
 0x332   : > { %5719 = vmatprep.subr.bf16.mxu0 %v6655_v16 }
 0x334   : > { %5814 = vmatpush3.bf16.msra.mxu1 %v6389_v44  ;;  %v6439_v44 = vld [vmem:[%s8154_s5 + $0x3e0] sm:$0xff]  }
 0x335   : > { %5720 = vmatpush3.bf16.msra.mxu0 %v6390_v45  ;;  %5815 = vmatprep.subr.bf16.mxu1 %v6655_v16  ;;  %v6440_v45 = vld [vmem:[%s8154_s5 + $0x2b8] sm:$0xff]  }
 0x336   : > { %5721 = vmatprep.subr.bf16.mxu0 %v6655_v16 }
 0x338   : > { %5816 = vmatpush3.bf16.msra.mxu1 %v6391_v46  ;;  %v2080_v46 = vld [vmem:[#allocation3 + $0xa] sm:$0x1] }
 0x339   : > { %5722 = vmatpush3.bf16.msra.mxu0 %v6392_v47  ;;  %5817 = vmatprep.subr.bf16.mxu1 %v6655_v16  ;;  %v6441_v47 = vld [vmem:[%s8154_s5 + $0x3e8] sm:$0xff]  }
 0x33a   : > { %5747 = vmatprep.subr.bf16.mxu0 %v6655_v16 }
 0x33c   : > { %5724 = vmatmul.mubr.bf16.vlgmr.msra.gmra.mrb[28].mxu0 %v1433_v23  ;;  %5818 = vmatpush3.bf16.msra.mxu1 %v6393_v51  ;;  %v2081_v51 = vpack.c.bf16 %v2080_v46, %v2080_v46  ;;  %v6444_v23 = vld [vmem:[%s8154_s5 + $0x308] sm:$0xff]  }
 0x33d   : > { %5748 = vmatpush3.bf16.msra.mxu0 %v6394_v52  ;;  %5819 = vmatprep.subr.bf16.mxu1 %v6655_v16  ;;  %v6443_v52 = vld [vmem:[%s8154_s5 + $0x3f0] sm:$0xff]   ;;  %v6465_v46 = vld [vmem:[%s8154_s5 + $0x4c8] sm:$0xff]  }
 0x33e   : > { %5749 = vmatprep.subr.bf16.mxu0 %v6655_v16  ;;  %5763 = vmatprep.mubr.msk.bf16.mxu0 %vm6656_vm5, %v6655_v16 }
 0x340   : > { %5820 = vmatpush3.bf16.msra.mxu1 %v6395_v54  ;;  %v6445_v54 = vld [vmem:[%s8154_s5 + $0x3f8] sm:$0xff]  }
 0x341   : > { %5750 = vmatpush3.bf16.msra.mxu0 %v6396_v55  ;;  %5821 = vmatprep.subr.bf16.mxu1 %v6655_v16  ;;  %v6446_v55 = vld [vmem:[%s8154_s5 + $0x310] sm:$0xff]  }
 0x342   : > { %5751 = vmatprep.subr.bf16.mxu0 %v6655_v16 }
 0x344   : > { %5822 = vmatpush3.bf16.msra.mxu1 %v6397_v50  ;;  %v2620_v50 = vld [vmem:[#allocation3 + $0xf] sm:$0x1] }
 0x345   : > { %5752 = vmatpush3.bf16.msra.mxu0 %v6398_v13  ;;  %5847 = vmatprep.subr.bf16.mxu1 %v6655_v16  ;;  %v6447_v13 = vld [vmem:[%s8154_s5 + $0x440] sm:$0xff]   ;;  %v2621_v56 = vpack.c.bf16 %v2620_v50, %v2620_v50 }
 0x346   : > { %5753 = vmatprep.subr.bf16.mxu0 %v6655_v16 }
 0x347   : > { %5824 = vmatmul.mubr.bf16.vlgmr.msra.gmra.mrb[44].mxu1 %v1973_v49  ;;  %v6449_v49 = vld [vmem:[%s8154_s5 + $0x448] sm:$0xff]  }
 0x348   : > { %5848 = vmatpush3.bf16.msra.mxu1 %v6399_v58  ;;  %5863 = vmatprep.mubr.msk.bf16.mxu1 %vm6656_vm5, %v6655_v16  ;;  %v6448_v58 = vld [vmem:[%s8154_s5 + $0x318] sm:$0xff]  }
 0x349   : > { %5754 = vmatpush3.bf16.msra.mxu0 %v6400_v61  ;;  %5849 = vmatprep.subr.bf16.mxu1 %v6655_v16  ;;  %v6450_v61 = vld [vmem:[%s8154_s5 + $0x320] sm:$0xff]  }
 0x34a   : > { %5755 = vmatprep.subr.bf16.mxu0 %v6655_v16 }
 0x34c   : > { %5850 = vmatpush3.bf16.msra.mxu1 %v6401_v62 }
 0x34d   : > { %5756 = vmatpush3.bf16.msra.mxu0 %v6402_v63  ;;  %5851 = vmatprep.subr.bf16.mxu1 %v6655_v16 }
 0x34e   : > { %5757 = vmatprep.subr.bf16.mxu0 %v6655_v16 }
 0x350   : > { %5852 = vmatpush3.bf16.msra.mxu1 %v6403_v0 }
 0x351   : > { %5758 = vmatpush3.bf16.msra.mxu0 %v6404_v1  ;;  %5853 = vmatprep.subr.bf16.mxu1 %v6655_v16 }
 0x352   : > { %5759 = vmatprep.subr.bf16.mxu0 %v6655_v16 }
 0x354   : > { %5854 = vmatpush3.bf16.msra.mxu1 %v6405_v2  ;;  %v6451_v2 = vld [vmem:[%s8154_s5 + $0x450] sm:$0xff]  }
 0x355   : > { %5760 = vmatpush3.bf16.msra.mxu0 %v6406_v3  ;;  %5855 = vmatprep.subr.bf16.mxu1 %v6655_v16 }
 0x356   : > { %5761 = vmatprep.subr.bf16.mxu0 %v6655_v16 }
 0x358   : > { %5856 = vmatpush3.bf16.msra.mxu1 %v6407_v4 }
 0x359   : > { %5762 = vmatpush3.bf16.msra.mxu0 %v6408_v37  ;;  %5857 = vmatprep.subr.bf16.mxu1 %v6655_v16 }
 0x35a   : > { %5787 = vmatprep.subr.bf16.mxu0 %v6655_v16 }
 0x35c   : > { %5764 = vmatmul.mubr.bf16.vlgmr.msra.gmra.mrb[32].mxu0 %v1649_v8  ;;  %5858 = vmatpush3.bf16.msra.mxu1 %v6409_v36 }
 0x35d   : > { %5788 = vmatpush3.bf16.msra.mxu0 %v6410_v7  ;;  %5859 = vmatprep.subr.bf16.mxu1 %v6655_v16 }
 0x35e   : > { %5789 = vmatprep.subr.bf16.mxu0 %v6655_v16  ;;  %5803 = vmatprep.mubr.msk.bf16.mxu0 %vm6656_vm5, %v6655_v16 }
 0x360   : > { %5860 = vmatpush3.bf16.msra.mxu1 %v6411_v6 }
 0x361   : > { %5790 = vmatpush3.bf16.msra.mxu0 %v6412_v9  ;;  %5861 = vmatprep.subr.bf16.mxu1 %v6655_v16  ;;  %v6454_v9 = vld [vmem:[%s8154_s5 + $0x330] sm:$0xff]  }
 0x362   : > { %5791 = vmatprep.subr.bf16.mxu0 %v6655_v16 }
 0x364   : > { %5862 = vmatpush3.bf16.msra.mxu1 %v6413_v10 }
 0x365   : > { %5792 = vmatpush3.bf16.msra.mxu0 %v6414_v60  ;;  %5887 = vmatprep.subr.bf16.mxu1 %v6655_v16 }
 0x366   : > { %5793 = vmatprep.subr.bf16.mxu0 %v6655_v16 }
 0x367   : > { %5864 = vmatmul.mubr.bf16.vlgmr.msra.gmra.mrb[48].mxu1 %v2189_v12 }
 0x368   : > { %5888 = vmatpush3.bf16.msra.mxu1 %v6415_v53  ;;  %5903 = vmatprep.mubr.msk.bf16.mxu1 %vm6656_vm5, %v6655_v16 }
 0x369   : > { %5794 = vmatpush3.bf16.msra.mxu0 %v6416_v59  ;;  %5889 = vmatprep.subr.bf16.mxu1 %v6655_v16 }
 0x36a   : > { %5795 = vmatprep.subr.bf16.mxu0 %v6655_v16 }
 0x36c   : > { %5890 = vmatpush3.bf16.msra.mxu1 %v6417_v14  ;;  %v6455_v14 = vld [vmem:[%s8154_s5 + $0x460] sm:$0xff]  }
 0x36d   : > { %5796 = vmatpush3.bf16.msra.mxu0 %v6418_v15  ;;  %5891 = vmatprep.subr.bf16.mxu1 %v6655_v16 }
 0x36e   : > { %5797 = vmatprep.subr.bf16.mxu0 %v6655_v16 }
 0x370   : > { %5892 = vmatpush3.bf16.msra.mxu1 %v6419_v17 }
 0x371   : > { %5798 = vmatpush3.bf16.msra.mxu0 %v6420_v18  ;;  %5893 = vmatprep.subr.bf16.mxu1 %v6655_v16 }
 0x372   : > { %5799 = vmatprep.subr.bf16.mxu0 %v6655_v16 }
 0x374   : > { %5894 = vmatpush3.bf16.msra.mxu1 %v6421_v57  ;;  %v6456_v57 = vld [vmem:[%s8154_s5 + $0x338] sm:$0xff]  }
 0x375   : > { %5800 = vmatpush3.bf16.msra.mxu0 %v6422_v19  ;;  %5895 = vmatprep.subr.bf16.mxu1 %v6655_v16 }
 0x376   : > { %5801 = vmatprep.subr.bf16.mxu0 %v6655_v16 }
 0x378   : > { %5896 = vmatpush3.bf16.msra.mxu1 %v6423_v20  ;;  %v2296_v20 = vld [vmem:[#allocation3 + $0xc] sm:$0x1] }
 0x379   : > { %5802 = vmatpush3.bf16.msra.mxu0 %v6424_v21  ;;  %5897 = vmatprep.subr.bf16.mxu1 %v6655_v16  ;;  %v6457_v21 = vld [vmem:[%s8154_s5 + $0x468] sm:$0xff]  }
 0x37a   : > { %5827 = vmatprep.subr.bf16.mxu0 %v6655_v16 }
 0x37c   : > { %5804 = vmatmul.mubr.bf16.vlgmr.msra.gmra.mrb[36].mxu0 %v1865_v27  ;;  %5898 = vmatpush3.bf16.msra.mxu1 %v6425_v24 }
 0x37d   : > { %5828 = vmatpush3.bf16.msra.mxu0 %v6426_v25  ;;  %5899 = vmatprep.subr.bf16.mxu1 %v6655_v16  ;;  %v2297_v25 = vpack.c.bf16 %v2296_v20, %v2296_v20  ;;  %v6487_v20 = vld [vmem:[%s8154_s5 + $0x560] sm:$0xff]  }
 0x37e   : > { %5829 = vmatprep.subr.bf16.mxu0 %v6655_v16  ;;  %5843 = vmatprep.mubr.msk.bf16.mxu0 %vm6656_vm5, %v6655_v16 }
 0x380   : > { %5900 = vmatpush3.bf16.msra.mxu1 %v6427_v28 }
 0x381   : > { %5830 = vmatpush3.bf16.msra.mxu0 %v6428_v29  ;;  %5901 = vmatprep.subr.bf16.mxu1 %v6655_v16  ;;  %v6459_v29 = vld [vmem:[%s8154_s5 + $0x470] sm:$0xff]  }
 0x382   : > { %5831 = vmatprep.subr.bf16.mxu0 %v6655_v16 }
 0x384   : > { %5902 = vmatpush3.bf16.msra.mxu1 %v6429_v30 }
 0x385   : > { %5832 = vmatpush3.bf16.msra.mxu0 %v6430_v31  ;;  %5927 = vmatprep.subr.bf16.mxu1 %v6655_v16  ;;  %v6460_v31 = vld [vmem:[%s8154_s5 + $0x388] sm:$0xff]  }
 0x386   : > { %5833 = vmatprep.subr.bf16.mxu0 %v6655_v16 }
 0x387   : > { %5904 = vmatmul.mubr.bf16.vlgmr.msra.gmra.mrb[52].mxu1 %v2405_v34 }
 0x388   : > { %5928 = vmatpush3.bf16.msra.mxu1 %v6431_v33  ;;  %5943 = vmatprep.mubr.msk.bf16.mxu1 %vm6656_vm5, %v6655_v16  ;;  %v6462_v33 = vld [vmem:[%s8154_s5 + $0x390] sm:$0xff]  }
 0x389   : > { %5834 = vmatpush3.bf16.msra.mxu0 %v6432_v35  ;;  %5929 = vmatprep.subr.bf16.mxu1 %v6655_v16 }
 0x38a   : > { %5835 = vmatprep.subr.bf16.mxu0 %v6655_v16 }
 0x38c   : > { %5930 = vmatpush3.bf16.msra.mxu1 %v6433_v38 }
 0x38d   : > { %5836 = vmatpush3.bf16.msra.mxu0 %v6434_v39  ;;  %5931 = vmatprep.subr.bf16.mxu1 %v6655_v16 }
 0x38e   : > { %5837 = vmatprep.subr.bf16.mxu0 %v6655_v16 }
 0x390   : > { %5932 = vmatpush3.bf16.msra.mxu1 %v6435_v40 }
 0x391   : > { %5838 = vmatpush3.bf16.msra.mxu0 %v6436_v41  ;;  %5933 = vmatprep.subr.bf16.mxu1 %v6655_v16  ;;  %v2836_v41 = vld [vmem:[#allocation3 + $0x11] sm:$0x1] }
 0x392   : > { %5839 = vmatprep.subr.bf16.mxu0 %v6655_v16 }
 0x394   : > { %5934 = vmatpush3.bf16.msra.mxu1 %v6437_v42 }
 0x395   : > { %5840 = vmatpush3.bf16.msra.mxu0 %v6438_v43  ;;  %5935 = vmatprep.subr.bf16.mxu1 %v6655_v16  ;;  %v6463_v43 = vld [vmem:[%s8154_s5 + $0x4c0] sm:$0xff]  }
 0x396   : > { %5841 = vmatprep.subr.bf16.mxu0 %v6655_v16 }
 0x398   : > { %5936 = vmatpush3.bf16.msra.mxu1 %v6439_v44  ;;  %v2837_v44 = vpack.c.bf16 %v2836_v41, %v2836_v41  ;;  %v6496_v41 = vld [vmem:[%s8154_s5 + $0x498] sm:$0xff]  }
 0x399   : > { %5842 = vmatpush3.bf16.msra.mxu0 %v6440_v45  ;;  %5937 = vmatprep.subr.bf16.mxu1 %v6655_v16  ;;  %v6464_v45 = vld [vmem:[%s8154_s5 + $0x398] sm:$0xff]  }
 0x39a   : > { %5867 = vmatprep.subr.bf16.mxu0 %v6655_v16 }
 0x39c   : > { %5844 = vmatmul.mubr.bf16.vlgmr.msra.gmra.mrb[40].mxu0 %v2081_v51  ;;  %5938 = vmatpush3.bf16.msra.mxu1 %v6441_v47  ;;  %v6466_v47 = vld [vmem:[%s8154_s5 + $0x3a0] sm:$0xff]   ;;  %v6468_v51 = vld [vmem:[%s8154_s5 + $0x3a8] sm:$0xff]  }
 0x39d   : > { %5868 = vmatpush3.bf16.msra.mxu0 %v6442_v48  ;;  %5939 = vmatprep.subr.bf16.mxu1 %v6655_v16  ;;  %v6467_v48 = vld [vmem:[%s8154_s5 + $0x4d0] sm:$0xff]  }
 0x39e   : > { %5869 = vmatprep.subr.bf16.mxu0 %v6655_v16  ;;  %5883 = vmatprep.mubr.msk.bf16.mxu0 %vm6656_vm5, %v6655_v16 }
 0x3a0   : > { %5940 = vmatpush3.bf16.msra.mxu1 %v6443_v52 }
 0x3a1   : > { %5870 = vmatpush3.bf16.msra.mxu0 %v6444_v23  ;;  %5941 = vmatprep.subr.bf16.mxu1 %v6655_v16 }
 0x3a2   : > { %5871 = vmatprep.subr.bf16.mxu0 %v6655_v16 }
 0x3a4   : > { %5942 = vmatpush3.bf16.msra.mxu1 %v6445_v54 }
 0x3a5   : > { %5872 = vmatpush3.bf16.msra.mxu0 %v6446_v55  ;;  %5967 = vmatprep.subr.bf16.mxu1 %v6655_v16  ;;  %v6469_v55 = vld [vmem:[%s8154_s5 + $0x4d8] sm:$0xff]  }
 0x3a6   : > { %5873 = vmatprep.subr.bf16.mxu0 %v6655_v16 }
 0x3a7   : > { %5944 = vmatmul.mubr.bf16.vlgmr.msra.gmra.mrb[56].mxu1 %v2621_v56 }
 0x3a8   : > { %5968 = vmatpush3.bf16.msra.mxu1 %v6447_v13  ;;  %5983 = vmatprep.mubr.msk.bf16.mxu1 %vm6656_vm5, %v6655_v16  ;;  %v6470_v13 = vld [vmem:[%s8154_s5 + $0x3b0] sm:$0xff]  }
 0x3a9   : > { %5874 = vmatpush3.bf16.msra.mxu0 %v6448_v58  ;;  %5969 = vmatprep.subr.bf16.mxu1 %v6655_v16  ;;  %v6471_v58 = vld [vmem:[%s8154_s5 + $0x4e0] sm:$0xff]  }
 0x3aa   : > { %v889_v62 = vpop.f32.mrb[24].mxu1  ;;  %5875 = vmatprep.subr.bf16.mxu0 %v6655_v16 }
 0x3ab   : > { %v890_v63 = vadd.f32 %v6960_v26, %v889_v62  ;;  %v891_v0 = vpop.f32.mrb[25].mxu1  ;;  %v6473_v62 = vld [vmem:[%s8154_s5 + $0x4e8] sm:$0xff]  }
 0x3ac   : > { %5970 = vmatpush3.bf16.msra.mxu1 %v6449_v49  ;;  %v892_v1 = vpop.f32.mrb[26].mxu1  ;;  %v6472_v49 = vld [vmem:[%s8154_s5 + $0x3b8] sm:$0xff]  }
 0x3ad   : > { %v916_v3 = vmax.f32 %v890_v63, 0.0  ;;  %v893_v4 = vadd.f32 %v6960_v26, %v892_v1  ;;  %5876 = vmatpush3.bf16.msra.mxu0 %v6450_v61  ;;  %v894_v37 = vpop.f32.mrb[27].mxu1  ;;  %5971 = vmatprep.subr.bf16.mxu1 %v6655_v16  ;;  %v6453_v26 = vld [vmem:[%s8154_s5 + $0x458] sm:$0xff]   ;;  %v2512_v61 = vld [vmem:[#allocation3 + $0xe] sm:$0x1]  ;;  %v6474_v63 = vld [vmem:[%s8154_s5 + $0x400] sm:$0xff]  }
 0x3ae   : > { %5877 = vmatprep.subr.bf16.mxu0 %v6655_v16  ;;  %v2513_v1 = vpack.c.bf16 %v2512_v61, %v2512_v61 }
 0x3af   : > { %932 = vst.msk [vmem:[#allocation2 + $0x60] sm:$0xff] %vm680_vm3, %v916_v3  ;;  %v917_v36 = vmax.f32 %v893_v4, 0.0  ;;  %v7488_v7 = vpop.f32.mrb[16].mxu0  ;;  %v6475_v4 = vld [vmem:[%s8154_s5 + $0x4f0] sm:$0xff]  }
 0x3b0   : > { %5972 = vmatpush3.bf16.msra.mxu1 %v6451_v2  ;;  %v5645_v8 = vpop.f32.mrb[17].mxu0 }
 0x3b1   : > { %933 = vst.msk [vmem:[#allocation2 + $0x68] sm:$0xff] %vm680_vm3, %v917_v36  ;;  %5878 = vmatpush3.bf16.msra.mxu0 %v6452_v5  ;;  %v1125_v6 = vpop.f32.mrb[18].mxu0  ;;  %5973 = vmatprep.subr.bf16.mxu1 %v6655_v16  ;;  %v6476_v5 = vld [vmem:[%s8154_s5 + $0x408] sm:$0xff]   ;;  %v6477_v36 = vld [vmem:[%s8154_s5 + $0x4f8] sm:$0xff]   ;;  %v3052_v8 = vld [vmem:[#allocation3 + $0x13] sm:$0x1] }
 0x3b2   : > { %v897_v10 = vpop.f32.mrb[28].mxu1  ;;  %v5646_v60 = vpop.f32.mrb[19].mxu0  ;;  %5879 = vmatprep.subr.bf16.mxu0 %v6655_v16  ;;  %v3053_v6 = vpack.c.bf16 %v3052_v8, %v3052_v8  ;;  %v6512_v8 = vld [vmem:[%s8154_s5 + $0x518] sm:$0xff]  }
 0x3b3   : > { %v898_v53 = vadd.f32 %v6588_v11, %v897_v10  ;;  %v899_v12 = vpop.f32.mrb[29].mxu1  ;;  %v6481_v10 = vld [vmem:[%s8154_s5 + $0x548] sm:$0xff]   ;;  %v6482_v60 = vld [vmem:[%s8154_s5 + $0x420] sm:$0xff]  }
 0x3b4   : > { %5974 = vmatpush3.bf16.msra.mxu1 %v6453_v26  ;;  %v900_v59 = vpop.f32.mrb[30].mxu1  ;;  %v6479_v26 = vld [vmem:[%s8154_s5 + $0x540] sm:$0xff]  }
 0x3b5   : > { %v918_v15 = vmax.f32 %v898_v53, 0.0  ;;  %v901_v17 = vadd.f32 %v6588_v11, %v900_v59  ;;  %5880 = vmatpush3.bf16.msra.mxu0 %v6454_v9  ;;  %v902_v18 = vpop.f32.mrb[31].mxu1  ;;  %5975 = vmatprep.subr.bf16.mxu1 %v6655_v16  ;;  %v6480_v9 = vld [vmem:[%s8154_s5 + $0x418] sm:$0xff]   ;;  %v6483_v11 = vld [vmem:[%s8154_s5 + $0x550] sm:$0xff]   ;;  %v6484_v53 = vld [vmem:[%s8154_s5 + $0x428] sm:$0xff]  }
 0x3b6   : > { %5881 = vmatprep.subr.bf16.mxu0 %v6655_v16  ;;  %v6486_v18 = vld [vmem:[%s8154_s5 + $0x430] sm:$0xff]  }
 0x3b7   : > { %934 = vst.msk [vmem:[#allocation2 + $0x70] sm:$0xff] %vm680_vm3, %v918_v15  ;;  %v919_v19 = vmax.f32 %v901_v17, 0.0  ;;  %v6485_v15 = vld [vmem:[%s8154_s5 + $0x558] sm:$0xff]  }
 0x3b8   : > { %5976 = vmatpush3.bf16.msra.mxu1 %v6455_v14 }
 0x3b9   : > { %936 = vst.msk [vmem:[#allocation2 + $0x78] sm:$0xf] %vm935_vm7, %v919_v19  ;;  %5882 = vmatpush3.bf16.msra.mxu0 %v6456_v57  ;;  %5977 = vmatprep.subr.bf16.mxu1 %v6655_v16 }
 0x3ba   : > { %v7518_v24 = vpop.f32.mrb[32].mxu1  ;;  %5907 = vmatprep.subr.bf16.mxu0 %v6655_v16 }
 0x3bb   : > { %v5705_v27 = vpop.f32.mrb[33].mxu1 }
 0x3bc   : > { %5884 = vmatmul.mubr.bf16.vlgmr.msra.gmra.mrb[44].mxu0 %v2297_v25  ;;  %5978 = vmatpush3.bf16.msra.mxu1 %v6457_v21  ;;  %v1428_v28 = vpop.f32.mrb[34].mxu1  ;;  %v6488_v21 = vld [vmem:[%s8154_s5 + $0x438] sm:$0xff]   ;;  %v6490_v25 = vld [vmem:[%s8154_s5 + $0x480] sm:$0xff]  }
 0x3bd   : > { %5908 = vmatpush3.bf16.msra.mxu0 %v6458_v22  ;;  %v5706_v30 = vpop.f32.mrb[35].mxu1  ;;  %5979 = vmatprep.subr.bf16.mxu1 %v6655_v16  ;;  %v2728_v22 = vld [vmem:[#allocation3 + $0x10] sm:$0x1] }
 0x3be   : > { %5909 = vmatprep.subr.bf16.mxu0 %v6655_v16  ;;  %5923 = vmatprep.mubr.msk.bf16.mxu0 %vm6656_vm5, %v6655_v16  ;;  %v2729_v28 = vpack.c.bf16 %v2728_v22, %v2728_v22  ;;  %v6522_v22 = vld [vmem:[%s8154_s5 + $0x580] sm:$0xff]  }
 0x3c0   : > { %5980 = vmatpush3.bf16.msra.mxu1 %v6459_v29  ;;  %v959_v34 = vld [vmem:[#allocation2 + $0x62] ss:$4 sm:$0x7f]  ;;  %v967_v35 = vld [vmem:[#allocation2 + $0x63] ss:$4 sm:$0x7f] }
 0x3c1   : > { %5910 = vmatpush3.bf16.msra.mxu0 %v6460_v31  ;;  %5981 = vmatprep.subr.bf16.mxu1 %v6655_v16  ;;  %v980_v38 = vmax.f32 %v959_v34, %v967_v35  ;;  %v943_v39 = vld [vmem:[#allocation2 + $0x60] ss:$4 sm:$0x7f]  ;;  %v951_v40 = vld [vmem:[#allocation2 + $0x61] ss:$4 sm:$0x7f] }
 0x3c2   : > { %5911 = vmatprep.subr.bf16.mxu0 %v6655_v16  ;;  %v971_v42 = vmax.f32 %v943_v39, %v951_v40  ;;  %v6491_v31 = vld [vmem:[%s8154_s5 + $0x570] sm:$0xff]   ;;  %v6493_v34 = vld [vmem:[%s8154_s5 + $0x578] sm:$0xff]   ;;  %v6495_v39 = vld [vmem:[%s8154_s5 + $0x5c0] sm:$0xff]  }
 0x3c3   : > { %991 = vrot.lane.b32.xlu1 %v980_v38, %s6654_s14  ;;  %v6494_v35 = vld [vmem:[%s8154_s5 + $0x490] sm:$0xff]   ;;  %s4472_s14 = sshll.u32 %s324_s25, 4  ;;  %s8109_s14 = int_to_ptr.vmem [resolvable:$true] %s4472_s14 }
 0x3c4   : > { %5982 = vmatpush3.bf16.msra.mxu1 %v6461_v32  ;;  %976 = vst.msk [vmem:[#allocation3 + $0x18] sm:$0x7f] %vm975_vm8, %v971_v42  ;;  %v3268_v38 = vld [vmem:[#allocation3 + $0x15] sm:$0x1]  ;;  %v6497_v42 = vld [vmem:[%s8154_s5 + $0x5c8] sm:$0xff]   ;;  %s6589_s13 = scalar_lea.vmem %s8109_s14, 16  ;;  %p6596_p0 = scmp.lt.s32.totalorder %s8109_s14, %s6594_s17 }
 0x3c5   : > { %5912 = vmatpush3.bf16.msra.mxu0 %v6462_v33  ;;  %6007 = vmatprep.subr.bf16.mxu1 %v6655_v16  ;;  %v6492_v33 = vld [vmem:[%s8154_s5 + $0x488] sm:$0xff]   ;;  %v3269_v40 = vpack.c.bf16 %v3268_v38, %v3268_v38  ;;  %p6590_p11 = scmp.ne.s32.totalorder %s8109_s14, %s6589_s13  ;;  %p6597_p1 = scmp.lt.s32.totalorder %s6595_s22, %s6589_s13 }
 0x3c6   : > { %5913 = vmatprep.subr.bf16.mxu0 %v6655_v16 }
 0x3c7   : > { %5984 = vmatmul.mubr.bf16.vlgmr.msra.gmra.mrb[60].mxu1 %v2837_v44  ;;  %v6499_v44 = vld [vmem:[%s8154_s5 + $0x5d0] sm:$0xff]   ;;  %p6591_p12 = pnand %p6590_p11, %p6746_p5  ;;  %p6598_p2 = por %p6597_p1, %p6596_p0 }
 0x3c8   : > { %6008 = vmatpush3.bf16.msra.mxu1 %v6463_v43  ;;  %6023 = vmatprep.mubr.msk.bf16.mxu1 %vm6656_vm5, %v6655_v16  ;;  %v6498_v43 = vld [vmem:[%s8154_s5 + $0x4a0] sm:$0xff]  }
 0x3c9   : > { %5914 = vmatpush3.bf16.msra.mxu0 %v6464_v45  ;;  %6009 = vmatprep.subr.bf16.mxu1 %v6655_v16  ;;  %v6500_v45 = vld [vmem:[%s8154_s5 + $0x4a8] sm:$0xff]   ;;  %p6592_p13 = pneg %p6591_p12 }
 0x3ca   : > { %5915 = vmatprep.subr.bf16.mxu0 %v6655_v16 }
 0x3cb   : > { %p6599_p3 = pnand %p6598_p2, %p6592_p13 }
 0x3cc   : > { %6010 = vmatpush3.bf16.msra.mxu1 %v6465_v46 }
 0x3cd   : > { %5916 = vmatpush3.bf16.msra.mxu0 %v6466_v47  ;;  %6011 = vmatprep.subr.bf16.mxu1 %v6655_v16 }
 0x3ce   : > { %5917 = vmatprep.subr.bf16.mxu0 %v6655_v16 }
 0x3cf   : > { %v1210_v52 = vpop.f32.mrb[20].mxu0 }
 0x3d0   : > { %v7567_v23 = vadd.f32 %v1210_v52, %v7488_v7  ;;  %v5665_v54 = vpop.f32.mrb[21].mxu0  ;;  %6012 = vmatpush3.bf16.msra.mxu1 %v6467_v48  ;;  %v6478_v7 = vld [vmem:[%s8154_s5 + $0x410] sm:$0xff]  }
 0x3d1   : > { %v1213_v50 = vpop.f32.mrb[22].mxu0  ;;  %5918 = vmatpush3.bf16.msra.mxu0 %v6468_v51  ;;  %6013 = vmatprep.subr.bf16.mxu1 %v6655_v16  ;;  %v6501_v51 = vld [vmem:[%s8154_s5 + $0x5d8] sm:$0xff]  }
 0x3d2   : > { %v5666_v56 = vpop.f32.mrb[23].mxu0  ;;  %5919 = vmatprep.subr.bf16.mxu0 %v6655_v16  ;;  %v6503_v50 = vld [vmem:[%s8154_s5 + $0x5e0] sm:$0xff]  }
 0x3d3   : > { %v2944_v56 = vld [vmem:[#allocation3 + $0x12] sm:$0x1] }
 0x3d4   : > { %6014 = vmatpush3.bf16.msra.mxu1 %v6469_v55 }
 0x3d5   : > { %5920 = vmatpush3.bf16.msra.mxu0 %v6470_v13  ;;  %6015 = vmatprep.subr.bf16.mxu1 %v6655_v16  ;;  %v6504_v13 = vld [vmem:[%s8154_s5 + $0x4b8] sm:$0xff]  }
 0x3d6   : > { %5921 = vmatprep.subr.bf16.mxu0 %v6655_v16 }
 0x3d8   : > { %6016 = vmatpush3.bf16.msra.mxu1 %v6471_v58  ;;  %v6505_v58 = vld [vmem:[%s8154_s5 + $0x5e8] sm:$0xff]  }
 0x3d9   : > { %5922 = vmatpush3.bf16.msra.mxu0 %v6472_v49  ;;  %6017 = vmatprep.subr.bf16.mxu1 %v6655_v16  ;;  %v6506_v49 = vld [vmem:[%s8154_s5 + $0x500] sm:$0xff]  }
 0x3da   : > { %v7592_v0 = vpop.f32.mrb[36].mxu1  ;;  %5947 = vmatprep.subr.bf16.mxu0 %v6655_v16 }
 0x3db   : > { %v5745_v2 = vpop.f32.mrb[37].mxu1 }
 0x3dc   : > { %v1644_v3 = vpop.f32.mrb[38].mxu1  ;;  %5924 = vmatmul.mubr.bf16.vlgmr.msra.gmra.mrb[48].mxu0 %v2513_v1  ;;  %6018 = vmatpush3.bf16.msra.mxu1 %v6473_v62  ;;  %v2945_v62 = vpack.c.bf16 %v2944_v56, %v2944_v56  ;;  %v6507_v1 = vld [vmem:[%s8154_s5 + $0x5f0] sm:$0xff]   ;;  %v6538_v56 = vld [vmem:[%s8154_s5 + $0x600] sm:$0xff]  }
 0x3dd   : > { %v5746_v37 = vpop.f32.mrb[39].mxu1  ;;  %5948 = vmatpush3.bf16.msra.mxu0 %v6474_v63  ;;  %6019 = vmatprep.subr.bf16.mxu1 %v6655_v16  ;;  %v6508_v3 = vld [vmem:[%s8154_s5 + $0x508] sm:$0xff]  }
 0x3de   : > { %5949 = vmatprep.subr.bf16.mxu0 %v6655_v16  ;;  %5963 = vmatprep.mubr.msk.bf16.mxu0 %vm6656_vm5, %v6655_v16  ;;  %v6510_v37 = vld [vmem:[%s8154_s5 + $0x510] sm:$0xff]  }
 0x3e0   : > { %6020 = vmatpush3.bf16.msra.mxu1 %v6475_v4  ;;  %v6509_v4 = vld [vmem:[%s8154_s5 + $0x5f8] sm:$0xff]  }
 0x3e1   : > { %5950 = vmatpush3.bf16.msra.mxu0 %v6476_v5  ;;  %6021 = vmatprep.subr.bf16.mxu1 %v6655_v16  ;;  %v3484_v5 = vld [vmem:[#allocation3 + $0x17] sm:$0x1] }
 0x3e2   : > { %5951 = vmatprep.subr.bf16.mxu0 %v6655_v16 }
 0x3e4   : > { %6022 = vmatpush3.bf16.msra.mxu1 %v6477_v36  ;;  %v6511_v36 = vld [vmem:[%s8154_s5 + $0x640] sm:$0xff]  }
 0x3e5   : > { %5952 = vmatpush3.bf16.msra.mxu0 %v6478_v7  ;;  %6047 = vmatprep.subr.bf16.mxu1 %v6655_v16  ;;  %v3485_v7 = vpack.c.bf16 %v3484_v5, %v3484_v5 }
 0x3e6   : > { %5953 = vmatprep.subr.bf16.mxu0 %v6655_v16 }
 0x3e7   : > { %6024 = vmatmul.mubr.bf16.vlgmr.msra.gmra.mrb[64].mxu1 %v3053_v6  ;;  %v6514_v6 = vld [vmem:[%s8154_s5 + $0x520] sm:$0xff]  }
 0x3e8   : > { %6048 = vmatpush3.bf16.msra.mxu1 %v6479_v26  ;;  %6063 = vmatprep.mubr.msk.bf16.mxu1 %vm6656_vm5, %v6655_v16  ;;  %v6513_v26 = vld [vmem:[%s8154_s5 + $0x648] sm:$0xff]  }
 0x3e9   : > { %5954 = vmatpush3.bf16.msra.mxu0 %v6480_v9  ;;  %6049 = vmatprep.subr.bf16.mxu1 %v6655_v16  ;;  %v6515_v9 = vld [vmem:[%s8154_s5 + $0x650] sm:$0xff]  }
 0x3ea   : > { %5955 = vmatprep.subr.bf16.mxu0 %v6655_v16 }
 0x3ec   : > { %6050 = vmatpush3.bf16.msra.mxu1 %v6481_v10  ;;  %v6516_v10 = vld [vmem:[%s8154_s5 + $0x528] sm:$0xff]  }
 0x3ed   : > { %5956 = vmatpush3.bf16.msra.mxu0 %v6482_v60  ;;  %6051 = vmatprep.subr.bf16.mxu1 %v6655_v16 }
 0x3ee   : > { %5957 = vmatprep.subr.bf16.mxu0 %v6655_v16 }
 0x3ef   : > { %v1317_v12 = vpop.f32.mrb[24].mxu0 }
 0x3f0   : > { %v1323_v59 = vadd.f32 %v1317_v12, %v7567_v23  ;;  %v5685_v14 = vpop.f32.mrb[25].mxu0  ;;  %6052 = vmatpush3.bf16.msra.mxu1 %v6483_v11  ;;  %v6502_v23 = vld [vmem:[%s8154_s5 + $0x4b0] sm:$0xff]   ;;  %v6517_v12 = vld [vmem:[%s8154_s5 + $0x658] sm:$0xff]  }
 0x3f1   : > { %v1320_v17 = vpop.f32.mrb[26].mxu0  ;;  %5958 = vmatpush3.bf16.msra.mxu0 %v6484_v53  ;;  %6053 = vmatprep.subr.bf16.mxu1 %v6655_v16  ;;  %v6518_v14 = vld [vmem:[%s8154_s5 + $0x530] sm:$0xff]  }
 0x3f2   : > { %v5686_v57 = vpop.f32.mrb[27].mxu0  ;;  %5959 = vmatprep.subr.bf16.mxu0 %v6655_v16  ;;  %v1431_v19 = vadd.f32 %v7518_v24, %v1323_v59  ;;  %v6489_v24 = vld [vmem:[%s8154_s5 + $0x568] sm:$0xff]  }
 0x3f4   : > { %6054 = vmatpush3.bf16.msra.mxu1 %v6485_v15 }
 0x3f5   : > { %5960 = vmatpush3.bf16.msra.mxu0 %v6486_v18  ;;  %6055 = vmatprep.subr.bf16.mxu1 %v6655_v16  ;;  %v6519_v18 = vld [vmem:[%s8154_s5 + $0x660] sm:$0xff]  }
 0x3f6   : > { %5961 = vmatprep.subr.bf16.mxu0 %v6655_v16 }
 0x3f8   : > { %6056 = vmatpush3.bf16.msra.mxu1 %v6487_v20  ;;  %v3160_v20 = vld [vmem:[#allocation3 + $0x14] sm:$0x1] }
 0x3f9   : > { %5962 = vmatpush3.bf16.msra.mxu0 %v6488_v21  ;;  %6057 = vmatprep.subr.bf16.mxu1 %v6655_v16  ;;  %v6521_v21 = vld [vmem:[%s8154_s5 + $0x668] sm:$0xff]  }
 0x3fa   : > { %v7664_v27 = vpop.f32.mrb[40].mxu1  ;;  %5987 = vmatprep.subr.bf16.mxu0 %v6655_v16 }
 0x3fb   : > { %v5785_v29 = vpop.f32.mrb[41].mxu1 }
 0x3fc   : > { %v1860_v30 = vpop.f32.mrb[42].mxu1  ;;  %5964 = vmatmul.mubr.bf16.vlgmr.msra.gmra.mrb[52].mxu0 %v2729_v28  ;;  %6058 = vmatpush3.bf16.msra.mxu1 %v6489_v24  ;;  %v6523_v29 = vld [vmem:[%s8154_s5 + $0x670] sm:$0xff]  }
 0x3fd   : > { %v5786_v32 = vpop.f32.mrb[43].mxu1  ;;  %5988 = vmatpush3.bf16.msra.mxu0 %v6490_v25  ;;  %6059 = vmatprep.subr.bf16.mxu1 %v6655_v16  ;;  %v3161_v25 = vpack.c.bf16 %v3160_v20, %v3160_v20 }
 0x3fe   : > { %5989 = vmatprep.subr.bf16.mxu0 %v6655_v16  ;;  %6003 = vmatprep.mubr.msk.bf16.mxu0 %vm6656_vm5, %v6655_v16  ;;  %v6525_v32 = vld [vmem:[%s8154_s5 + $0x678] sm:$0xff]  }
 0x400   : > { %6060 = vmatpush3.bf16.msra.mxu1 %v6491_v31  ;;  %v6524_v31 = vld [vmem:[%s8154_s5 + $0x588] sm:$0xff]  }
 0x401   : > { %5990 = vmatpush3.bf16.msra.mxu0 %v6492_v33  ;;  %6061 = vmatprep.subr.bf16.mxu1 %v6655_v16  ;;  %v6526_v33 = vld [vmem:[%s8154_s5 + $0x590] sm:$0xff]  }
 0x402   : > { %5991 = vmatprep.subr.bf16.mxu0 %v6655_v16 }
 0x404   : > { %6062 = vmatpush3.bf16.msra.mxu1 %v6493_v34 }
 0x405   : > { %5992 = vmatpush3.bf16.msra.mxu0 %v6494_v35  ;;  %6087 = vmatprep.subr.bf16.mxu1 %v6655_v16  ;;  %v6527_v35 = vld [vmem:[%s8154_s5 + $0x6c0] sm:$0xff]  }
 0x406   : > { %5993 = vmatprep.subr.bf16.mxu0 %v6655_v16 }
 0x407   : > { %6064 = vmatmul.mubr.bf16.vlgmr.msra.gmra.mrb[68].mxu1 %v3269_v40  ;;  %v6529_v40 = vld [vmem:[%s8154_s5 + $0x6c8] sm:$0xff]  }
 0x408   : > { %6088 = vmatpush3.bf16.msra.mxu1 %v6495_v39  ;;  %6103 = vmatprep.mubr.msk.bf16.mxu1 %vm6656_vm5, %v6655_v16  ;;  %v6528_v39 = vld [vmem:[%s8154_s5 + $0x598] sm:$0xff]  }
 0x409   : > { %5994 = vmatpush3.bf16.msra.mxu0 %v6496_v41  ;;  %6089 = vmatprep.subr.bf16.mxu1 %v6655_v16  ;;  %v6530_v41 = vld [vmem:[%s8154_s5 + $0x5a0] sm:$0xff]  }
 0x40a   : > { %5995 = vmatprep.subr.bf16.mxu0 %v6655_v16 }
 0x40c   : > { %6090 = vmatpush3.bf16.msra.mxu1 %v6497_v42  ;;  %v6531_v42 = vld [vmem:[%s8154_s5 + $0x6d0] sm:$0xff]  }
 0x40d   : > { %5996 = vmatpush3.bf16.msra.mxu0 %v6498_v43  ;;  %6091 = vmatprep.subr.bf16.mxu1 %v6655_v16  ;;  %v6532_v43 = vld [vmem:[%s8154_s5 + $0x5a8] sm:$0xff]  }
 0x40e   : > { %5997 = vmatprep.subr.bf16.mxu0 %v6655_v16 }
 0x40f   : > { %v1533_v46 = vpop.f32.mrb[28].mxu0 }
 0x410   : > { %v1539_v47 = vadd.f32 %v1533_v46, %v1431_v19  ;;  %v5725_v48 = vpop.f32.mrb[29].mxu0  ;;  %6092 = vmatpush3.bf16.msra.mxu1 %v6499_v44  ;;  %v6520_v19 = vld [vmem:[%s8154_s5 + $0x538] sm:$0xff]  }
 0x411   : > { %v1536_v52 = vpop.f32.mrb[30].mxu0  ;;  %5998 = vmatpush3.bf16.msra.mxu0 %v6500_v45  ;;  %6093 = vmatprep.subr.bf16.mxu1 %v6655_v16 }
 0x412   : > { %v5726_v54 = vpop.f32.mrb[31].mxu0  ;;  %5999 = vmatprep.subr.bf16.mxu0 %v6655_v16  ;;  %v1647_v55 = vadd.f32 %v7592_v0, %v1539_v47  ;;  %v6533_v47 = vld [vmem:[%s8154_s5 + $0x6d8] sm:$0xff]  }
 0x413   : > { %v6535_v54 = vld [vmem:[%s8154_s5 + $0x6e0] sm:$0xff]  }
 0x414   : > { %6094 = vmatpush3.bf16.msra.mxu1 %v6501_v51  ;;  %v6534_v51 = vld [vmem:[%s8154_s5 + $0x5b0] sm:$0xff]  }
 0x415   : > { %6000 = vmatpush3.bf16.msra.mxu0 %v6502_v23  ;;  %6095 = vmatprep.subr.bf16.mxu1 %v6655_v16 }
 0x416   : > { %6001 = vmatprep.subr.bf16.mxu0 %v6655_v16 }
 0x418   : > { %6096 = vmatpush3.bf16.msra.mxu1 %v6503_v50  ;;  %v3376_v50 = vld [vmem:[#allocation3 + $0x16] sm:$0x1] }
 0x419   : > { %6002 = vmatpush3.bf16.msra.mxu0 %v6504_v13  ;;  %6097 = vmatprep.subr.bf16.mxu1 %v6655_v16  ;;  %v6537_v13 = vld [vmem:[%s8154_s5 + $0x6e8] sm:$0xff]  }
 0x41a   : > { %v7735_v61 = vpop.f32.mrb[44].mxu1  ;;  %6027 = vmatprep.subr.bf16.mxu0 %v6655_v16 }
 0x41b   : > { %v5825_v63 = vpop.f32.mrb[45].mxu1 }
 0x41c   : > { %v2076_v0 = vpop.f32.mrb[46].mxu1  ;;  %6004 = vmatmul.mubr.bf16.vlgmr.msra.gmra.mrb[56].mxu0 %v2945_v62  ;;  %6098 = vmatpush3.bf16.msra.mxu1 %v6505_v58  ;;  %v6539_v63 = vld [vmem:[%s8154_s5 + $0x6f0] sm:$0xff]  }
 0x41d   : > { %v5826_v2 = vpop.f32.mrb[47].mxu1  ;;  %6028 = vmatpush3.bf16.msra.mxu0 %v6506_v49  ;;  %6099 = vmatprep.subr.bf16.mxu1 %v6655_v16  ;;  %v3377_v49 = vpack.c.bf16 %v3376_v50, %v3376_v50  ;;  %v6566_v50 = vld [vmem:[%s8154_s5 + $0x710] sm:$0xff]  }
 0x41e   : > { %6029 = vmatprep.subr.bf16.mxu0 %v6655_v16  ;;  %6043 = vmatprep.mubr.msk.bf16.mxu0 %vm6656_vm5, %v6655_v16  ;;  %v6541_v2 = vld [vmem:[%s8154_s5 + $0x6f8] sm:$0xff]  }
 0x420   : > { %6100 = vmatpush3.bf16.msra.mxu1 %v6507_v1  ;;  %v6540_v1 = vld [vmem:[%s8154_s5 + $0x608] sm:$0xff]  }
 0x421   : > { %6030 = vmatpush3.bf16.msra.mxu0 %v6508_v3  ;;  %6101 = vmatprep.subr.bf16.mxu1 %v6655_v16  ;;  %v6542_v3 = vld [vmem:[%s8154_s5 + $0x610] sm:$0xff]  }
 0x422   : > { %6031 = vmatprep.subr.bf16.mxu0 %v6655_v16 }
 0x424   : > { %6102 = vmatpush3.bf16.msra.mxu1 %v6509_v4 }
 0x425   : > { %6032 = vmatpush3.bf16.msra.mxu0 %v6510_v37  ;;  %6127 = vmatprep.subr.bf16.mxu1 %v6655_v16  ;;  %v6543_v37 = vld [vmem:[%s8154_s5 + $0x740] sm:$0xff]  }
 0x426   : > { %6033 = vmatprep.subr.bf16.mxu0 %v6655_v16 }
 0x427   : > { %6104 = vmatmul.mubr.bf16.vlgmr.msra.gmra.mrb[72].mxu1 %v3485_v7  ;;  %v6545_v7 = vld [vmem:[%s8154_s5 + $0x748] sm:$0xff]  }
 0x428   : > { %6128 = vmatpush3.bf16.msra.mxu1 %v6511_v36  ;;  %6143 = vmatprep.mubr.msk.bf16.mxu1 %vm6656_vm5, %v6655_v16  ;;  %v6544_v36 = vld [vmem:[%s8154_s5 + $0x618] sm:$0xff]  }
 0x429   : > { %6034 = vmatpush3.bf16.msra.mxu0 %v6512_v8  ;;  %6129 = vmatprep.subr.bf16.mxu1 %v6655_v16  ;;  %v6546_v8 = vld [vmem:[%s8154_s5 + $0x620] sm:$0xff]  }
 0x42a   : > { %6035 = vmatprep.subr.bf16.mxu0 %v6655_v16 }
 0x42c   : > { %6130 = vmatpush3.bf16.msra.mxu1 %v6513_v26  ;;  %v6547_v26 = vld [vmem:[%s8154_s5 + $0x750] sm:$0xff]  }
 0x42d   : > { %6036 = vmatpush3.bf16.msra.mxu0 %v6514_v6  ;;  %6131 = vmatprep.subr.bf16.mxu1 %v6655_v16  ;;  %v6548_v6 = vld [vmem:[%s8154_s5 + $0x628] sm:$0xff]  }
 0x42e   : > { %6037 = vmatprep.subr.bf16.mxu0 %v6655_v16 }
 0x42f   : > { %v1749_v60 = vpop.f32.mrb[32].mxu0 }
 0x430   : > { %v1755_v11 = vadd.f32 %v1749_v60, %v1647_v55  ;;  %v5765_v53 = vpop.f32.mrb[33].mxu0  ;;  %6132 = vmatpush3.bf16.msra.mxu1 %v6515_v9  ;;  %v6536_v55 = vld [vmem:[%s8154_s5 + $0x5b8] sm:$0xff]  }
 0x431   : > { %v1752_v59 = vpop.f32.mrb[34].mxu0  ;;  %6038 = vmatpush3.bf16.msra.mxu0 %v6516_v10  ;;  %6133 = vmatprep.subr.bf16.mxu1 %v6655_v16 }
 0x432   : > { %v5766_v15 = vpop.f32.mrb[35].mxu0  ;;  %6039 = vmatprep.subr.bf16.mxu0 %v6655_v16  ;;  %v1863_v17 = vadd.f32 %v7664_v27, %v1755_v11  ;;  %v6549_v11 = vld [vmem:[%s8154_s5 + $0x758] sm:$0xff]  }
 0x433   : > { %v6551_v15 = vld [vmem:[%s8154_s5 + $0x760] sm:$0xff]  }
 0x434   : > { %6134 = vmatpush3.bf16.msra.mxu1 %v6517_v12  ;;  %v6550_v12 = vld [vmem:[%s8154_s5 + $0x630] sm:$0xff]  }
 0x435   : > { %6040 = vmatpush3.bf16.msra.mxu0 %v6518_v14  ;;  %v992_v57 = vpop.permute.xlu1 %991  ;;  %6135 = vmatprep.subr.bf16.mxu1 %v6655_v16 }
 0x436   : > { %1002 = vst.msk [vmem:[#allocation3 + $0x18] sm:$0x7f] %vm1001_vm9, %v992_v57  ;;  %6041 = vmatprep.subr.bf16.mxu0 %v6655_v16  ;;  %v6553_v57 = vld [vmem:[%s8154_s5 + $0x768] sm:$0xff]  }
 0x438   : > { %6136 = vmatpush3.bf16.msra.mxu1 %v6519_v18 }
 0x439   : > { %6042 = vmatpush3.bf16.msra.mxu0 %v6520_v19  ;;  %6137 = vmatprep.subr.bf16.mxu1 %v6655_v16  ;;  %v6554_v19 = vld [vmem:[%s8154_s5 + $0x680] sm:$0xff]  }
 0x43a   : > { %v7806_v24 = vpop.f32.mrb[48].mxu1  ;;  %6067 = vmatprep.subr.bf16.mxu0 %v6655_v16 }
 0x43b   : > { %v5865_v27 = vpop.f32.mrb[49].mxu1 }
 0x43c   : > { %v2292_v28 = vpop.f32.mrb[50].mxu1  ;;  %6044 = vmatmul.mubr.bf16.vlgmr.msra.gmra.mrb[60].mxu0 %v3161_v25  ;;  %6138 = vmatpush3.bf16.msra.mxu1 %v6521_v21  ;;  %v6555_v25 = vld [vmem:[%s8154_s5 + $0x770] sm:$0xff]  }
 0x43d   : > { %v5866_v30 = vpop.f32.mrb[51].mxu1  ;;  %6068 = vmatpush3.bf16.msra.mxu0 %v6522_v22  ;;  %6139 = vmatprep.subr.bf16.mxu1 %v6655_v16  ;;  %v3700_v34 = vld [vmem:[#allocation3 + $0x19] sm:$0x1]  ;;  %v3916_v4 = vld [vmem:[#allocation3 + $0x1b] sm:$0x1]  ;;  %v6556_v28 = vld [vmem:[%s8154_s5 + $0x688] sm:$0xff]  }
 0x43e   : > { %6069 = vmatprep.subr.bf16.mxu0 %v6655_v16  ;;  %6083 = vmatprep.mubr.msk.bf16.mxu0 %vm6656_vm5, %v6655_v16  ;;  %v3701_v38 = vpack.c.bf16 %v3700_v34, %v3700_v34  ;;  %v3917_v5 = vpack.c.bf16 %v3916_v4, %v3916_v4  ;;  %v3592_v18 = vld [vmem:[#allocation3 + $0x18] sm:$0x1]  ;;  %v6558_v30 = vld [vmem:[%s8154_s5 + $0x690] sm:$0xff]   ;;  %v6560_v34 = vld [vmem:[%s8154_s5 + $0x6a0] sm:$0xff]  }
 0x43f   : > { %v3593_v21 = vpack.c.bf16 %v3592_v18, %v3592_v18  ;;  %v4024_v4 = vld [vmem:[#allocation3 + $0x1c] sm:$0x1] }
 0x440   : > { %6140 = vmatpush3.bf16.msra.mxu1 %v6523_v29  ;;  %v6557_v29 = vld [vmem:[%s8154_s5 + $0x778] sm:$0xff]  }
 0x441   : > { %6070 = vmatpush3.bf16.msra.mxu0 %v6524_v31  ;;  %6141 = vmatprep.subr.bf16.mxu1 %v6655_v16  ;;  %v4132_v31 = vld [vmem:[#allocation3 + $0x1d] sm:$0x1] }
 0x442   : > { %6071 = vmatprep.subr.bf16.mxu0 %v6655_v16 }
 0x444   : > { %6142 = vmatpush3.bf16.msra.mxu1 %v6525_v32  ;;  %v4133_v32 = vpack.c.bf16 %v4132_v31, %v4132_v31 }
 0x445   : > { %6072 = vmatpush3.bf16.msra.mxu0 %v6526_v33  ;;  %6167 = vmatprep.subr.bf16.mxu1 %v6655_v16  ;;  %v6559_v33 = vld [vmem:[%s8154_s5 + $0x698] sm:$0xff]  }
 0x446   : > { %6073 = vmatprep.subr.bf16.mxu0 %v6655_v16 }
 0x447   : > { %6144 = vmatmul.mubr.bf16.vlgmr.msra.gmra.mrb[76].mxu1 %v3701_v38 }
 0x448   : > { %6168 = vmatpush3.bf16.msra.mxu1 %v6527_v35  ;;  %6183 = vmatprep.mubr.msk.bf16.mxu1 %vm6656_vm5, %v6655_v16  ;;  %v6561_v35 = vld [vmem:[%s8154_s5 + $0x6a8] sm:$0xff]  }
 0x449   : > { %6074 = vmatpush3.bf16.msra.mxu0 %v6528_v39  ;;  %6169 = vmatprep.subr.bf16.mxu1 %v6655_v16 }
 0x44a   : > { %6075 = vmatprep.subr.bf16.mxu0 %v6655_v16 }
 0x44c   : > { %6170 = vmatpush3.bf16.msra.mxu1 %v6529_v40 }
 0x44d   : > { %6076 = vmatpush3.bf16.msra.mxu0 %v6530_v41  ;;  %6171 = vmatprep.subr.bf16.mxu1 %v6655_v16 }
 0x44e   : > { %6077 = vmatprep.subr.bf16.mxu0 %v6655_v16 }
 0x44f   : > { %v1965_v44 = vpop.f32.mrb[36].mxu0 }
 0x450   : > { %v1971_v45 = vadd.f32 %v1965_v44, %v1863_v17  ;;  %v5805_v46 = vpop.f32.mrb[37].mxu0  ;;  %6172 = vmatpush3.bf16.msra.mxu1 %v6531_v42  ;;  %v6552_v17 = vld [vmem:[%s8154_s5 + $0x638] sm:$0xff]   ;;  %v6562_v42 = vld [vmem:[%s8154_s5 + $0x6b0] sm:$0xff]  }
 0x451   : > { %v1968_v48 = vpop.f32.mrb[38].mxu0  ;;  %6078 = vmatpush3.bf16.msra.mxu0 %v6532_v43  ;;  %6173 = vmatprep.subr.bf16.mxu1 %v6655_v16  ;;  %v3808_v46 = vld [vmem:[#allocation3 + $0x1a] sm:$0x1] }
 0x452   : > { %v5806_v52 = vpop.f32.mrb[39].mxu0  ;;  %6079 = vmatprep.subr.bf16.mxu0 %v6655_v16  ;;  %v2079_v23 = vadd.f32 %v7735_v61, %v1971_v45  ;;  %v6563_v45 = vld [vmem:[%s8154_s5 + $0x6b8] sm:$0xff]  }
 0x454   : > { %6174 = vmatpush3.bf16.msra.mxu1 %v6533_v47  ;;  %v6564_v47 = vld [vmem:[%s8154_s5 + $0x700] sm:$0xff]  }
 0x455   : > { %6080 = vmatpush3.bf16.msra.mxu0 %v6534_v51  ;;  %6175 = vmatprep.subr.bf16.mxu1 %v6655_v16  ;;  %v3809_v51 = vpack.c.bf16 %v3808_v46, %v3808_v46  ;;  %v6581_v46 = vld [vmem:[%s8156_s7 + $0x8] sm:$0xff]  }
 0x456   : > { %6081 = vmatprep.subr.bf16.mxu0 %v6655_v16 }
 0x458   : > { %6176 = vmatpush3.bf16.msra.mxu1 %v6535_v54 }
 0x459   : > { %6082 = vmatpush3.bf16.msra.mxu0 %v6536_v55  ;;  %6177 = vmatprep.subr.bf16.mxu1 %v6655_v16  ;;  %v6565_v55 = vld [vmem:[%s8154_s5 + $0x708] sm:$0xff]  }
 0x45a   : > { %v7877_v58 = vpop.f32.mrb[52].mxu1  ;;  %6107 = vmatprep.subr.bf16.mxu0 %v6655_v16 }
 0x45b   : > { %v5905_v61 = vpop.f32.mrb[53].mxu1 }
 0x45c   : > { %v2508_v62 = vpop.f32.mrb[54].mxu1  ;;  %6084 = vmatmul.mubr.bf16.vlgmr.msra.gmra.mrb[64].mxu0 %v3377_v49  ;;  %6178 = vmatpush3.bf16.msra.mxu1 %v6537_v13  ;;  %v6567_v13 = vld [vmem:[%s8154_s5 + $0x718] sm:$0xff]  }
 0x45d   : > { %v5906_v0 = vpop.f32.mrb[55].mxu1  ;;  %6108 = vmatpush3.bf16.msra.mxu0 %v6538_v56  ;;  %6179 = vmatprep.subr.bf16.mxu1 %v6655_v16  ;;  %v6568_v56 = vld [vmem:[%s8154_s5 + $0x720] sm:$0xff]  }
 0x45e   : > { %6109 = vmatprep.subr.bf16.mxu0 %v6655_v16  ;;  %6123 = vmatprep.mubr.msk.bf16.mxu0 %vm6656_vm5, %v6655_v16  ;;  %v6570_v0 = vld [vmem:[%s8154_s5 + $0x730] sm:$0xff]  }
 0x460   : > { %6180 = vmatpush3.bf16.msra.mxu1 %v6539_v63 }
 0x461   : > { %6110 = vmatpush3.bf16.msra.mxu0 %v6540_v1  ;;  %6181 = vmatprep.subr.bf16.mxu1 %v6655_v16 }
 0x462   : > { %6111 = vmatprep.subr.bf16.mxu0 %v6655_v16 }
 0x464   : > { %6182 = vmatpush3.bf16.msra.mxu1 %v6541_v2 }
 0x465   : > { %6112 = vmatpush3.bf16.msra.mxu0 %v6542_v3  ;;  %6207 = vmatprep.subr.bf16.mxu1 %v6655_v16  ;;  %v6571_v3 = vld [vmem:[%s8154_s5 + $0x738] sm:$0xff]  }
 0x466   : > { %6113 = vmatprep.subr.bf16.mxu0 %v6655_v16 }
 0x467   : > { %6184 = vmatmul.mubr.bf16.vlgmr.msra.gmra.mrb[80].mxu1 %v3917_v5 }
 0x468   : > { %6208 = vmatpush3.bf16.msra.mxu1 %v6543_v37  ;;  %6223 = vmatprep.mubr.msk.bf16.mxu1 %vm6656_vm5, %v6655_v16  ;;  %v6572_v37 = vld [vmem:[%s8154_s5 + $0x780] sm:$0xff]  }
 0x469   : > { %6114 = vmatpush3.bf16.msra.mxu0 %v6544_v36  ;;  %6209 = vmatprep.subr.bf16.mxu1 %v6655_v16  ;;  %v4025_v36 = vpack.c.bf16 %v4024_v4, %v4024_v4 }
 0x46a   : > { %6115 = vmatprep.subr.bf16.mxu0 %v6655_v16 }
 0x46c   : > { %6210 = vmatpush3.bf16.msra.mxu1 %v6545_v7 }
 0x46d   : > { %6116 = vmatpush3.bf16.msra.mxu0 %v6546_v8  ;;  %6211 = vmatprep.subr.bf16.mxu1 %v6655_v16 }
 0x46e   : > { %6117 = vmatprep.subr.bf16.mxu0 %v6655_v16 }
 0x46f   : > { %v2181_v9 = vpop.f32.mrb[40].mxu0 }
 0x470   : > { %v2187_v10 = vadd.f32 %v2181_v9, %v2079_v23  ;;  %v5845_v60 = vpop.f32.mrb[41].mxu0  ;;  %6212 = vmatpush3.bf16.msra.mxu1 %v6547_v26  ;;  %v6574_v9 = vld [vmem:[%s8154_s5 + $0x790] sm:$0xff]  }
 0x471   : > { %v2184_v53 = vpop.f32.mrb[42].mxu0  ;;  %6118 = vmatpush3.bf16.msra.mxu0 %v6548_v6  ;;  %6213 = vmatprep.subr.bf16.mxu1 %v6655_v16  ;;  %v6573_v6 = vld [vmem:[%s8154_s5 + $0x788] sm:$0xff]   ;;  %v6576_v60 = vld [vmem:[%s8154_s5 + $0x7a0] sm:$0xff]  }
 0x472   : > { %v5846_v59 = vpop.f32.mrb[43].mxu0  ;;  %6119 = vmatprep.subr.bf16.mxu0 %v6655_v16  ;;  %v2295_v14 = vadd.f32 %v7806_v24, %v2187_v10  ;;  %v6575_v10 = vld [vmem:[%s8154_s5 + $0x798] sm:$0xff]  }
 0x474   : > { %6214 = vmatpush3.bf16.msra.mxu1 %v6549_v11  ;;  %v6577_v11 = vld [vmem:[%s8154_s5 + $0x7a8] sm:$0xff]  }
 0x475   : > { %6120 = vmatpush3.bf16.msra.mxu0 %v6550_v12  ;;  %6215 = vmatprep.subr.bf16.mxu1 %v6655_v16 }
 0x476   : > { %6121 = vmatprep.subr.bf16.mxu0 %v6655_v16 }
 0x478   : > { %6216 = vmatpush3.bf16.msra.mxu1 %v6551_v15  ;;  %v6578_v15 = vld [vmem:[%s8154_s5 + $0x7b0] sm:$0xff]  }
 0x479   : > { %6122 = vmatpush3.bf16.msra.mxu0 %v6552_v17  ;;  %6217 = vmatprep.subr.bf16.mxu1 %v6655_v16 }
 0x47a   : > { %v7948_v20 = vpop.f32.mrb[56].mxu1  ;;  %6147 = vmatprep.subr.bf16.mxu0 %v6655_v16 }
 0x47b   : > { %v5945_v22 = vpop.f32.mrb[57].mxu1 }
 0x47c   : > { %v2724_v24 = vpop.f32.mrb[58].mxu1  ;;  %6124 = vmatmul.mubr.bf16.vlgmr.msra.gmra.mrb[68].mxu0 %v3593_v21  ;;  %6218 = vmatpush3.bf16.msra.mxu1 %v6553_v57  ;;  %v6579_v57 = vld [vmem:[%s8154_s5 + $0x7b8] sm:$0xff]  }
 0x47d   : > { %v5946_v27 = vpop.f32.mrb[59].mxu1  ;;  %6148 = vmatpush3.bf16.msra.mxu0 %v6554_v19  ;;  %6219 = vmatprep.subr.bf16.mxu1 %v6655_v16  ;;  %v4240_v19 = vld [vmem:[#allocation3 + $0x1e] sm:$0x1] }
 0x47e   : > { %6149 = vmatprep.subr.bf16.mxu0 %v6655_v16  ;;  %6163 = vmatprep.mubr.msk.bf16.mxu0 %vm6656_vm5, %v6655_v16  ;;  %v4241_v21 = vpack.c.bf16 %v4240_v19, %v4240_v19 }
 0x480   : > { %6220 = vmatpush3.bf16.msra.mxu1 %v6555_v25 }
 0x481   : > { %6150 = vmatpush3.bf16.msra.mxu0 %v6556_v28  ;;  %6221 = vmatprep.subr.bf16.mxu1 %v6655_v16 }
 0x482   : > { %6151 = vmatprep.subr.bf16.mxu0 %v6655_v16 }
 0x484   : > { %6222 = vmatpush3.bf16.msra.mxu1 %v6557_v29 }
 0x485   : > { %6152 = vmatpush3.bf16.msra.mxu0 %v6558_v30  ;;  %6247 = vmatprep.subr.bf16.mxu1 %v6655_v16 }
 0x486   : > { %6153 = vmatprep.subr.bf16.mxu0 %v6655_v16 }
 0x487   : > { %6224 = vmatmul.mubr.bf16.vlgmr.msra.gmra.mrb[84].mxu1 %v4133_v32 }
 0x488   : > { %6263 = vmatprep.mubr.msk.bf16.mxu1 %vm6656_vm5, %v6655_v16 }
 0x489   : > { %6154 = vmatpush3.bf16.msra.mxu0 %v6559_v33 }
 0x48a   : > { %6155 = vmatprep.subr.bf16.mxu0 %v6655_v16 }
 0x48d   : > { %6156 = vmatpush3.bf16.msra.mxu0 %v6560_v34 }
 0x48e   : > { %6157 = vmatprep.subr.bf16.mxu0 %v6655_v16 }
 0x48f   : > { %v2397_v38 = vpop.f32.mrb[44].mxu0 }
 0x490   : > { %v2403_v39 = vadd.f32 %v2397_v38, %v2295_v14  ;;  %v5885_v40 = vpop.f32.mrb[45].mxu0 }
 0x491   : > { %v2400_v41 = vpop.f32.mrb[46].mxu0  ;;  %6158 = vmatpush3.bf16.msra.mxu0 %v6561_v35 }
 0x492   : > { %v5886_v43 = vpop.f32.mrb[47].mxu0  ;;  %6159 = vmatprep.subr.bf16.mxu0 %v6655_v16  ;;  %v2511_v44 = vadd.f32 %v7877_v58, %v2403_v39  ;;  %v6569_v58 = vld [vmem:[%s8154_s5 + $0x728] sm:$0xff]  }
 0x495   : > { %6160 = vmatpush3.bf16.msra.mxu0 %v6562_v42 }
 0x496   : > { %6161 = vmatprep.subr.bf16.mxu0 %v6655_v16 }
 0x499   : > { %6162 = vmatpush3.bf16.msra.mxu0 %v6563_v45  ;;  %v6580_v45 = vld [vmem:[%s8156_s7] sm:$0xff]  }
 0x49a   : > { %v7996_v48 = vpop.f32.mrb[60].mxu1  ;;  %6187 = vmatprep.subr.bf16.mxu0 %v6655_v16  ;;  %6248 = vmatpush3.bf16.msra.mxu1 %v6580_v45 }
 0x49b   : > { %v5985_v52 = vpop.f32.mrb[61].mxu1  ;;  %6249 = vmatprep.subr.bf16.mxu1 %v6655_v16 }
 0x49c   : > { %v2940_v23 = vpop.f32.mrb[62].mxu1  ;;  %6164 = vmatmul.mubr.bf16.vlgmr.msra.gmra.mrb[72].mxu0 %v3809_v51 }
 0x49d   : > { %v5986_v54 = vpop.f32.mrb[63].mxu1  ;;  %6188 = vmatpush3.bf16.msra.mxu0 %v6564_v47  ;;  %6203 = vmatprep.mubr.msk.bf16.mxu0 %vm6656_vm5, %v6655_v16  ;;  %v6582_v47 = vld [vmem:[%s8156_s7 + $0x10] sm:$0xff]   ;;  %v6583_v23 = vld [vmem:[%s8156_s7 + $0x18] sm:$0xff]  }
 0x49e   : > { %6189 = vmatprep.subr.bf16.mxu0 %v6655_v16  ;;  %6250 = vmatpush3.bf16.msra.mxu1 %v6581_v46 }
 0x49f   : > { %6251 = vmatprep.subr.bf16.mxu1 %v6655_v16 }
 0x4a1   : > { %6190 = vmatpush3.bf16.msra.mxu0 %v6565_v55  ;;  %v6584_v55 = vld [vmem:[%s8156_s7 + $0x20] sm:$0xff]  }
 0x4a2   : > { %6191 = vmatprep.subr.bf16.mxu0 %v6655_v16  ;;  %6252 = vmatpush3.bf16.msra.mxu1 %v6582_v47 }
 0x4a3   : > { %6253 = vmatprep.subr.bf16.mxu1 %v6655_v16 }
 0x4a5   : > { %6192 = vmatpush3.bf16.msra.mxu0 %v6566_v50  ;;  %v6585_v50 = vld [vmem:[%s8156_s7 + $0x28] sm:$0xff]  }
 0x4a6   : > { %6193 = vmatprep.subr.bf16.mxu0 %v6655_v16  ;;  %6254 = vmatpush3.bf16.msra.mxu1 %v6583_v23 }
 0x4a7   : > { %6255 = vmatprep.subr.bf16.mxu1 %v6655_v16 }
 0x4a9   : > { %6194 = vmatpush3.bf16.msra.mxu0 %v6567_v13 }
 0x4aa   : > { %6195 = vmatprep.subr.bf16.mxu0 %v6655_v16  ;;  %6256 = vmatpush3.bf16.msra.mxu1 %v6584_v55 }
 0x4ab   : > { %6257 = vmatprep.subr.bf16.mxu1 %v6655_v16 }
 0x4ad   : > { %6196 = vmatpush3.bf16.msra.mxu0 %v6568_v56 }
 0x4ae   : > { %6197 = vmatprep.subr.bf16.mxu0 %v6655_v16  ;;  %6258 = vmatpush3.bf16.msra.mxu1 %v6585_v50 }
 0x4af   : > { %v2613_v49 = vpop.f32.mrb[48].mxu0  ;;  %6259 = vmatprep.subr.bf16.mxu1 %v6655_v16 }
 0x4b0   : > { %v2619_v61 = vadd.f32 %v2613_v49, %v2511_v44  ;;  %v5925_v62 = vpop.f32.mrb[49].mxu0  ;;  %v6586_v49 = vld [vmem:[%s8156_s7 + $0x30] sm:$0xff]  }
 0x4b1   : > { %v2616_v63 = vpop.f32.mrb[50].mxu0  ;;  %6198 = vmatpush3.bf16.msra.mxu0 %v6569_v58 }
 0x4b2   : > { %v5926_v1 = vpop.f32.mrb[51].mxu0  ;;  %6199 = vmatprep.subr.bf16.mxu0 %v6655_v16  ;;  %v2727_v2 = vadd.f32 %v7948_v20, %v2619_v61  ;;  %6260 = vmatpush3.bf16.msra.mxu1 %v6586_v49 }
 0x4b3   : > { %6261 = vmatprep.subr.bf16.mxu1 %v6655_v16 }
 0x4b5   : > { %6200 = vmatpush3.bf16.msra.mxu0 %v6570_v0  ;;  %v6587_v0 = vld [vmem:[%s8156_s7 + $0x38] sm:$0xff]  }
 0x4b6   : > { %6201 = vmatprep.subr.bf16.mxu0 %v6655_v16  ;;  %6262 = vmatpush3.bf16.msra.mxu1 %v6587_v0 }
 0x4b9   : > { %6202 = vmatpush3.bf16.msra.mxu0 %v6571_v3 }
 0x4ba   : > { %v3153_v5 = vpop.f32.mrb[64].mxu1  ;;  %6227 = vmatprep.subr.bf16.mxu0 %v6655_v16 }
 0x4bb   : > { %v6025_v7 = vpop.f32.mrb[65].mxu1 }
 0x4bc   : > { %v3156_v8 = vpop.f32.mrb[66].mxu1  ;;  %6204 = vmatmul.mubr.bf16.vlgmr.msra.gmra.mrb[76].mxu0 %v4025_v36 }
 0x4bd   : > { %v6026_v26 = vpop.f32.mrb[67].mxu1  ;;  %6228 = vmatpush3.bf16.msra.mxu0 %v6572_v37  ;;  %6243 = vmatprep.mubr.msk.bf16.mxu0 %vm6656_vm5, %v6655_v16 }
 0x4be   : > { %6229 = vmatprep.subr.bf16.mxu0 %v6655_v16 }
 0x4c1   : > { %6230 = vmatpush3.bf16.msra.mxu0 %v6573_v6 }
 0x4c2   : > { %6231 = vmatprep.subr.bf16.mxu0 %v6655_v16 }
 0x4c5   : > { %6232 = vmatpush3.bf16.msra.mxu0 %v6574_v9 }
 0x4c6   : > { %6233 = vmatprep.subr.bf16.mxu0 %v6655_v16 }
 0x4c9   : > { %6234 = vmatpush3.bf16.msra.mxu0 %v6575_v10 }
 0x4ca   : > { %6235 = vmatprep.subr.bf16.mxu0 %v6655_v16 }
 0x4cd   : > { %6236 = vmatpush3.bf16.msra.mxu0 %v6576_v60 }
 0x4ce   : > { %6237 = vmatprep.subr.bf16.mxu0 %v6655_v16 }
 0x4cf   : > { %v2829_v53 = vpop.f32.mrb[52].mxu0 }
 0x4d0   : > { %v2835_v12 = vadd.f32 %v2829_v53, %v2727_v2  ;;  %v5965_v59 = vpop.f32.mrb[53].mxu0 }
 0x4d1   : > { %v2832_v14 = vpop.f32.mrb[54].mxu0  ;;  %6238 = vmatpush3.bf16.msra.mxu0 %v6577_v11 }
 0x4d2   : > { %v5966_v17 = vpop.f32.mrb[55].mxu0  ;;  %6239 = vmatprep.subr.bf16.mxu0 %v6655_v16  ;;  %v2943_v18 = vadd.f32 %v7996_v48, %v2835_v12 }
 0x4d5   : > { %6240 = vmatpush3.bf16.msra.mxu0 %v6578_v15 }
 0x4d6   : > { %6241 = vmatprep.subr.bf16.mxu0 %v6655_v16 }
 0x4d9   : > { %6242 = vmatpush3.bf16.msra.mxu0 %v6579_v57 }
 0x4da   : > { %v3369_v20 = vpop.f32.mrb[68].mxu1 }
 0x4db   : > { %v6065_v22 = vpop.f32.mrb[69].mxu1 }
 0x4dc   : > { %v3372_v24 = vpop.f32.mrb[70].mxu1  ;;  %6244 = vmatmul.mubr.bf16.vlgmr.msra.gmra.mrb[80].mxu0 %v4241_v21  ;;  %v4348_v22 = vld [vmem:[%s8155_s6] sm:$0x1] }
 0x4dd   : > { %v6066_v25 = vpop.f32.mrb[71].mxu1 }
 0x4ef   : > { %v3045_v27 = vpop.f32.mrb[56].mxu0 }
 0x4f0   : > { %v3051_v28 = vadd.f32 %v3045_v27, %v2943_v18  ;;  %v6005_v29 = vpop.f32.mrb[57].mxu0 }
 0x4f1   : > { %v3048_v30 = vpop.f32.mrb[58].mxu0 }
 0x4f2   : > { %v6006_v31 = vpop.f32.mrb[59].mxu0  ;;  %v3159_v32 = vadd.f32 %v3153_v5, %v3051_v28 }
 0x4fa   : > { %v3585_v33 = vpop.f32.mrb[72].mxu1 }
 0x4fb   : > { %v6105_v34 = vpop.f32.mrb[73].mxu1 }
 0x4fc   : > { %v3588_v35 = vpop.f32.mrb[74].mxu1 }
 0x4fd   : > { %v6106_v38 = vpop.f32.mrb[75].mxu1 }
 0x50f   : > { %v3261_v39 = vpop.f32.mrb[60].mxu0 }
 0x510   : > { %v3267_v40 = vadd.f32 %v3261_v39, %v3159_v32  ;;  %v6045_v41 = vpop.f32.mrb[61].mxu0  ;;  %v4368_v32 = vld [vmem:[%s8157_s8] sm:$0x1] }
 0x511   : > { %v3264_v42 = vpop.f32.mrb[62].mxu0 }
 0x512   : > { %v6046_v43 = vpop.f32.mrb[63].mxu0  ;;  %v3375_v44 = vadd.f32 %v3369_v20, %v3267_v40 }
 0x51a   : > { %v3801_v48 = vpop.f32.mrb[76].mxu1 }
 0x51b   : > { %v6145_v51 = vpop.f32.mrb[77].mxu1 }
 0x51c   : > { %v3804_v52 = vpop.f32.mrb[78].mxu1 }
 0x51d   : > { %v6146_v54 = vpop.f32.mrb[79].mxu1 }
 0x52f   : > { %v3477_v13 = vpop.f32.mrb[64].mxu0 }
 0x530   : > { %v3483_v56 = vadd.f32 %v3477_v13, %v3375_v44  ;;  %v6085_v58 = vpop.f32.mrb[65].mxu0 }
 0x531   : > { %v3480_v61 = vpop.f32.mrb[66].mxu0 }
 0x532   : > { %v6086_v62 = vpop.f32.mrb[67].mxu0  ;;  %v3591_v63 = vadd.f32 %v3585_v33, %v3483_v56 }
 0x53a   : > { %v4017_v1 = vpop.f32.mrb[80].mxu1 }
 0x53b   : > { %v6185_v2 = vpop.f32.mrb[81].mxu1 }
 0x53c   : > { %v4020_v3 = vpop.f32.mrb[82].mxu1 }
 0x53d   : > { %v6186_v4 = vpop.f32.mrb[83].mxu1 }
 0x54f   : > { %v3693_v37 = vpop.f32.mrb[68].mxu0 }
 0x550   : > { %v3699_v5 = vadd.f32 %v3693_v37, %v3591_v63  ;;  %v6125_v36 = vpop.f32.mrb[69].mxu0 }
 0x551   : > { %v3696_v7 = vpop.f32.mrb[70].mxu0 }
 0x552   : > { %v6126_v8 = vpop.f32.mrb[71].mxu0  ;;  %v3807_v26 = vadd.f32 %v3801_v48, %v3699_v5 }
 0x55a   : > { %v4233_v6 = vpop.f32.mrb[84].mxu1 }
 0x55b   : > { %v6225_v9 = vpop.f32.mrb[85].mxu1 }
 0x55c   : > { %v4236_v10 = vpop.f32.mrb[86].mxu1 }
 0x55d   : > { %v6226_v60 = vpop.f32.mrb[87].mxu1 }
 0x56f   : > { %v3909_v16 = vpop.f32.mrb[72].mxu0 }
 0x570   : > { %v3915_v11 = vadd.f32 %v3909_v16, %v3807_v26  ;;  %v6165_v53 = vpop.f32.mrb[73].mxu0 }
 0x571   : > { %v3912_v12 = vpop.f32.mrb[74].mxu0 }
 0x572   : > { %v6166_v59 = vpop.f32.mrb[75].mxu0  ;;  %v4023_v14 = vadd.f32 %v4017_v1, %v3915_v11 }
 0x58f   : > { %v4125_v15 = vpop.f32.mrb[76].mxu0 }
 0x590   : > { %v4131_v17 = vadd.f32 %v4125_v15, %v4023_v14  ;;  %v6205_v18 = vpop.f32.mrb[77].mxu0 }
 0x591   : > { %v4128_v57 = vpop.f32.mrb[78].mxu0 }
 0x592   : > { %v6206_v19 = vpop.f32.mrb[79].mxu0  ;;  %v4239_v20 = vadd.f32 %v4233_v6, %v4131_v17 }
 0x5af   : > { %v4341_v21 = vpop.f32.mrb[80].mxu0 }
 0x5b0   : > { %v4347_v24 = vadd.f32 %v4341_v21, %v4239_v20  ;;  %v6245_v25 = vpop.f32.mrb[81].mxu0 }
 0x5b1   : > { %v4344_v27 = vpop.f32.mrb[82].mxu0 }
 0x5b2   : > { %v4349_v28 = vadd.f32 %v4348_v22, %v4347_v24  ;;  %v6246_v29 = vpop.f32.mrb[83].mxu0 }
 0x5b4   : > { %v4350_v30 = vmax.f32 %v4349_v28, 0.0 }
 0x5b6   : > { %v4351_v31 = vpack.c.bf16 %v4350_v30, %v4350_v30 }
 0x5b8   : > { %6264 = vmatmul.mubr.bf16.vlgmr.msra.gmra.mrb[88].mxu1 %v4351_v31 }
 0x68b   : > { %v4451_v33 = vpop.f32.mrb[88].mxu1 }
 0x68c   : > { %v4452_v34 = vadd.f32 %v4451_v33, %v4368_v32  ;;  %v6265_v35 = vpop.f32.mrb[89].mxu1 }
 0x68d   : > { %v4454_v38 = vpop.f32.mrb[90].mxu1 }
 0x68e   : > { %v4457_v39 = vmax.f32 %v4452_v34, 0.0  ;;  %v6266_v40 = vpop.f32.mrb[91].mxu1 }
 0x690   : > { %4458 = vst [vmem:[%s324_s25] sm:$0x1] %v4457_v39 }
 0x691   : > { %6602 = shalt.err (!%p6599_p3)
}
 0x692   : > { %s6603_s21 = scalar_lea.hbm %s8107_s28, 16  ;;  %s6607_s25 = scalar_lea.hbm %s8158_s9, 32 }
 0x693   : > { %p6604_p4 = scmp.ne.s32.totalorder %s8107_s28, %s6603_s21  ;;  %p6608_p9 = scmp.lt.u32.totalorder %s8107_s28, %s8158_s9 }
 0x694   : > { %p6609_p10 = scmp.lt.u32.totalorder %s6607_s25, %s6603_s21  ;;  %p6611_p12 = scmp.lt.u32.totalorder %s6603_s21, %s8107_s28 }
 0x695   : > { %p6605_p7 = pnand %p6604_p4, %p6746_p5 }
 0x696   : > { %p6610_p11 = por %p6609_p10, %p6608_p9 }
 0x697   : > { %p6606_p8 = pneg %p6605_p7 }
 0x698   : > { %p6612_p13 = por %p6611_p12, %p6610_p11 }
 0x69a   : > { %p6613_p0 = pnand %p6612_p13, %p6606_p8 }
 0x69c   : > { %6616 = shalt.err (!%p6613_p0)
}
 0x69d   : > { %6268 = dma.vmem_to_hbm [thread:$0]  (%p6746_p5), %s8109_s14, 16, %s8107_s28, %s4460_s29  }
 0x69e PF: > { %p6274_p1 = scmp.ge.s32.totalorder %s6651_s12, 2  ;;  %s4484_s13 = sand.u32 1, %s6639_s30  }
 0x69f   : > { %s4485_s16 = scalar_lea.sflag [#allocation5], %s4484_s13 }
 0x6a0   : > { %p6271_p2 = pnand %p6274_p1, %p6750_p6 }
 0x6a2   : > { %6634 = dma.done.wait (!%p6271_p2), %s4485_s16, 16  }
 0x6a3   : > { %6636 = vsyncadd (!%p6271_p2), %s4485_s16, 4294967280  ;;  %p19_p3 = scmp.ge.s32.totalorder %s6733_s15, 4   ;;  %s8161_s30 = smov %s6643_s10 }
 0x6a4   : > { %s8162_s10 = smov %s6647_s11  ;;  %s8163_s11 = smov %s6744_s18 }
 0x6a5   : > { %s8164_s12 = smov %s6733_s15  ;;  %21 = sbr.rel (!%p19_p3) target bundleno = 3 (0x3), region = 136 }
 0x6ac   :  { %4489 = vsyncpa [#allocation5], 1 }
 0x6ad   :  { %4491 = vsyncpa [#allocation5 + $0x1], 1 }

</bundles_post_ra>
